<compile_context>
chip_gen: v5e
topology: v5e:2x2
jax: 0.10.0
libtpu: 0.0.40
codegen_flags: <defaults>
</compile_context>

<pallas_src>
import functools
from math import pi, sin, cos

import numpy as np
import jax
import jax.numpy as jnp
from jax import lax
from jax.experimental import pallas as pl
from jax.experimental.pallas import tpu as pltpu

LANE = 128                       # lane width: pad channel dims to a multiple of this
ROW_TILE = 256                   # row tile for pipelined matmul/LN kernels
_VMEM_LIMIT = 32 * 1024 * 1024   # explicit scoped-VMEM budget (fits v5e/v6e/v7x)
_SQRT1_2 = 0.7071067811865475


def _round_up(x, m):
    return (x + m - 1) // m * m


def _row_tiles(m):
    """Pick (tile_rows, padded_rows) for a row dimension of size m."""
    if m <= ROW_TILE:
        tm = max(8, _round_up(m, 8))
        return tm, tm
    return ROW_TILE, _round_up(m, ROW_TILE)


def _pad_rows(x2, mp):
    m = x2.shape[0]
    return x2 if m == mp else jnp.pad(x2, ((0, mp - m), (0, 0)))


def _cparams(n_axes):
    return pltpu.CompilerParams(
        dimension_semantics=("parallel",) * n_axes,
        vmem_limit_bytes=_VMEM_LIMIT)


# ----------------------------- Pallas kernels -------------------------------

def _linear_kernel(x_ref, w_ref, b_ref, o_ref, *, gelu: bool):
    # (tm, K)bf16 @ (K, N)bf16 -> fp32 accumulator, + bias, optional exact GELU
    acc = jnp.dot(x_ref[...], w_ref[...], preferred_element_type=jnp.float32)
    acc = acc + b_ref[...]
    if gelu:
        acc = 0.5 * acc * (1.0 + lax.erf(acc * _SQRT1_2))
    o_ref[...] = acc.astype(o_ref.dtype)


def pallas_linear(x, w, b, *, gelu: bool = False):
    """y = x @ w + b.  x: (..., K), w: (K, N) bf16, b: (1, N) fp32. Row-tiled."""
    lead = x.shape[:-1]
    k = x.shape[-1]
    n = w.shape[1]
    m = int(np.prod(lead)) if lead else 1
    tm, mp = _row_tiles(m)
    x2 = _pad_rows(x.reshape(m, k).astype(jnp.bfloat16), mp)
    out = pl.pallas_call(
        functools.partial(_linear_kernel, gelu=gelu),
        grid=(mp // tm,),
        in_specs=[pl.BlockSpec((tm, k), lambda i: (i, 0)),
                  pl.BlockSpec((k, n), lambda i: (0, 0)),
                  pl.BlockSpec((1, n), lambda i: (0, 0))],
        out_specs=pl.BlockSpec((tm, n), lambda i: (i, 0)),
        out_shape=jax.ShapeDtypeStruct((mp, n), jnp.bfloat16),
        compiler_params=_cparams(1),
    )(x2, w.astype(jnp.bfloat16), b)
    if mp != m:
        out = out[:m]
    return out.reshape(lead + (n,))


def _ln_kernel(x_ref, g_ref, b_ref, o_ref, *, true_c: int):
    # LayerNorm over the (zero-padded) channel axis; stats use the true C.
    x = x_ref[...].astype(jnp.float32)
    inv = 1.0 / true_c
    mu = jnp.sum(x, axis=-1, keepdims=True) * inv
    var = jnp.sum(x * x, axis=-1, keepdims=True) * inv - mu * mu
    y = (x - mu) * lax.rsqrt(var + 1e-5)
    o_ref[...] = (y * g_ref[...] + b_ref[...]).astype(o_ref.dtype)


def pallas_layernorm(x, g, b, true_c):
    lead = x.shape[:-1]
    cp = x.shape[-1]
    m = int(np.prod(lead))
    tm, mp = _row_tiles(m)
    x2 = _pad_rows(x.reshape(m, cp), mp)
    out = pl.pallas_call(
        functools.partial(_ln_kernel, true_c=true_c),
        grid=(mp // tm,),
        in_specs=[pl.BlockSpec((tm, cp), lambda i: (i, 0)),
                  pl.BlockSpec((1, cp), lambda i: (0, 0)),
                  pl.BlockSpec((1, cp), lambda i: (0, 0))],
        out_specs=pl.BlockSpec((tm, cp), lambda i: (i, 0)),
        out_shape=jax.ShapeDtypeStruct((mp, cp), jnp.bfloat16),
        compiler_params=_cparams(1),
    )(x2, g, b)
    if mp != m:
        out = out[:m]
    return out.reshape(lead + (cp,))


def _mlp_block_kernel(x_ref, g_ref, bt_ref, w1_ref, b1_ref, w2_ref, b2_ref, o_ref,
                      *, true_c: int, inv_skip: float):
    # Fused: norm_2 -> fc1 -> GELU -> fc2 -> (+ inner residual) -> (+ block residual)
    x = x_ref[...].astype(jnp.float32)
    inv = 1.0 / true_c
    mu = jnp.sum(x, axis=-1, keepdims=True) * inv
    var = jnp.sum(x * x, axis=-1, keepdims=True) * inv - mu * mu
    xn = (x - mu) * lax.rsqrt(var + 1e-5) * g_ref[...] + bt_ref[...]
    h = jnp.dot(xn.astype(jnp.bfloat16), w1_ref[...],
                preferred_element_type=jnp.float32) + b1_ref[...]
    h = 0.5 * h * (1.0 + lax.erf(h * _SQRT1_2))
    y = jnp.dot(h.astype(jnp.bfloat16), w2_ref[...],
                preferred_element_type=jnp.float32) + b2_ref[...]
    y = y + xn                       # MLP inner residual (input_dim == output_dim)
    o_ref[...] = (x + y * inv_skip).astype(o_ref.dtype)


def pallas_mlp_block(x, ln_p, mlp_p, true_c, skip_lam):
    lead = x.shape[:-1]
    cp = x.shape[-1]
    hp = mlp_p["w1"].shape[1]
    m = int(np.prod(lead))
    tm, mp = _row_tiles(m)
    x2 = _pad_rows(x.reshape(m, cp), mp)
    out = pl.pallas_call(
        functools.partial(_mlp_block_kernel, true_c=true_c, inv_skip=1.0 / skip_lam),
        grid=(mp // tm,),
        in_specs=[pl.BlockSpec((tm, cp), lambda i: (i, 0)),
                  pl.BlockSpec((1, cp), lambda i: (0, 0)),
                  pl.BlockSpec((1, cp), lambda i: (0, 0)),
                  pl.BlockSpec((cp, hp), lambda i: (0, 0)),
                  pl.BlockSpec((1, hp), lambda i: (0, 0)),
                  pl.BlockSpec((hp, cp), lambda i: (0, 0)),
                  pl.BlockSpec((1, cp), lambda i: (0, 0))],
        out_specs=pl.BlockSpec((tm, cp), lambda i: (i, 0)),
        out_shape=jax.ShapeDtypeStruct((mp, cp), jnp.bfloat16),
        compiler_params=_cparams(1),
    )(x2, ln_p["g"], ln_p["b"], mlp_p["w1"], mlp_p["b1"], mlp_p["w2"], mlp_p["b2"])
    if mp != m:
        out = out[:m]
    return out.reshape(lead + (cp,))


def _attn_tail_kernel(x_ref, xn_ref, xsh_ref, w0_ref, w1_ref,
                      wc_ref, bc_ref, ws_ref, bs_ref, wp_ref, bp_ref,
                      o_ref, *, inv_skip: float):
    """Fused SpiralMLP tail (per row tile):
        x_cross = shift(xn) @ Wc + bc         (SpiralFC 1x1 pointwise conv)
        x_self  =        xn @ Ws + bs
        out     = x + ((x_cross*w0 + x_self*w1) @ Wproj + bp) / skip_lam
    x_cross / x_self never leave VMEM."""
    xc = jnp.dot(xsh_ref[0], wc_ref[...],
                 preferred_element_type=jnp.float32) + bc_ref[...]
    xs = jnp.dot(xn_ref[0], ws_ref[...],
                 preferred_element_type=jnp.float32) + bs_ref[...]
    t = (xc * w0_ref[0] + xs * w1_ref[0]).astype(jnp.bfloat16)
    y = jnp.dot(t, wp_ref[...], preferred_element_type=jnp.float32) + bp_ref[...]
    o_ref[0] = (x_ref[0].astype(jnp.float32) + y * inv_skip).astype(o_ref.dtype)


def pallas_attn_tail(x, xn, x_shift, w0, w1, attn_p, skip_lam):
    b, hw, cp = x.shape
    tm, hwp = _row_tiles(hw)

    def pad3(a):
        return a if hw == hwp else jnp.pad(a, ((0, 0), (0, hwp - hw), (0, 0)))

    tiles = hwp // tm
    tile_spec = pl.BlockSpec((1, tm, cp), lambda i, j: (i, j, 0))
    vec_spec = pl.BlockSpec((1, 1, cp), lambda i, j: (i, 0, 0))
    mat_spec = pl.BlockSpec((cp, cp), lambda i, j: (0, 0))
    bias_spec = pl.BlockSpec((1, cp), lambda i, j: (0, 0))
    out = pl.pallas_call(
        functools.partial(_attn_tail_kernel, inv_skip=1.0 / skip_lam),
        grid=(b, tiles),
        in_specs=[tile_spec, tile_spec, tile_spec, vec_spec, vec_spec,
                  mat_spec, bias_spec, mat_spec, bias_spec, mat_spec, bias_spec],
        out_specs=tile_spec,
        out_shape=jax.ShapeDtypeStruct((b, hwp, cp), jnp.bfloat16),
        compiler_params=_cparams(2),
    )(pad3(x), pad3(xn), pad3(x_shift), w0, w1,
      attn_p["cross"]["w"], attn_p["cross"]["b"],
      attn_p["self"]["w"], attn_p["self"]["b"],
      attn_p["proj"]["w"], attn_p["proj"]["b"])
    if hwp != hw:
        out = out[:, :hw]
    return out


# ------------------------------- JAX glue ------------------------------------

def extract_patches(x, kh, kw, stride, pad):
    """im2col: (B, H, W, C) -> (B, Ho, Wo, kh*kw*C) with (ki, kj, c) ordering."""
    x = jnp.pad(x, ((0, 0), (pad, pad), (pad, pad), (0, 0)))
    b, h, w, c = x.shape
    ho = (h - kh) // stride + 1
    wo = (w - kw) // stride + 1
    cols = []
    for i in range(kh):
        for j in range(kw):
            cols.append(x[:, i:i + stride * ho:stride, j:j + stride * wo:stride, :])
    p = jnp.stack(cols, axis=3)
    return p.reshape(b, ho, wo, kh * kw * c)


# TODO(synk): the convs still materialize the im2col patches (~2-3x the conv
# input at stride 4/2) before the tiled Pallas matmul; a fully fused
# tap-reduction grid (element-offset index_map into the padded input) would
# remove that extra HBM round trip.
def conv2d_nhwc(x, w_mat, b, kh, kw, stride, pad):
    patches = extract_patches(x, kh, kw, stride, pad)
    return pallas_linear(patches, w_mat, b)


def _shift_axis(x, d, axis):
    """out[..., i, ...] = x[..., i+d, ...] with zero fill outside the range."""
    if d == 0:
        return x
    n = x.shape[axis]
    if abs(d) >= n:
        return jnp.zeros_like(x)
    pads = [(0, 0)] * x.ndim
    if d > 0:
        sl = lax.slice_in_dim(x, d, n, axis=axis)
        pads[axis] = (0, d)
    else:
        sl = lax.slice_in_dim(x, 0, n + d, axis=axis)
        pads[axis] = (-d, 0)
    return jnp.pad(sl, pads)


def spiral_shift(x, dy, dx):
    """deform_conv2d with a 1x1 kernel + integer per-channel offsets ==
    per-channel spatial shift with zero padding:
        out[b, h, w, c] = x[b, h + dy[c], w + dx[c], c].
    Realized as static pad/slice passes (separable H then W) with per-channel
    0/1 masks; no serialized XLA gather.
    # TODO(synk): verify the (dy, dx) sign/axis convention bitwise against
    # torchvision.ops.deform_conv2d (offsets added to the sampling grid)."""
    dy = np.asarray(dy)
    dx = np.asarray(dx)
    xh = jnp.zeros_like(x)
    for d in sorted(set(dy.tolist())):
        m = jnp.asarray(dy == d, dtype=x.dtype)
        xh = xh + _shift_axis(x, int(d), axis=1) * m
    out = jnp.zeros_like(x)
    for d in sorted(set(dx.tolist())):
        m = jnp.asarray(dx == d, dtype=x.dtype)
        out = out + _shift_axis(xh, int(d), axis=2) * m
    return out


def gen_offsets(c):
    """SpiralFC.gen_offset: integer (dy, dx) per channel.
    # TODO(synk): the PyTorch original only initializes offsets for channels
    # [0, c//2); the second half of its torch.empty buffer stays uninitialized.
    # We deterministically replicate the spiral pattern onto the second half."""
    num_dim = c // 2
    r = 14
    dy = [0] * c
    dx = [0] * c
    for base in (0, num_dim):
        for i in range(num_dim):
            if i <= num_dim // 2:
                oy = round(i * (r / num_dim) * cos(pi * i / 16))
                ox = round(i * (r / num_dim) * sin(pi * i / 16))
            else:
                oy = round((r - i * (r / num_dim)) * cos(pi * i / 16))
                ox = round((r - i * (r / num_dim)) * sin(pi * i / 16))
            dy[base + i] = int(oy)
            dx[base + i] = int(ox)
    return dy, dx


def build_static_offsets(cfg):
    offs = []
    for c in cfg["embed_dims"]:
        cp = _round_up(c, LANE)
        dy, dx = gen_offsets(c)
        offs.append((tuple(dy + [0] * (cp - c)), tuple(dx + [0] * (cp - c))))
    return tuple(offs)


# ------------------------------ model forward --------------------------------

def reweight_mlp(p, v):
    # Tiny (B, C)-row MLP: kept in plain XLA (a pallas_call here is pure launch
    # overhead at B=2 rows).
    h = v @ p["w1"] + p["b1"]
    h = 0.5 * h * (1.0 + lax.erf(h * _SQRT1_2))
    return h @ p["w2"] + p["b2"]


def spiral_block(blk, offs, x, skip_lam, true_c):
    b, h, w, cp = x.shape
    attn = blk["attn"]
    # norm_1 (standalone: its output feeds both the spiral shift and the fused tail)
    xn = pallas_layernorm(x, blk["n1"]["g"], blk["n1"]["b"], true_c)
    # SpiralFC per-channel spiral shift (static pad/slice passes, XLA)
    x_shift = spiral_shift(xn, offs[0], offs[1])
    # reweight gate: spatial mean of (x_cross + x_self).  By linearity of the
    # mean w.r.t. the 1x1 convs, compute it from mean(x_shift) / mean(xn) with
    # tiny (B, C) matmuls — x_cross / x_self never touch HBM.
    mn = xn.astype(jnp.float32).mean(axis=(1, 2))            # (B, Cp)
    ms = x_shift.astype(jnp.float32).mean(axis=(1, 2))       # (B, Cp)
    v = (ms @ attn["cross"]["w"].astype(jnp.float32) + attn["cross"]["b"][0]
         + mn @ attn["self"]["w"].astype(jnp.float32) + attn["self"]["b"][0])
    v = v[:, :true_c]
    rw = reweight_mlp(attn["reweight"], v).reshape(b, true_c, 2)
    rw = jax.nn.softmax(rw.transpose(2, 0, 1), axis=0)       # (2, B, C)
    w0 = jnp.zeros((b, 1, cp), jnp.float32).at[:, 0, :true_c].set(rw[0])
    w1 = jnp.zeros((b, 1, cp), jnp.float32).at[:, 0, :true_c].set(rw[1])
    # fused: cross-linear + self-linear + reweight-combine + proj + block residual
    # (proj_drop / drop_path = identity)
    x = pallas_attn_tail(x.reshape(b, h * w, cp),
                         xn.reshape(b, h * w, cp),
                         x_shift.reshape(b, h * w, cp),
                         w0, w1, attn, skip_lam).reshape(b, h, w, cp)
    # fused: norm_2 + MLP (+ inner residual) + block residual
    x = pallas_mlp_block(x, blk["n2"], blk["mlp"], true_c, skip_lam)
    return x


def spiralnet_forward(params, static_offs, img, cfg):
    # img: (B, 3, H, W) NCHW -> internal NHWC bf16
    x = jnp.transpose(img, (0, 2, 3, 1)).astype(jnp.bfloat16)
    ps = cfg["patch_size"]
    x = conv2d_nhwc(x, params["patch_embed"]["w"], params["patch_embed"]["b"],
                    ps, ps, stride=4, pad=2)                 # PatchEmbedOverlapping
    for si, stage in enumerate(params["stages"]):
        c = cfg["embed_dims"][si]
        for blk in stage["blocks"]:
            x = spiral_block(blk, static_offs[si], x, cfg["skip_lam"], c)
        if "down" in stage:
            xs = x[..., :c]                                  # drop pad lanes before im2col
            x = conv2d_nhwc(xs, stage["down"]["w"], stage["down"]["b"],
                            3, 3, stride=2, pad=1)           # Downsample
    b, h, w, cp = x.shape
    c_last = cfg["embed_dims"][-1]
    x = x.reshape(b, h * w, cp)
    x = pallas_layernorm(x, params["norm"]["g"], params["norm"]["b"], c_last)
    xm = x.astype(jnp.float32).mean(axis=1)[:, :c_last]      # global spatial mean
    return xm @ params["head"]["w"] + params["head"]["b"]    # tiny classifier head (XLA)


# ------------------------------- param init ----------------------------------

def trunc_normal(key, shape, std=0.02):
    return std * jax.random.truncated_normal(key, -2.0, 2.0, shape, jnp.float32)


def _padded_linear(key, k, n, kp=None, np_=None):
    """Linear weights stored pre-padded: bf16 weight (kp, np_) with the true
    (k, n) block initialized and the padding zero; fp32 bias (1, np_)."""
    kp = kp if kp is not None else k
    np_ = np_ if np_ is not None else n
    w = jnp.zeros((kp, np_), jnp.bfloat16)
    w = w.at[:k, :n].set(trunc_normal(key, (k, n)).astype(jnp.bfloat16))
    return {"w": w, "b": jnp.zeros((1, np_), jnp.float32)}


def _padded_ln(c, cp):
    return {"g": jnp.zeros((1, cp), jnp.float32).at[0, :c].set(1.0),
            "b": jnp.zeros((1, cp), jnp.float32)}


def init_spiralnet_params(key, cfg):
    keys = iter(jax.random.split(key, 512))
    params = {}
    ps = cfg["patch_size"]
    c0 = cfg["embed_dims"][0]
    params["patch_embed"] = _padded_linear(next(keys), ps * ps * 3, c0,
                                           np_=_round_up(c0, LANE))
    stages = []
    for si, nlayers in enumerate(cfg["layers"]):
        c = cfg["embed_dims"][si]
        cp = _round_up(c, LANE)
        hidden = int(c * cfg["mlp_ratios"][si])
        hp = _round_up(hidden, LANE)
        blocks = []
        for _ in range(nlayers):
            attn = {
                "self": _padded_linear(next(keys), c, c, kp=cp, np_=cp),
                "cross": _padded_linear(next(keys), c, c, kp=cp, np_=cp),   # SpiralFC 1x1
                "proj": _padded_linear(next(keys), c, c, kp=cp, np_=cp),
                "reweight": {"w1": trunc_normal(next(keys), (c, c // 4)),
                             "b1": jnp.zeros((c // 4,), jnp.float32),
                             "w2": trunc_normal(next(keys), (c // 4, 2 * c)),
                             "b2": jnp.zeros((2 * c,), jnp.float32)},
            }
            mlp = {
                "w1": jnp.zeros((cp, hp), jnp.bfloat16).at[:c, :hidden].set(
                    trunc_normal(next(keys), (c, hidden)).astype(jnp.bfloat16)),
                "b1": jnp.zeros((1, hp), jnp.float32),
                "w2": jnp.zeros((hp, cp), jnp.bfloat16).at[:hidden, :c].set(
                    trunc_normal(next(keys), (hidden, c)).astype(jnp.bfloat16)),
                "b2": jnp.zeros((1, cp), jnp.float32),
            }
            blocks.append({"n1": _padded_ln(c, cp), "n2": _padded_ln(c, cp),
                           "attn": attn, "mlp": mlp})
        stage = {"blocks": blocks}
        if si < len(cfg["layers"]) - 1 and cfg["transitions"][si]:
            cn = cfg["embed_dims"][si + 1]
            stage["down"] = _padded_linear(next(keys), 3 * 3 * c, cn,
                                           np_=_round_up(cn, LANE))
        stages.append(stage)
    params["stages"] = stages
    c_last = cfg["embed_dims"][-1]
    params["norm"] = _padded_ln(c_last, _round_up(c_last, LANE))
    params["head"] = {"w": trunc_normal(next(keys), (c_last, cfg["num_classes"])),
                      "b": jnp.zeros((cfg["num_classes"],), jnp.float32)}
    return params


# ---------------------------------- main --------------------------------------

CFG = dict(
    patch_size=7,
    embed_dims=(32, 64),
    layers=(1, 1),
    mlp_ratios=(2, 2),
    transitions=(True,),
    num_classes=10,
    skip_lam=1.0,
)

if __name__ == "__main__":
    key = jax.random.PRNGKey(0)
    pkey, xkey = jax.random.split(key)
    params = init_spiralnet_params(pkey, CFG)
    static_offs = build_static_offsets(CFG)           # compile-time spiral offsets
    img = jax.random.normal(xkey, (2, 3, 32, 32), jnp.float32)   # NCHW, like PyTorch

    fwd = jax.jit(lambda p, x: spiralnet_forward(p, static_offs, x, CFG))
    logits = fwd(params, img)
    jax.block_until_ready(logits)
    assert logits.shape == (2, CFG["num_classes"]), logits.shape
    assert bool(jnp.all(jnp.isfinite(logits)))
    print("KERNEL_OK")
</pallas_src>

<mosaic_0001>
module attributes {stable_mosaic.version = 11 : i64} {
  func.func @_linear_kernel(%arg0: i32, %arg1: memref<128x147xbf16, #tpu.memory_space<vmem>>, %arg2: memref<147x128xbf16, #tpu.memory_space<vmem>>, %arg3: memref<1x128xf32, #tpu.memory_space<vmem>>, %arg4: memref<128x128xbf16, #tpu.memory_space<vmem>>) attributes {dimension_semantics = [#tpu.dimension_semantics<parallel>], iteration_bounds = array<i64: 1>, scalar_prefetch = 0 : i64, scratch_operands = 0 : i64, tpu.core_type = #tpu.core_type<tc>, window_params = [{transform_indices = @transform_0, window_bounds = array<i64: 128, 147>}, {pipeline_mode = #tpu.pipeline_mode<synchronous>, transform_indices = @transform_1, window_bounds = array<i64: 147, 128>}, {pipeline_mode = #tpu.pipeline_mode<synchronous>, transform_indices = @transform_2, window_bounds = array<i64: 1, 128>}, {transform_indices = @transform_3, window_bounds = array<i64: 128, 128>}]} {
    %c0 = arith.constant 0 : index
    %c0_0 = arith.constant 0 : index
    %0 = vector.load %arg1[%c0, %c0_0] : memref<128x147xbf16, #tpu.memory_space<vmem>>, vector<128x147xbf16>
    %c0_1 = arith.constant 0 : index
    %c0_2 = arith.constant 0 : index
    %1 = vector.load %arg2[%c0_1, %c0_2] : memref<147x128xbf16, #tpu.memory_space<vmem>>, vector<147x128xbf16>
    %cst = arith.constant dense<0.000000e+00> : vector<128x128xf32>
    %2 = tpu.matmul %0, %1, %cst {dimension_numbers = #tpu.dot_dimension_numbers<[1], [0], [0], [1], [0, 0, 1, 1], [], []>} : vector<128x147xbf16>, vector<147x128xbf16>, vector<128x128xf32> -> vector<128x128xf32>
    %c0_3 = arith.constant 0 : index
    %c0_4 = arith.constant 0 : index
    %3 = vector.load %arg3[%c0_3, %c0_4] : memref<1x128xf32, #tpu.memory_space<vmem>>, vector<1x128xf32>
    %4 = vector.broadcast %3 : vector<1x128xf32> to vector<128x128xf32>
    %5 = arith.addf %2, %4 : vector<128x128xf32>
    %6 = arith.truncf %5 : vector<128x128xf32> to vector<128x128xbf16>
    %c0_5 = arith.constant 0 : index
    %c0_6 = arith.constant 0 : index
    %7 = vector.load %arg4[%c0_5, %c0_6] : memref<128x128xbf16, #tpu.memory_space<vmem>>, vector<128x128xbf16>
    tpu.vector_store %arg4[%c0_5, %c0_6], %6 {strides = array<i32>} : memref<128x128xbf16, #tpu.memory_space<vmem>>, vector<128x128xbf16>,
    return
  }
  func.func @transform_0(%arg0: i32) -> (i32, i32) {
    %c0_i32 = arith.constant 0 : i32
    %c0_i32_0 = arith.constant 0 : i32
    return %arg0, %c0_i32 : i32, i32
  }
  func.func @transform_1(%arg0: i32) -> (i32, i32) {
    %c0_i32 = arith.constant 0 : i32
    %c0_i32_0 = arith.constant 0 : i32
    %c0_i32_1 = arith.constant 0 : i32
    return %c0_i32, %c0_i32_0 : i32, i32
  }
  func.func @transform_2(%arg0: i32) -> (i32, i32) {
    %c0_i32 = arith.constant 0 : i32
    %c0_i32_0 = arith.constant 0 : i32
    %c0_i32_1 = arith.constant 0 : i32
    return %c0_i32, %c0_i32_0 : i32, i32
  }
  func.func @transform_3(%arg0: i32) -> (i32, i32) {
    %c0_i32 = arith.constant 0 : i32
    %c0_i32_0 = arith.constant 0 : i32
    return %arg0, %c0_i32 : i32, i32
  }
}

module attributes {stable_mosaic.version = 11 : i64} {
  func.func @_ln_kernel(%arg0: i32, %arg1: memref<128x128xbf16, #tpu.memory_space<vmem>>, %arg2: memref<1x128xf32, #tpu.memory_space<vmem>>, %arg3: memref<1x128xf32, #tpu.memory_space<vmem>>, %arg4: memref<128x128xbf16, #tpu.memory_space<vmem>>) attributes {dimension_semantics = [#tpu.dimension_semantics<parallel>], iteration_bounds = array<i64: 1>, scalar_prefetch = 0 : i64, scratch_operands = 0 : i64, tpu.core_type = #tpu.core_type<tc>, window_params = [{transform_indices = @transform_0, window_bounds = array<i64: 128, 128>}, {pipeline_mode = #tpu.pipeline_mode<synchronous>, transform_indices = @transform_1, window_bounds = array<i64: 1, 128>}, {pipeline_mode = #tpu.pipeline_mode<synchronous>, transform_indices = @transform_2, window_bounds = array<i64: 1, 128>}, {transform_indices = @transform_3, window_bounds = array<i64: 128, 128>}]} {
    %c0 = arith.constant 0 : index
    %c0_0 = arith.constant 0 : index
    %0 = vector.load %arg1[%c0, %c0_0] : memref<128x128xbf16, #tpu.memory_space<vmem>>, vector<128x128xbf16>
    %1 = arith.extf %0 : vector<128x128xbf16> to vector<128x128xf32>
    %cst = arith.constant dense<0.000000e+00> : vector<128xf32>
    %2 = vector.multi_reduction <add>, %1, %cst [1] : vector<128x128xf32> to vector<128xf32>
    %3 = vector.shape_cast %2 : vector<128xf32> to vector<128x1xf32>
    %cst_1 = arith.constant 3.125000e-02 : f32
    %4 = vector.broadcast %cst_1 : f32 to vector<128x1xf32>
    %5 = arith.mulf %3, %4 : vector<128x1xf32>
    %6 = arith.mulf %1, %1 : vector<128x128xf32>
    %cst_2 = arith.constant dense<0.000000e+00> : vector<128xf32>
    %7 = vector.multi_reduction <add>, %6, %cst_2 [1] : vector<128x128xf32> to vector<128xf32>
    %8 = vector.shape_cast %7 : vector<128xf32> to vector<128x1xf32>
    %cst_3 = arith.constant 3.125000e-02 : f32
    %9 = vector.broadcast %cst_3 : f32 to vector<128x1xf32>
    %10 = arith.mulf %8, %9 : vector<128x1xf32>
    %11 = arith.mulf %5, %5 : vector<128x1xf32>
    %12 = arith.subf %10, %11 : vector<128x1xf32>
    %13 = vector.broadcast %5 : vector<128x1xf32> to vector<128x128xf32>
    %14 = arith.subf %1, %13 : vector<128x128xf32>
    %cst_4 = arith.constant 9.99999974E-6 : f32
    %15 = vector.broadcast %cst_4 : f32 to vector<128x1xf32>
    %16 = arith.addf %12, %15 : vector<128x1xf32>
    %17 = math.rsqrt %16 : vector<128x1xf32>
    %18 = vector.broadcast %17 : vector<128x1xf32> to vector<128x128xf32>
    %19 = arith.mulf %14, %18 : vector<128x128xf32>
    %c0_5 = arith.constant 0 : index
    %c0_6 = arith.constant 0 : index
    %20 = vector.load %arg2[%c0_5, %c0_6] : memref<1x128xf32, #tpu.memory_space<vmem>>, vector<1x128xf32>
    %21 = vector.broadcast %20 : vector<1x128xf32> to vector<128x128xf32>
    %22 = arith.mulf %19, %21 : vector<128x128xf32>
    %c0_7 = arith.constant 0 : index
    %c0_8 = arith.constant 0 : index
    %23 = vector.load %arg3[%c0_7, %c0_8] : memref<1x128xf32, #tpu.memory_space<vmem>>, vector<1x128xf32>
    %24 = vector.broadcast %23 : vector<1x128xf32> to vector<128x128xf32>
    %25 = arith.addf %22, %24 : vector<128x128xf32>
    %26 = arith.truncf %25 : vector<128x128xf32> to vector<128x128xbf16>
    %c0_9 = arith.constant 0 : index
    %c0_10 = arith.constant 0 : index
    %27 = vector.load %arg4[%c0_9, %c0_10] : memref<128x128xbf16, #tpu.memory_space<vmem>>, vector<128x128xbf16>
    tpu.vector_store %arg4[%c0_9, %c0_10], %26 {strides = array<i32>} : memref<128x128xbf16, #tpu.memory_space<vmem>>, vector<128x128xbf16>,
    return
  }
  func.func @transform_0(%arg0: i32) -> (i32, i32) {
    %c0_i32 = arith.constant 0 : i32
    %c0_i32_0 = arith.constant 0 : i32
    return %arg0, %c0_i32 : i32, i32
  }
  func.func @transform_1(%arg0: i32) -> (i32, i32) {
    %c0_i32 = arith.constant 0 : i32
    %c0_i32_0 = arith.constant 0 : i32
    %c0_i32_1 = arith.constant 0 : i32
    return %c0_i32, %c0_i32_0 : i32, i32
  }
  func.func @transform_2(%arg0: i32) -> (i32, i32) {
    %c0_i32 = arith.constant 0 : i32
    %c0_i32_0 = arith.constant 0 : i32
    %c0_i32_1 = arith.constant 0 : i32
    return %c0_i32, %c0_i32_0 : i32, i32
  }
  func.func @transform_3(%arg0: i32) -> (i32, i32) {
    %c0_i32 = arith.constant 0 : i32
    %c0_i32_0 = arith.constant 0 : i32
    return %arg0, %c0_i32 : i32, i32
  }
}

module attributes {stable_mosaic.version = 11 : i64} {
  func.func @_attn_tail_kernel(%arg0: i32, %arg1: i32, %arg2: memref<1x64x128xbf16, #tpu.memory_space<vmem>>, %arg3: memref<1x64x128xbf16, #tpu.memory_space<vmem>>, %arg4: memref<1x64x128xbf16, #tpu.memory_space<vmem>>, %arg5: memref<1x1x128xf32, #tpu.memory_space<vmem>>, %arg6: memref<1x1x128xf32, #tpu.memory_space<vmem>>, %arg7: memref<128x128xbf16, #tpu.memory_space<vmem>>, %arg8: memref<1x128xf32, #tpu.memory_space<vmem>>, %arg9: memref<128x128xbf16, #tpu.memory_space<vmem>>, %arg10: memref<1x128xf32, #tpu.memory_space<vmem>>, %arg11: memref<128x128xbf16, #tpu.memory_space<vmem>>, %arg12: memref<1x128xf32, #tpu.memory_space<vmem>>, %arg13: memref<1x64x128xbf16, #tpu.memory_space<vmem>>) attributes {dimension_semantics = [#tpu.dimension_semantics<parallel>, #tpu.dimension_semantics<parallel>], iteration_bounds = array<i64: 2, 1>, scalar_prefetch = 0 : i64, scratch_operands = 0 : i64, tpu.core_type = #tpu.core_type<tc>, window_params = [{transform_indices = @transform_0, window_bounds = array<i64: 1, 64, 128>}, {transform_indices = @transform_1, window_bounds = array<i64: 1, 64, 128>}, {transform_indices = @transform_2, window_bounds = array<i64: 1, 64, 128>}, {transform_indices = @transform_3, window_bounds = array<i64: 1, 1, 128>}, {transform_indices = @transform_4, window_bounds = array<i64: 1, 1, 128>}, {pipeline_mode = #tpu.pipeline_mode<synchronous>, transform_indices = @transform_5, window_bounds = array<i64: 128, 128>}, {pipeline_mode = #tpu.pipeline_mode<synchronous>, transform_indices = @transform_6, window_bounds = array<i64: 1, 128>}, {pipeline_mode = #tpu.pipeline_mode<synchronous>, transform_indices = @transform_7, window_bounds = array<i64: 128, 128>}, {pipeline_mode = #tpu.pipeline_mode<synchronous>, transform_indices = @transform_8, window_bounds = array<i64: 1, 128>}, {pipeline_mode = #tpu.pipeline_mode<synchronous>, transform_indices = @transform_9, window_bounds = array<i64: 128, 128>}, {pipeline_mode = #tpu.pipeline_mode<synchronous>, transform_indices = @transform_10, window_bounds = array<i64: 1, 128>}, {transform_indices = @transform_11, window_bounds = array<i64: 1, 64, 128>}]} {
    %c0 = arith.constant 0 : index
    %c0_0 = arith.constant 0 : index
    %c0_1 = arith.constant 0 : index
    %0 = vector.load %arg4[%c0, %c0_0, %c0_1] : memref<1x64x128xbf16, #tpu.memory_space<vmem>>, vector<1x64x128xbf16>
    %1 = vector.shape_cast %0 : vector<1x64x128xbf16> to vector<64x128xbf16>
    %c0_2 = arith.constant 0 : index
    %c0_3 = arith.constant 0 : index
    %2 = vector.load %arg7[%c0_2, %c0_3] : memref<128x128xbf16, #tpu.memory_space<vmem>>, vector<128x128xbf16>
    %cst = arith.constant dense<0.000000e+00> : vector<64x128xf32>
    %3 = tpu.matmul %1, %2, %cst {dimension_numbers = #tpu.dot_dimension_numbers<[1], [0], [0], [1], [0, 0, 1, 1], [], []>} : vector<64x128xbf16>, vector<128x128xbf16>, vector<64x128xf32> -> vector<64x128xf32>
    %c0_4 = arith.constant 0 : index
    %c0_5 = arith.constant 0 : index
    %4 = vector.load %arg8[%c0_4, %c0_5] : memref<1x128xf32, #tpu.memory_space<vmem>>, vector<1x128xf32>
    %5 = vector.broadcast %4 : vector<1x128xf32> to vector<64x128xf32>
    %6 = arith.addf %3, %5 : vector<64x128xf32>
    %c0_6 = arith.constant 0 : index
    %c0_7 = arith.constant 0 : index
    %c0_8 = arith.constant 0 : index
    %7 = vector.load %arg3[%c0_6, %c0_7, %c0_8] : memref<1x64x128xbf16, #tpu.memory_space<vmem>>, vector<1x64x128xbf16>
    %8 = vector.shape_cast %7 : vector<1x64x128xbf16> to vector<64x128xbf16>
    %c0_9 = arith.constant 0 : index
    %c0_10 = arith.constant 0 : index
    %9 = vector.load %arg9[%c0_9, %c0_10] : memref<128x128xbf16, #tpu.memory_space<vmem>>, vector<128x128xbf16>
    %cst_11 = arith.constant dense<0.000000e+00> : vector<64x128xf32>
    %10 = tpu.matmul %8, %9, %cst_11 {dimension_numbers = #tpu.dot_dimension_numbers<[1], [0], [0], [1], [0, 0, 1, 1], [], []>} : vector<64x128xbf16>, vector<128x128xbf16>, vector<64x128xf32> -> vector<64x128xf32>
    %c0_12 = arith.constant 0 : index
    %c0_13 = arith.constant 0 : index
    %11 = vector.load %arg10[%c0_12, %c0_13] : memref<1x128xf32, #tpu.memory_space<vmem>>, vector<1x128xf32>
    %12 = vector.broadcast %11 : vector<1x128xf32> to vector<64x128xf32>
    %13 = arith.addf %10, %12 : vector<64x128xf32>
    %c0_14 = arith.constant 0 : index
    %c0_15 = arith.constant 0 : index
    %c0_16 = arith.constant 0 : index
    %14 = vector.load %arg5[%c0_14, %c0_15, %c0_16] : memref<1x1x128xf32, #tpu.memory_space<vmem>>, vector<1x1x128xf32>
    %15 = vector.shape_cast %14 : vector<1x1x128xf32> to vector<1x128xf32>
    %16 = vector.broadcast %15 : vector<1x128xf32> to vector<64x128xf32>
    %17 = arith.mulf %6, %16 : vector<64x128xf32>
    %c0_17 = arith.constant 0 : index
    %c0_18 = arith.constant 0 : index
    %c0_19 = arith.constant 0 : index
    %18 = vector.load %arg6[%c0_17, %c0_18, %c0_19] : memref<1x1x128xf32, #tpu.memory_space<vmem>>, vector<1x1x128xf32>
    %19 = vector.shape_cast %18 : vector<1x1x128xf32> to vector<1x128xf32>
    %20 = vector.broadcast %19 : vector<1x128xf32> to vector<64x128xf32>
    %21 = arith.mulf %13, %20 : vector<64x128xf32>
    %22 = arith.addf %17, %21 : vector<64x128xf32>
    %23 = arith.truncf %22 : vector<64x128xf32> to vector<64x128xbf16>
    %c0_20 = arith.constant 0 : index
    %c0_21 = arith.constant 0 : index
    %24 = vector.load %arg11[%c0_20, %c0_21] : memref<128x128xbf16, #tpu.memory_space<vmem>>, vector<128x128xbf16>
    %cst_22 = arith.constant dense<0.000000e+00> : vector<64x128xf32>
    %25 = tpu.matmul %23, %24, %cst_22 {dimension_numbers = #tpu.dot_dimension_numbers<[1], [0], [0], [1], [0, 0, 1, 1], [], []>} : vector<64x128xbf16>, vector<128x128xbf16>, vector<64x128xf32> -> vector<64x128xf32>
    %c0_23 = arith.constant 0 : index
    %c0_24 = arith.constant 0 : index
    %26 = vector.load %arg12[%c0_23, %c0_24] : memref<1x128xf32, #tpu.memory_space<vmem>>, vector<1x128xf32>
    %27 = vector.broadcast %26 : vector<1x128xf32> to vector<64x128xf32>
    %28 = arith.addf %25, %27 : vector<64x128xf32>
    %c0_25 = arith.constant 0 : index
    %c0_26 = arith.constant 0 : index
    %c0_27 = arith.constant 0 : index
    %29 = vector.load %arg2[%c0_25, %c0_26, %c0_27] : memref<1x64x128xbf16, #tpu.memory_space<vmem>>, vector<1x64x128xbf16>
    %30 = vector.shape_cast %29 : vector<1x64x128xbf16> to vector<64x128xbf16>
    %31 = arith.extf %30 : vector<64x128xbf16> to vector<64x128xf32>
    %cst_28 = arith.constant 1.000000e+00 : f32
    %32 = vector.broadcast %cst_28 : f32 to vector<64x128xf32>
    %33 = arith.mulf %28, %32 : vector<64x128xf32>
    %34 = arith.addf %31, %33 : vector<64x128xf32>
    %35 = arith.truncf %34 : vector<64x128xf32> to vector<64x128xbf16>
    %c0_29 = arith.constant 0 : index
    %c0_30 = arith.constant 0 : index
    %c0_31 = arith.constant 0 : index
    %36 = vector.load %arg13[%c0_29, %c0_30, %c0_31] : memref<1x64x128xbf16, #tpu.memory_space<vmem>>, vector<1x64x128xbf16>
    %37 = vector.shape_cast %36 : vector<1x64x128xbf16> to vector<64x128xbf16>
    %38 = vector.shape_cast %35 : vector<64x128xbf16> to vector<1x64x128xbf16>
    tpu.vector_store %arg13[%c0_29, %c0_30, %c0_31], %38 {strides = array<i32>} : memref<1x64x128xbf16, #tpu.memory_space<vmem>>, vector<1x64x128xbf16>,
    return
  }
  func.func @transform_0(%arg0: i32, %arg1: i32) -> (i32, i32, i32) {
    %c0_i32 = arith.constant 0 : i32
    %c0_i32_0 = arith.constant 0 : i32
    return %arg0, %arg1, %c0_i32 : i32, i32, i32
  }
  func.func @transform_1(%arg0: i32, %arg1: i32) -> (i32, i32, i32) {
    %c0_i32 = arith.constant 0 : i32
    %c0_i32_0 = arith.constant 0 : i32
    return %arg0, %arg1, %c0_i32 : i32, i32, i32
  }
  func.func @transform_2(%arg0: i32, %arg1: i32) -> (i32, i32, i32) {
    %c0_i32 = arith.constant 0 : i32
    %c0_i32_0 = arith.constant 0 : i32
    return %arg0, %arg1, %c0_i32 : i32, i32, i32
  }
  func.func @transform_3(%arg0: i32, %arg1: i32) -> (i32, i32, i32) {
    %c0_i32 = arith.constant 0 : i32
    %c0_i32_0 = arith.constant 0 : i32
    %c0_i32_1 = arith.constant 0 : i32
    return %arg0, %c0_i32, %c0_i32_0 : i32, i32, i32
  }
  func.func @transform_4(%arg0: i32, %arg1: i32) -> (i32, i32, i32) {
    %c0_i32 = arith.constant 0 : i32
    %c0_i32_0 = arith.constant 0 : i32
    %c0_i32_1 = arith.constant 0 : i32
    return %arg0, %c0_i32, %c0_i32_0 : i32, i32, i32
  }
  func.func @transform_5(%arg0: i32, %arg1: i32) -> (i32, i32) {
    %c0_i32 = arith.constant 0 : i32
    %c0_i32_0 = arith.constant 0 : i32
    %c0_i32_1 = arith.constant 0 : i32
    return %c0_i32, %c0_i32_0 : i32, i32
  }
  func.func @transform_6(%arg0: i32, %arg1: i32) -> (i32, i32) {
    %c0_i32 = arith.constant 0 : i32
    %c0_i32_0 = arith.constant 0 : i32
    %c0_i32_1 = arith.constant 0 : i32
    return %c0_i32, %c0_i32_0 : i32, i32
  }
  func.func @transform_7(%arg0: i32, %arg1: i32) -> (i32, i32) {
    %c0_i32 = arith.constant 0 : i32
    %c0_i32_0 = arith.constant 0 : i32
    %c0_i32_1 = arith.constant 0 : i32
    return %c0_i32, %c0_i32_0 : i32, i32
  }
  func.func @transform_8(%arg0: i32, %arg1: i32) -> (i32, i32) {
    %c0_i32 = arith.constant 0 : i32
    %c0_i32_0 = arith.constant 0 : i32
    %c0_i32_1 = arith.constant 0 : i32
    return %c0_i32, %c0_i32_0 : i32, i32
  }
  func.func @transform_9(%arg0: i32, %arg1: i32) -> (i32, i32) {
    %c0_i32 = arith.constant 0 : i32
    %c0_i32_0 = arith.constant 0 : i32
    %c0_i32_1 = arith.constant 0 : i32
    return %c0_i32, %c0_i32_0 : i32, i32
  }
  func.func @transform_10(%arg0: i32, %arg1: i32) -> (i32, i32) {
    %c0_i32 = arith.constant 0 : i32
    %c0_i32_0 = arith.constant 0 : i32
    %c0_i32_1 = arith.constant 0 : i32
    return %c0_i32, %c0_i32_0 : i32, i32
  }
  func.func @transform_11(%arg0: i32, %arg1: i32) -> (i32, i32, i32) {
    %c0_i32 = arith.constant 0 : i32
    %c0_i32_0 = arith.constant 0 : i32
    return %arg0, %arg1, %c0_i32 : i32, i32, i32
  }
}

module attributes {stable_mosaic.version = 11 : i64} {
  func.func @_mlp_block_kernel(%arg0: i32, %arg1: memref<128x128xbf16, #tpu.memory_space<vmem>>, %arg2: memref<1x128xf32, #tpu.memory_space<vmem>>, %arg3: memref<1x128xf32, #tpu.memory_space<vmem>>, %arg4: memref<128x128xbf16, #tpu.memory_space<vmem>>, %arg5: memref<1x128xf32, #tpu.memory_space<vmem>>, %arg6: memref<128x128xbf16, #tpu.memory_space<vmem>>, %arg7: memref<1x128xf32, #tpu.memory_space<vmem>>, %arg8: memref<128x128xbf16, #tpu.memory_space<vmem>>) attributes {dimension_semantics = [#tpu.dimension_semantics<parallel>], iteration_bounds = array<i64: 1>, scalar_prefetch = 0 : i64, scratch_operands = 0 : i64, tpu.core_type = #tpu.core_type<tc>, window_params = [{transform_indices = @transform_0, window_bounds = array<i64: 128, 128>}, {pipeline_mode = #tpu.pipeline_mode<synchronous>, transform_indices = @transform_1, window_bounds = array<i64: 1, 128>}, {pipeline_mode = #tpu.pipeline_mode<synchronous>, transform_indices = @transform_2, window_bounds = array<i64: 1, 128>}, {pipeline_mode = #tpu.pipeline_mode<synchronous>, transform_indices = @transform_3, window_bounds = array<i64: 128, 128>}, {pipeline_mode = #tpu.pipeline_mode<synchronous>, transform_indices = @transform_4, window_bounds = array<i64: 1, 128>}, {pipeline_mode = #tpu.pipeline_mode<synchronous>, transform_indices = @transform_5, window_bounds = array<i64: 128, 128>}, {pipeline_mode = #tpu.pipeline_mode<synchronous>, transform_indices = @transform_6, window_bounds = array<i64: 1, 128>}, {transform_indices = @transform_7, window_bounds = array<i64: 128, 128>}]} {
    %c0 = arith.constant 0 : index
    %c0_0 = arith.constant 0 : index
    %0 = vector.load %arg1[%c0, %c0_0] : memref<128x128xbf16, #tpu.memory_space<vmem>>, vector<128x128xbf16>
    %1 = arith.extf %0 : vector<128x128xbf16> to vector<128x128xf32>
    %cst = arith.constant dense<0.000000e+00> : vector<128xf32>
    %2 = vector.multi_reduction <add>, %1, %cst [1] : vector<128x128xf32> to vector<128xf32>
    %3 = vector.shape_cast %2 : vector<128xf32> to vector<128x1xf32>
    %cst_1 = arith.constant 3.125000e-02 : f32
    %4 = vector.broadcast %cst_1 : f32 to vector<128x1xf32>
    %5 = arith.mulf %3, %4 : vector<128x1xf32>
    %6 = arith.mulf %1, %1 : vector<128x128xf32>
    %cst_2 = arith.constant dense<0.000000e+00> : vector<128xf32>
    %7 = vector.multi_reduction <add>, %6, %cst_2 [1] : vector<128x128xf32> to vector<128xf32>
    %8 = vector.shape_cast %7 : vector<128xf32> to vector<128x1xf32>
    %cst_3 = arith.constant 3.125000e-02 : f32
    %9 = vector.broadcast %cst_3 : f32 to vector<128x1xf32>
    %10 = arith.mulf %8, %9 : vector<128x1xf32>
    %11 = arith.mulf %5, %5 : vector<128x1xf32>
    %12 = arith.subf %10, %11 : vector<128x1xf32>
    %13 = vector.broadcast %5 : vector<128x1xf32> to vector<128x128xf32>
    %14 = arith.subf %1, %13 : vector<128x128xf32>
    %cst_4 = arith.constant 9.99999974E-6 : f32
    %15 = vector.broadcast %cst_4 : f32 to vector<128x1xf32>
    %16 = arith.addf %12, %15 : vector<128x1xf32>
    %17 = math.rsqrt %16 : vector<128x1xf32>
    %18 = vector.broadcast %17 : vector<128x1xf32> to vector<128x128xf32>
    %19 = arith.mulf %14, %18 : vector<128x128xf32>
    %c0_5 = arith.constant 0 : index
    %c0_6 = arith.constant 0 : index
    %20 = vector.load %arg2[%c0_5, %c0_6] : memref<1x128xf32, #tpu.memory_space<vmem>>, vector<1x128xf32>
    %21 = vector.broadcast %20 : vector<1x128xf32> to vector<128x128xf32>
    %22 = arith.mulf %19, %21 : vector<128x128xf32>
    %c0_7 = arith.constant 0 : index
    %c0_8 = arith.constant 0 : index
    %23 = vector.load %arg3[%c0_7, %c0_8] : memref<1x128xf32, #tpu.memory_space<vmem>>, vector<1x128xf32>
    %24 = vector.broadcast %23 : vector<1x128xf32> to vector<128x128xf32>
    %25 = arith.addf %22, %24 : vector<128x128xf32>
    %26 = arith.truncf %25 : vector<128x128xf32> to vector<128x128xbf16>
    %c0_9 = arith.constant 0 : index
    %c0_10 = arith.constant 0 : index
    %27 = vector.load %arg4[%c0_9, %c0_10] : memref<128x128xbf16, #tpu.memory_space<vmem>>, vector<128x128xbf16>
    %cst_11 = arith.constant dense<0.000000e+00> : vector<128x128xf32>
    %28 = tpu.matmul %26, %27, %cst_11 {dimension_numbers = #tpu.dot_dimension_numbers<[1], [0], [0], [1], [0, 0, 1, 1], [], []>} : vector<128x128xbf16>, vector<128x128xbf16>, vector<128x128xf32> -> vector<128x128xf32>
    %c0_12 = arith.constant 0 : index
    %c0_13 = arith.constant 0 : index
    %29 = vector.load %arg5[%c0_12, %c0_13] : memref<1x128xf32, #tpu.memory_space<vmem>>, vector<1x128xf32>
    %30 = vector.broadcast %29 : vector<1x128xf32> to vector<128x128xf32>
    %31 = arith.addf %28, %30 : vector<128x128xf32>
    %cst_14 = arith.constant 5.000000e-01 : f32
    %32 = vector.broadcast %cst_14 : f32 to vector<128x128xf32>
    %33 = arith.mulf %32, %31 : vector<128x128xf32>
    %cst_15 = arith.constant 0.707106769 : f32
    %34 = vector.broadcast %cst_15 : f32 to vector<128x128xf32>
    %35 = arith.mulf %31, %34 : vector<128x128xf32>
    %36 = math.erf %35 : vector<128x128xf32>
    %cst_16 = arith.constant 1.000000e+00 : f32
    %37 = vector.broadcast %cst_16 : f32 to vector<128x128xf32>
    %38 = arith.addf %37, %36 : vector<128x128xf32>
    %39 = arith.mulf %33, %38 : vector<128x128xf32>
    %40 = arith.truncf %39 : vector<128x128xf32> to vector<128x128xbf16>
    %c0_17 = arith.constant 0 : index
    %c0_18 = arith.constant 0 : index
    %41 = vector.load %arg6[%c0_17, %c0_18] : memref<128x128xbf16, #tpu.memory_space<vmem>>, vector<128x128xbf16>
    %cst_19 = arith.constant dense<0.000000e+00> : vector<128x128xf32>
    %42 = tpu.matmul %40, %41, %cst_19 {dimension_numbers = #tpu.dot_dimension_numbers<[1], [0], [0], [1], [0, 0, 1, 1], [], []>} : vector<128x128xbf16>, vector<128x128xbf16>, vector<128x128xf32> -> vector<128x128xf32>
    %c0_20 = arith.constant 0 : index
    %c0_21 = arith.constant 0 : index
    %43 = vector.load %arg7[%c0_20, %c0_21] : memref<1x128xf32, #tpu.memory_space<vmem>>, vector<1x128xf32>
    %44 = vector.broadcast %43 : vector<1x128xf32> to vector<128x128xf32>
    %45 = arith.addf %42, %44 : vector<128x128xf32>
    %46 = arith.addf %45, %25 : vector<128x128xf32>
    %cst_22 = arith.constant 1.000000e+00 : f32
    %47 = vector.broadcast %cst_22 : f32 to vector<128x128xf32>
    %48 = arith.mulf %46, %47 : vector<128x128xf32>
    %49 = arith.addf %1, %48 : vector<128x128xf32>
    %50 = arith.truncf %49 : vector<128x128xf32> to vector<128x128xbf16>
    %c0_23 = arith.constant 0 : index
    %c0_24 = arith.constant 0 : index
    %51 = vector.load %arg8[%c0_23, %c0_24] : memref<128x128xbf16, #tpu.memory_space<vmem>>, vector<128x128xbf16>
    tpu.vector_store %arg8[%c0_23, %c0_24], %50 {strides = array<i32>} : memref<128x128xbf16, #tpu.memory_space<vmem>>, vector<128x128xbf16>,
    return
  }
  func.func @transform_0(%arg0: i32) -> (i32, i32) {
    %c0_i32 = arith.constant 0 : i32
    %c0_i32_0 = arith.constant 0 : i32
    return %arg0, %c0_i32 : i32, i32
  }
  func.func @transform_1(%arg0: i32) -> (i32, i32) {
    %c0_i32 = arith.constant 0 : i32
    %c0_i32_0 = arith.constant 0 : i32
    %c0_i32_1 = arith.constant 0 : i32
    return %c0_i32, %c0_i32_0 : i32, i32
  }
  func.func @transform_2(%arg0: i32) -> (i32, i32) {
    %c0_i32 = arith.constant 0 : i32
    %c0_i32_0 = arith.constant 0 : i32
    %c0_i32_1 = arith.constant 0 : i32
    return %c0_i32, %c0_i32_0 : i32, i32
  }
  func.func @transform_3(%arg0: i32) -> (i32, i32) {
    %c0_i32 = arith.constant 0 : i32
    %c0_i32_0 = arith.constant 0 : i32
    %c0_i32_1 = arith.constant 0 : i32
    return %c0_i32, %c0_i32_0 : i32, i32
  }
  func.func @transform_4(%arg0: i32) -> (i32, i32) {
    %c0_i32 = arith.constant 0 : i32
    %c0_i32_0 = arith.constant 0 : i32
    %c0_i32_1 = arith.constant 0 : i32
    return %c0_i32, %c0_i32_0 : i32, i32
  }
  func.func @transform_5(%arg0: i32) -> (i32, i32) {
    %c0_i32 = arith.constant 0 : i32
    %c0_i32_0 = arith.constant 0 : i32
    %c0_i32_1 = arith.constant 0 : i32
    return %c0_i32, %c0_i32_0 : i32, i32
  }
  func.func @transform_6(%arg0: i32) -> (i32, i32) {
    %c0_i32 = arith.constant 0 : i32
    %c0_i32_0 = arith.constant 0 : i32
    %c0_i32_1 = arith.constant 0 : i32
    return %c0_i32, %c0_i32_0 : i32, i32
  }
  func.func @transform_7(%arg0: i32) -> (i32, i32) {
    %c0_i32 = arith.constant 0 : i32
    %c0_i32_0 = arith.constant 0 : i32
    return %arg0, %c0_i32 : i32, i32
  }
}

module attributes {stable_mosaic.version = 11 : i64} {
  func.func @_linear_kernel(%arg0: i32, %arg1: memref<32x288xbf16, #tpu.memory_space<vmem>>, %arg2: memref<288x128xbf16, #tpu.memory_space<vmem>>, %arg3: memref<1x128xf32, #tpu.memory_space<vmem>>, %arg4: memref<32x128xbf16, #tpu.memory_space<vmem>>) attributes {dimension_semantics = [#tpu.dimension_semantics<parallel>], iteration_bounds = array<i64: 1>, scalar_prefetch = 0 : i64, scratch_operands = 0 : i64, tpu.core_type = #tpu.core_type<tc>, window_params = [{transform_indices = @transform_0, window_bounds = array<i64: 32, 288>}, {pipeline_mode = #tpu.pipeline_mode<synchronous>, transform_indices = @transform_1, window_bounds = array<i64: 288, 128>}, {pipeline_mode = #tpu.pipeline_mode<synchronous>, transform_indices = @transform_2, window_bounds = array<i64: 1, 128>}, {transform_indices = @transform_3, window_bounds = array<i64: 32, 128>}]} {
    %c0 = arith.constant 0 : index
    %c0_0 = arith.constant 0 : index
    %0 = vector.load %arg1[%c0, %c0_0] : memref<32x288xbf16, #tpu.memory_space<vmem>>, vector<32x288xbf16>
    %c0_1 = arith.constant 0 : index
    %c0_2 = arith.constant 0 : index
    %1 = vector.load %arg2[%c0_1, %c0_2] : memref<288x128xbf16, #tpu.memory_space<vmem>>, vector<288x128xbf16>
    %cst = arith.constant dense<0.000000e+00> : vector<32x128xf32>
    %2 = tpu.matmul %0, %1, %cst {dimension_numbers = #tpu.dot_dimension_numbers<[1], [0], [0], [1], [0, 0, 1, 1], [], []>} : vector<32x288xbf16>, vector<288x128xbf16>, vector<32x128xf32> -> vector<32x128xf32>
    %c0_3 = arith.constant 0 : index
    %c0_4 = arith.constant 0 : index
    %3 = vector.load %arg3[%c0_3, %c0_4] : memref<1x128xf32, #tpu.memory_space<vmem>>, vector<1x128xf32>
    %4 = vector.broadcast %3 : vector<1x128xf32> to vector<32x128xf32>
    %5 = arith.addf %2, %4 : vector<32x128xf32>
    %6 = arith.truncf %5 : vector<32x128xf32> to vector<32x128xbf16>
    %c0_5 = arith.constant 0 : index
    %c0_6 = arith.constant 0 : index
    %7 = vector.load %arg4[%c0_5, %c0_6] : memref<32x128xbf16, #tpu.memory_space<vmem>>, vector<32x128xbf16>
    tpu.vector_store %arg4[%c0_5, %c0_6], %6 {strides = array<i32>} : memref<32x128xbf16, #tpu.memory_space<vmem>>, vector<32x128xbf16>,
    return
  }
  func.func @transform_0(%arg0: i32) -> (i32, i32) {
    %c0_i32 = arith.constant 0 : i32
    %c0_i32_0 = arith.constant 0 : i32
    return %arg0, %c0_i32 : i32, i32
  }
  func.func @transform_1(%arg0: i32) -> (i32, i32) {
    %c0_i32 = arith.constant 0 : i32
    %c0_i32_0 = arith.constant 0 : i32
    %c0_i32_1 = arith.constant 0 : i32
    return %c0_i32, %c0_i32_0 : i32, i32
  }
  func.func @transform_2(%arg0: i32) -> (i32, i32) {
    %c0_i32 = arith.constant 0 : i32
    %c0_i32_0 = arith.constant 0 : i32
    %c0_i32_1 = arith.constant 0 : i32
    return %c0_i32, %c0_i32_0 : i32, i32
  }
  func.func @transform_3(%arg0: i32) -> (i32, i32) {
    %c0_i32 = arith.constant 0 : i32
    %c0_i32_0 = arith.constant 0 : i32
    return %arg0, %c0_i32 : i32, i32
  }
}

module attributes {stable_mosaic.version = 11 : i64} {
  func.func @_ln_kernel(%arg0: i32, %arg1: memref<32x128xbf16, #tpu.memory_space<vmem>>, %arg2: memref<1x128xf32, #tpu.memory_space<vmem>>, %arg3: memref<1x128xf32, #tpu.memory_space<vmem>>, %arg4: memref<32x128xbf16, #tpu.memory_space<vmem>>) attributes {dimension_semantics = [#tpu.dimension_semantics<parallel>], iteration_bounds = array<i64: 1>, scalar_prefetch = 0 : i64, scratch_operands = 0 : i64, tpu.core_type = #tpu.core_type<tc>, window_params = [{transform_indices = @transform_0, window_bounds = array<i64: 32, 128>}, {pipeline_mode = #tpu.pipeline_mode<synchronous>, transform_indices = @transform_1, window_bounds = array<i64: 1, 128>}, {pipeline_mode = #tpu.pipeline_mode<synchronous>, transform_indices = @transform_2, window_bounds = array<i64: 1, 128>}, {transform_indices = @transform_3, window_bounds = array<i64: 32, 128>}]} {
    %c0 = arith.constant 0 : index
    %c0_0 = arith.constant 0 : index
    %0 = vector.load %arg1[%c0, %c0_0] : memref<32x128xbf16, #tpu.memory_space<vmem>>, vector<32x128xbf16>
    %1 = arith.extf %0 : vector<32x128xbf16> to vector<32x128xf32>
    %cst = arith.constant dense<0.000000e+00> : vector<32xf32>
    %2 = vector.multi_reduction <add>, %1, %cst [1] : vector<32x128xf32> to vector<32xf32>
    %3 = vector.shape_cast %2 : vector<32xf32> to vector<32x1xf32>
    %cst_1 = arith.constant 1.562500e-02 : f32
    %4 = vector.broadcast %cst_1 : f32 to vector<32x1xf32>
    %5 = arith.mulf %3, %4 : vector<32x1xf32>
    %6 = arith.mulf %1, %1 : vector<32x128xf32>
    %cst_2 = arith.constant dense<0.000000e+00> : vector<32xf32>
    %7 = vector.multi_reduction <add>, %6, %cst_2 [1] : vector<32x128xf32> to vector<32xf32>
    %8 = vector.shape_cast %7 : vector<32xf32> to vector<32x1xf32>
    %cst_3 = arith.constant 1.562500e-02 : f32
    %9 = vector.broadcast %cst_3 : f32 to vector<32x1xf32>
    %10 = arith.mulf %8, %9 : vector<32x1xf32>
    %11 = arith.mulf %5, %5 : vector<32x1xf32>
    %12 = arith.subf %10, %11 : vector<32x1xf32>
    %13 = vector.broadcast %5 : vector<32x1xf32> to vector<32x128xf32>
    %14 = arith.subf %1, %13 : vector<32x128xf32>
    %cst_4 = arith.constant 9.99999974E-6 : f32
    %15 = vector.broadcast %cst_4 : f32 to vector<32x1xf32>
    %16 = arith.addf %12, %15 : vector<32x1xf32>
    %17 = math.rsqrt %16 : vector<32x1xf32>
    %18 = vector.broadcast %17 : vector<32x1xf32> to vector<32x128xf32>
    %19 = arith.mulf %14, %18 : vector<32x128xf32>
    %c0_5 = arith.constant 0 : index
    %c0_6 = arith.constant 0 : index
    %20 = vector.load %arg2[%c0_5, %c0_6] : memref<1x128xf32, #tpu.memory_space<vmem>>, vector<1x128xf32>
    %21 = vector.broadcast %20 : vector<1x128xf32> to vector<32x128xf32>
    %22 = arith.mulf %19, %21 : vector<32x128xf32>
    %c0_7 = arith.constant 0 : index
    %c0_8 = arith.constant 0 : index
    %23 = vector.load %arg3[%c0_7, %c0_8] : memref<1x128xf32, #tpu.memory_space<vmem>>, vector<1x128xf32>
    %24 = vector.broadcast %23 : vector<1x128xf32> to vector<32x128xf32>
    %25 = arith.addf %22, %24 : vector<32x128xf32>
    %26 = arith.truncf %25 : vector<32x128xf32> to vector<32x128xbf16>
    %c0_9 = arith.constant 0 : index
    %c0_10 = arith.constant 0 : index
    %27 = vector.load %arg4[%c0_9, %c0_10] : memref<32x128xbf16, #tpu.memory_space<vmem>>, vector<32x128xbf16>
    tpu.vector_store %arg4[%c0_9, %c0_10], %26 {strides = array<i32>} : memref<32x128xbf16, #tpu.memory_space<vmem>>, vector<32x128xbf16>,
    return
  }
  func.func @transform_0(%arg0: i32) -> (i32, i32) {
    %c0_i32 = arith.constant 0 : i32
    %c0_i32_0 = arith.constant 0 : i32
    return %arg0, %c0_i32 : i32, i32
  }
  func.func @transform_1(%arg0: i32) -> (i32, i32) {
    %c0_i32 = arith.constant 0 : i32
    %c0_i32_0 = arith.constant 0 : i32
    %c0_i32_1 = arith.constant 0 : i32
    return %c0_i32, %c0_i32_0 : i32, i32
  }
  func.func @transform_2(%arg0: i32) -> (i32, i32) {
    %c0_i32 = arith.constant 0 : i32
    %c0_i32_0 = arith.constant 0 : i32
    %c0_i32_1 = arith.constant 0 : i32
    return %c0_i32, %c0_i32_0 : i32, i32
  }
  func.func @transform_3(%arg0: i32) -> (i32, i32) {
    %c0_i32 = arith.constant 0 : i32
    %c0_i32_0 = arith.constant 0 : i32
    return %arg0, %c0_i32 : i32, i32
  }
}

module attributes {stable_mosaic.version = 11 : i64} {
  func.func @_mlp_block_kernel(%arg0: i32, %arg1: memref<32x128xbf16, #tpu.memory_space<vmem>>, %arg2: memref<1x128xf32, #tpu.memory_space<vmem>>, %arg3: memref<1x128xf32, #tpu.memory_space<vmem>>, %arg4: memref<128x128xbf16, #tpu.memory_space<vmem>>, %arg5: memref<1x128xf32, #tpu.memory_space<vmem>>, %arg6: memref<128x128xbf16, #tpu.memory_space<vmem>>, %arg7: memref<1x128xf32, #tpu.memory_space<vmem>>, %arg8: memref<32x128xbf16, #tpu.memory_space<vmem>>) attributes {dimension_semantics = [#tpu.dimension_semantics<parallel>], iteration_bounds = array<i64: 1>, scalar_prefetch = 0 : i64, scratch_operands = 0 : i64, tpu.core_type = #tpu.core_type<tc>, window_params = [{transform_indices = @transform_0, window_bounds = array<i64: 32, 128>}, {pipeline_mode = #tpu.pipeline_mode<synchronous>, transform_indices = @transform_1, window_bounds = array<i64: 1, 128>}, {pipeline_mode = #tpu.pipeline_mode<synchronous>, transform_indices = @transform_2, window_bounds = array<i64: 1, 128>}, {pipeline_mode = #tpu.pipeline_mode<synchronous>, transform_indices = @transform_3, window_bounds = array<i64: 128, 128>}, {pipeline_mode = #tpu.pipeline_mode<synchronous>, transform_indices = @transform_4, window_bounds = array<i64: 1, 128>}, {pipeline_mode = #tpu.pipeline_mode<synchronous>, transform_indices = @transform_5, window_bounds = array<i64: 128, 128>}, {pipeline_mode = #tpu.pipeline_mode<synchronous>, transform_indices = @transform_6, window_bounds = array<i64: 1, 128>}, {transform_indices = @transform_7, window_bounds = array<i64: 32, 128>}]} {
    %c0 = arith.constant 0 : index
    %c0_0 = arith.constant 0 : index
    %0 = vector.load %arg1[%c0, %c0_0] : memref<32x128xbf16, #tpu.memory_space<vmem>>, vector<32x128xbf16>
    %1 = arith.extf %0 : vector<32x128xbf16> to vector<32x128xf32>
    %cst = arith.constant dense<0.000000e+00> : vector<32xf32>
    %2 = vector.multi_reduction <add>, %1, %cst [1] : vector<32x128xf32> to vector<32xf32>
    %3 = vector.shape_cast %2 : vector<32xf32> to vector<32x1xf32>
    %cst_1 = arith.constant 1.562500e-02 : f32
    %4 = vector.broadcast %cst_1 : f32 to vector<32x1xf32>
    %5 = arith.mulf %3, %4 : vector<32x1xf32>
    %6 = arith.mulf %1, %1 : vector<32x128xf32>
    %cst_2 = arith.constant dense<0.000000e+00> : vector<32xf32>
    %7 = vector.multi_reduction <add>, %6, %cst_2 [1] : vector<32x128xf32> to vector<32xf32>
    %8 = vector.shape_cast %7 : vector<32xf32> to vector<32x1xf32>
    %cst_3 = arith.constant 1.562500e-02 : f32
    %9 = vector.broadcast %cst_3 : f32 to vector<32x1xf32>
    %10 = arith.mulf %8, %9 : vector<32x1xf32>
    %11 = arith.mulf %5, %5 : vector<32x1xf32>
    %12 = arith.subf %10, %11 : vector<32x1xf32>
    %13 = vector.broadcast %5 : vector<32x1xf32> to vector<32x128xf32>
    %14 = arith.subf %1, %13 : vector<32x128xf32>
    %cst_4 = arith.constant 9.99999974E-6 : f32
    %15 = vector.broadcast %cst_4 : f32 to vector<32x1xf32>
    %16 = arith.addf %12, %15 : vector<32x1xf32>
    %17 = math.rsqrt %16 : vector<32x1xf32>
    %18 = vector.broadcast %17 : vector<32x1xf32> to vector<32x128xf32>
    %19 = arith.mulf %14, %18 : vector<32x128xf32>
    %c0_5 = arith.constant 0 : index
    %c0_6 = arith.constant 0 : index
    %20 = vector.load %arg2[%c0_5, %c0_6] : memref<1x128xf32, #tpu.memory_space<vmem>>, vector<1x128xf32>
    %21 = vector.broadcast %20 : vector<1x128xf32> to vector<32x128xf32>
    %22 = arith.mulf %19, %21 : vector<32x128xf32>
    %c0_7 = arith.constant 0 : index
    %c0_8 = arith.constant 0 : index
    %23 = vector.load %arg3[%c0_7, %c0_8] : memref<1x128xf32, #tpu.memory_space<vmem>>, vector<1x128xf32>
    %24 = vector.broadcast %23 : vector<1x128xf32> to vector<32x128xf32>
    %25 = arith.addf %22, %24 : vector<32x128xf32>
    %26 = arith.truncf %25 : vector<32x128xf32> to vector<32x128xbf16>
    %c0_9 = arith.constant 0 : index
    %c0_10 = arith.constant 0 : index
    %27 = vector.load %arg4[%c0_9, %c0_10] : memref<128x128xbf16, #tpu.memory_space<vmem>>, vector<128x128xbf16>
    %cst_11 = arith.constant dense<0.000000e+00> : vector<32x128xf32>
    %28 = tpu.matmul %26, %27, %cst_11 {dimension_numbers = #tpu.dot_dimension_numbers<[1], [0], [0], [1], [0, 0, 1, 1], [], []>} : vector<32x128xbf16>, vector<128x128xbf16>, vector<32x128xf32> -> vector<32x128xf32>
    %c0_12 = arith.constant 0 : index
    %c0_13 = arith.constant 0 : index
    %29 = vector.load %arg5[%c0_12, %c0_13] : memref<1x128xf32, #tpu.memory_space<vmem>>, vector<1x128xf32>
    %30 = vector.broadcast %29 : vector<1x128xf32> to vector<32x128xf32>
    %31 = arith.addf %28, %30 : vector<32x128xf32>
    %cst_14 = arith.constant 5.000000e-01 : f32
    %32 = vector.broadcast %cst_14 : f32 to vector<32x128xf32>
    %33 = arith.mulf %32, %31 : vector<32x128xf32>
    %cst_15 = arith.constant 0.707106769 : f32
    %34 = vector.broadcast %cst_15 : f32 to vector<32x128xf32>
    %35 = arith.mulf %31, %34 : vector<32x128xf32>
    %36 = math.erf %35 : vector<32x128xf32>
    %cst_16 = arith.constant 1.000000e+00 : f32
    %37 = vector.broadcast %cst_16 : f32 to vector<32x128xf32>
    %38 = arith.addf %37, %36 : vector<32x128xf32>
    %39 = arith.mulf %33, %38 : vector<32x128xf32>
    %40 = arith.truncf %39 : vector<32x128xf32> to vector<32x128xbf16>
    %c0_17 = arith.constant 0 : index
    %c0_18 = arith.constant 0 : index
    %41 = vector.load %arg6[%c0_17, %c0_18] : memref<128x128xbf16, #tpu.memory_space<vmem>>, vector<128x128xbf16>
    %cst_19 = arith.constant dense<0.000000e+00> : vector<32x128xf32>
    %42 = tpu.matmul %40, %41, %cst_19 {dimension_numbers = #tpu.dot_dimension_numbers<[1], [0], [0], [1], [0, 0, 1, 1], [], []>} : vector<32x128xbf16>, vector<128x128xbf16>, vector<32x128xf32> -> vector<32x128xf32>
    %c0_20 = arith.constant 0 : index
    %c0_21 = arith.constant 0 : index
    %43 = vector.load %arg7[%c0_20, %c0_21] : memref<1x128xf32, #tpu.memory_space<vmem>>, vector<1x128xf32>
    %44 = vector.broadcast %43 : vector<1x128xf32> to vector<32x128xf32>
    %45 = arith.addf %42, %44 : vector<32x128xf32>
    %46 = arith.addf %45, %25 : vector<32x128xf32>
    %cst_22 = arith.constant 1.000000e+00 : f32
    %47 = vector.broadcast %cst_22 : f32 to vector<32x128xf32>
    %48 = arith.mulf %46, %47 : vector<32x128xf32>
    %49 = arith.addf %1, %48 : vector<32x128xf32>
    %50 = arith.truncf %49 : vector<32x128xf32> to vector<32x128xbf16>
    %c0_23 = arith.constant 0 : index
    %c0_24 = arith.constant 0 : index
    %51 = vector.load %arg8[%c0_23, %c0_24] : memref<32x128xbf16, #tpu.memory_space<vmem>>, vector<32x128xbf16>
    tpu.vector_store %arg8[%c0_23, %c0_24], %50 {strides = array<i32>} : memref<32x128xbf16, #tpu.memory_space<vmem>>, vector<32x128xbf16>,
    return
  }
  func.func @transform_0(%arg0: i32) -> (i32, i32) {
    %c0_i32 = arith.constant 0 : i32
    %c0_i32_0 = arith.constant 0 : i32
    return %arg0, %c0_i32 : i32, i32
  }
  func.func @transform_1(%arg0: i32) -> (i32, i32) {
    %c0_i32 = arith.constant 0 : i32
    %c0_i32_0 = arith.constant 0 : i32
    %c0_i32_1 = arith.constant 0 : i32
    return %c0_i32, %c0_i32_0 : i32, i32
  }
  func.func @transform_2(%arg0: i32) -> (i32, i32) {
    %c0_i32 = arith.constant 0 : i32
    %c0_i32_0 = arith.constant 0 : i32
    %c0_i32_1 = arith.constant 0 : i32
    return %c0_i32, %c0_i32_0 : i32, i32
  }
  func.func @transform_3(%arg0: i32) -> (i32, i32) {
    %c0_i32 = arith.constant 0 : i32
    %c0_i32_0 = arith.constant 0 : i32
    %c0_i32_1 = arith.constant 0 : i32
    return %c0_i32, %c0_i32_0 : i32, i32
  }
  func.func @transform_4(%arg0: i32) -> (i32, i32) {
    %c0_i32 = arith.constant 0 : i32
    %c0_i32_0 = arith.constant 0 : i32
    %c0_i32_1 = arith.constant 0 : i32
    return %c0_i32, %c0_i32_0 : i32, i32
  }
  func.func @transform_5(%arg0: i32) -> (i32, i32) {
    %c0_i32 = arith.constant 0 : i32
    %c0_i32_0 = arith.constant 0 : i32
    %c0_i32_1 = arith.constant 0 : i32
    return %c0_i32, %c0_i32_0 : i32, i32
  }
  func.func @transform_6(%arg0: i32) -> (i32, i32) {
    %c0_i32 = arith.constant 0 : i32
    %c0_i32_0 = arith.constant 0 : i32
    %c0_i32_1 = arith.constant 0 : i32
    return %c0_i32, %c0_i32_0 : i32, i32
  }
  func.func @transform_7(%arg0: i32) -> (i32, i32) {
    %c0_i32 = arith.constant 0 : i32
    %c0_i32_0 = arith.constant 0 : i32
    return %arg0, %c0_i32 : i32, i32
  }
}

module attributes {stable_mosaic.version = 11 : i64} {
  func.func @_attn_tail_kernel(%arg0: i32, %arg1: i32, %arg2: memref<1x16x128xbf16, #tpu.memory_space<vmem>>, %arg3: memref<1x16x128xbf16, #tpu.memory_space<vmem>>, %arg4: memref<1x16x128xbf16, #tpu.memory_space<vmem>>, %arg5: memref<1x1x128xf32, #tpu.memory_space<vmem>>, %arg6: memref<1x1x128xf32, #tpu.memory_space<vmem>>, %arg7: memref<128x128xbf16, #tpu.memory_space<vmem>>, %arg8: memref<1x128xf32, #tpu.memory_space<vmem>>, %arg9: memref<128x128xbf16, #tpu.memory_space<vmem>>, %arg10: memref<1x128xf32, #tpu.memory_space<vmem>>, %arg11: memref<128x128xbf16, #tpu.memory_space<vmem>>, %arg12: memref<1x128xf32, #tpu.memory_space<vmem>>, %arg13: memref<1x16x128xbf16, #tpu.memory_space<vmem>>) attributes {dimension_semantics = [#tpu.dimension_semantics<parallel>, #tpu.dimension_semantics<parallel>], iteration_bounds = array<i64: 2, 1>, scalar_prefetch = 0 : i64, scratch_operands = 0 : i64, tpu.core_type = #tpu.core_type<tc>, window_params = [{transform_indices = @transform_0, window_bounds = array<i64: 1, 16, 128>}, {transform_indices = @transform_1, window_bounds = array<i64: 1, 16, 128>}, {transform_indices = @transform_2, window_bounds = array<i64: 1, 16, 128>}, {transform_indices = @transform_3, window_bounds = array<i64: 1, 1, 128>}, {transform_indices = @transform_4, window_bounds = array<i64: 1, 1, 128>}, {pipeline_mode = #tpu.pipeline_mode<synchronous>, transform_indices = @transform_5, window_bounds = array<i64: 128, 128>}, {pipeline_mode = #tpu.pipeline_mode<synchronous>, transform_indices = @transform_6, window_bounds = array<i64: 1, 128>}, {pipeline_mode = #tpu.pipeline_mode<synchronous>, transform_indices = @transform_7, window_bounds = array<i64: 128, 128>}, {pipeline_mode = #tpu.pipeline_mode<synchronous>, transform_indices = @transform_8, window_bounds = array<i64: 1, 128>}, {pipeline_mode = #tpu.pipeline_mode<synchronous>, transform_indices = @transform_9, window_bounds = array<i64: 128, 128>}, {pipeline_mode = #tpu.pipeline_mode<synchronous>, transform_indices = @transform_10, window_bounds = array<i64: 1, 128>}, {transform_indices = @transform_11, window_bounds = array<i64: 1, 16, 128>}]} {
    %c0 = arith.constant 0 : index
    %c0_0 = arith.constant 0 : index
    %c0_1 = arith.constant 0 : index
    %0 = vector.load %arg4[%c0, %c0_0, %c0_1] : memref<1x16x128xbf16, #tpu.memory_space<vmem>>, vector<1x16x128xbf16>
    %1 = vector.shape_cast %0 : vector<1x16x128xbf16> to vector<16x128xbf16>
    %c0_2 = arith.constant 0 : index
    %c0_3 = arith.constant 0 : index
    %2 = vector.load %arg7[%c0_2, %c0_3] : memref<128x128xbf16, #tpu.memory_space<vmem>>, vector<128x128xbf16>
    %cst = arith.constant dense<0.000000e+00> : vector<16x128xf32>
    %3 = tpu.matmul %1, %2, %cst {dimension_numbers = #tpu.dot_dimension_numbers<[1], [0], [0], [1], [0, 0, 1, 1], [], []>} : vector<16x128xbf16>, vector<128x128xbf16>, vector<16x128xf32> -> vector<16x128xf32>
    %c0_4 = arith.constant 0 : index
    %c0_5 = arith.constant 0 : index
    %4 = vector.load %arg8[%c0_4, %c0_5] : memref<1x128xf32, #tpu.memory_space<vmem>>, vector<1x128xf32>
    %5 = vector.broadcast %4 : vector<1x128xf32> to vector<16x128xf32>
    %6 = arith.addf %3, %5 : vector<16x128xf32>
    %c0_6 = arith.constant 0 : index
    %c0_7 = arith.constant 0 : index
    %c0_8 = arith.constant 0 : index
    %7 = vector.load %arg3[%c0_6, %c0_7, %c0_8] : memref<1x16x128xbf16, #tpu.memory_space<vmem>>, vector<1x16x128xbf16>
    %8 = vector.shape_cast %7 : vector<1x16x128xbf16> to vector<16x128xbf16>
    %c0_9 = arith.constant 0 : index
    %c0_10 = arith.constant 0 : index
    %9 = vector.load %arg9[%c0_9, %c0_10] : memref<128x128xbf16, #tpu.memory_space<vmem>>, vector<128x128xbf16>
    %cst_11 = arith.constant dense<0.000000e+00> : vector<16x128xf32>
    %10 = tpu.matmul %8, %9, %cst_11 {dimension_numbers = #tpu.dot_dimension_numbers<[1], [0], [0], [1], [0, 0, 1, 1], [], []>} : vector<16x128xbf16>, vector<128x128xbf16>, vector<16x128xf32> -> vector<16x128xf32>
    %c0_12 = arith.constant 0 : index
    %c0_13 = arith.constant 0 : index
    %11 = vector.load %arg10[%c0_12, %c0_13] : memref<1x128xf32, #tpu.memory_space<vmem>>, vector<1x128xf32>
    %12 = vector.broadcast %11 : vector<1x128xf32> to vector<16x128xf32>
    %13 = arith.addf %10, %12 : vector<16x128xf32>
    %c0_14 = arith.constant 0 : index
    %c0_15 = arith.constant 0 : index
    %c0_16 = arith.constant 0 : index
    %14 = vector.load %arg5[%c0_14, %c0_15, %c0_16] : memref<1x1x128xf32, #tpu.memory_space<vmem>>, vector<1x1x128xf32>
    %15 = vector.shape_cast %14 : vector<1x1x128xf32> to vector<1x128xf32>
    %16 = vector.broadcast %15 : vector<1x128xf32> to vector<16x128xf32>
    %17 = arith.mulf %6, %16 : vector<16x128xf32>
    %c0_17 = arith.constant 0 : index
    %c0_18 = arith.constant 0 : index
    %c0_19 = arith.constant 0 : index
    %18 = vector.load %arg6[%c0_17, %c0_18, %c0_19] : memref<1x1x128xf32, #tpu.memory_space<vmem>>, vector<1x1x128xf32>
    %19 = vector.shape_cast %18 : vector<1x1x128xf32> to vector<1x128xf32>
    %20 = vector.broadcast %19 : vector<1x128xf32> to vector<16x128xf32>
    %21 = arith.mulf %13, %20 : vector<16x128xf32>
    %22 = arith.addf %17, %21 : vector<16x128xf32>
    %23 = arith.truncf %22 : vector<16x128xf32> to vector<16x128xbf16>
    %c0_20 = arith.constant 0 : index
    %c0_21 = arith.constant 0 : index
    %24 = vector.load %arg11[%c0_20, %c0_21] : memref<128x128xbf16, #tpu.memory_space<vmem>>, vector<128x128xbf16>
    %cst_22 = arith.constant dense<0.000000e+00> : vector<16x128xf32>
    %25 = tpu.matmul %23, %24, %cst_22 {dimension_numbers = #tpu.dot_dimension_numbers<[1], [0], [0], [1], [0, 0, 1, 1], [], []>} : vector<16x128xbf16>, vector<128x128xbf16>, vector<16x128xf32> -> vector<16x128xf32>
    %c0_23 = arith.constant 0 : index
    %c0_24 = arith.constant 0 : index
    %26 = vector.load %arg12[%c0_23, %c0_24] : memref<1x128xf32, #tpu.memory_space<vmem>>, vector<1x128xf32>
    %27 = vector.broadcast %26 : vector<1x128xf32> to vector<16x128xf32>
    %28 = arith.addf %25, %27 : vector<16x128xf32>
    %c0_25 = arith.constant 0 : index
    %c0_26 = arith.constant 0 : index
    %c0_27 = arith.constant 0 : index
    %29 = vector.load %arg2[%c0_25, %c0_26, %c0_27] : memref<1x16x128xbf16, #tpu.memory_space<vmem>>, vector<1x16x128xbf16>
    %30 = vector.shape_cast %29 : vector<1x16x128xbf16> to vector<16x128xbf16>
    %31 = arith.extf %30 : vector<16x128xbf16> to vector<16x128xf32>
    %cst_28 = arith.constant 1.000000e+00 : f32
    %32 = vector.broadcast %cst_28 : f32 to vector<16x128xf32>
    %33 = arith.mulf %28, %32 : vector<16x128xf32>
    %34 = arith.addf %31, %33 : vector<16x128xf32>
    %35 = arith.truncf %34 : vector<16x128xf32> to vector<16x128xbf16>
    %c0_29 = arith.constant 0 : index
    %c0_30 = arith.constant 0 : index
    %c0_31 = arith.constant 0 : index
    %36 = vector.load %arg13[%c0_29, %c0_30, %c0_31] : memref<1x16x128xbf16, #tpu.memory_space<vmem>>, vector<1x16x128xbf16>
    %37 = vector.shape_cast %36 : vector<1x16x128xbf16> to vector<16x128xbf16>
    %38 = vector.shape_cast %35 : vector<16x128xbf16> to vector<1x16x128xbf16>
    tpu.vector_store %arg13[%c0_29, %c0_30, %c0_31], %38 {strides = array<i32>} : memref<1x16x128xbf16, #tpu.memory_space<vmem>>, vector<1x16x128xbf16>,
    return
  }
  func.func @transform_0(%arg0: i32, %arg1: i32) -> (i32, i32, i32) {
    %c0_i32 = arith.constant 0 : i32
    %c0_i32_0 = arith.constant 0 : i32
    return %arg0, %arg1, %c0_i32 : i32, i32, i32
  }
  func.func @transform_1(%arg0: i32, %arg1: i32) -> (i32, i32, i32) {
    %c0_i32 = arith.constant 0 : i32
    %c0_i32_0 = arith.constant 0 : i32
    return %arg0, %arg1, %c0_i32 : i32, i32, i32
  }
  func.func @transform_2(%arg0: i32, %arg1: i32) -> (i32, i32, i32) {
    %c0_i32 = arith.constant 0 : i32
    %c0_i32_0 = arith.constant 0 : i32
    return %arg0, %arg1, %c0_i32 : i32, i32, i32
  }
  func.func @transform_3(%arg0: i32, %arg1: i32) -> (i32, i32, i32) {
    %c0_i32 = arith.constant 0 : i32
    %c0_i32_0 = arith.constant 0 : i32
    %c0_i32_1 = arith.constant 0 : i32
    return %arg0, %c0_i32, %c0_i32_0 : i32, i32, i32
  }
  func.func @transform_4(%arg0: i32, %arg1: i32) -> (i32, i32, i32) {
    %c0_i32 = arith.constant 0 : i32
    %c0_i32_0 = arith.constant 0 : i32
    %c0_i32_1 = arith.constant 0 : i32
    return %arg0, %c0_i32, %c0_i32_0 : i32, i32, i32
  }
  func.func @transform_5(%arg0: i32, %arg1: i32) -> (i32, i32) {
    %c0_i32 = arith.constant 0 : i32
    %c0_i32_0 = arith.constant 0 : i32
    %c0_i32_1 = arith.constant 0 : i32
    return %c0_i32, %c0_i32_0 : i32, i32
  }
  func.func @transform_6(%arg0: i32, %arg1: i32) -> (i32, i32) {
    %c0_i32 = arith.constant 0 : i32
    %c0_i32_0 = arith.constant 0 : i32
    %c0_i32_1 = arith.constant 0 : i32
    return %c0_i32, %c0_i32_0 : i32, i32
  }
  func.func @transform_7(%arg0: i32, %arg1: i32) -> (i32, i32) {
    %c0_i32 = arith.constant 0 : i32
    %c0_i32_0 = arith.constant 0 : i32
    %c0_i32_1 = arith.constant 0 : i32
    return %c0_i32, %c0_i32_0 : i32, i32
  }
  func.func @transform_8(%arg0: i32, %arg1: i32) -> (i32, i32) {
    %c0_i32 = arith.constant 0 : i32
    %c0_i32_0 = arith.constant 0 : i32
    %c0_i32_1 = arith.constant 0 : i32
    return %c0_i32, %c0_i32_0 : i32, i32
  }
  func.func @transform_9(%arg0: i32, %arg1: i32) -> (i32, i32) {
    %c0_i32 = arith.constant 0 : i32
    %c0_i32_0 = arith.constant 0 : i32
    %c0_i32_1 = arith.constant 0 : i32
    return %c0_i32, %c0_i32_0 : i32, i32
  }
  func.func @transform_10(%arg0: i32, %arg1: i32) -> (i32, i32) {
    %c0_i32 = arith.constant 0 : i32
    %c0_i32_0 = arith.constant 0 : i32
    %c0_i32_1 = arith.constant 0 : i32
    return %c0_i32, %c0_i32_0 : i32, i32
  }
  func.func @transform_11(%arg0: i32, %arg1: i32) -> (i32, i32, i32) {
    %c0_i32 = arith.constant 0 : i32
    %c0_i32_0 = arith.constant 0 : i32
    return %arg0, %arg1, %c0_i32 : i32, i32, i32
  }
}

</mosaic_0001>

<bundles_post_ra>
// kernel: _lambda_.9
= control target key start
LH: loop header
LB: loop body
LE: loop exit
PB: predicated region body
PF: predicated region fallthrough
CT: control target
= control target key end

     0   :  { %vm208_vm0 = vcmask 1040384   ;;  %vm209_vm1 = vcmask 1041408   ;;  %v541_v2 = vmov 65535   ;;  %vm183_vm2 = vcmask 154624   ;;  %s741_s1 = inlined_call_operand.vmem [shape: bf16[147,128], index: 1, kind: input, shape index: {}]   ;;  %s742_s0 = inlined_call_operand.vmem [shape: bf16[128,147], index: 0, kind: input, shape index: {}]   ;;  %s743_s2 = inlined_call_operand.vmem [shape: f32[1,128], index: 2, kind: input, shape index: {}]   ;;  %s744_s3 = inlined_call_operand.vmem [shape: bf16[128,128], index: 3, kind: output, shape index: {}]  }
   0x1   :  { %v480_v0 = vld [vmem:[%s741_s1 + $0x38] sm:$0xff]  ;;  %v49_v1 = vld [vmem:[%s741_s1 + $0x48] sm:$0x3]  ;;  %v210_v3 = vsel %vm208_vm0, 4294967295, %v541_v2  ;;  %v479_v5 = vld [vmem:[%s741_s1 + $0x30] sm:$0xff] }
   0x2   :  { %v163_v4 = vunpack.c.l.b16 %v49_v1  ;;  %215 = vmatpush.bf16.msra.mxu0 %v480_v0  ;;  %529 = vmatpush.bf16.msra.mxu2 %v480_v0  ;;  %v211_v6 = vsel %vm209_vm1, %v210_v3, 0  ;;  %v478_v9 = vld [vmem:[%s741_s1 + $0x28] sm:$0xff]  ;;  %v481_v10 = vld [vmem:[%s741_s1 + $0x40] sm:$0xff]  ;;  %v467_v13 = vld [vmem:[%s742_s0 + $0x54] sm:$0xf] }
   0x3   :  { %v457_v11 = vld [vmem:[%s742_s0 + $0x4] sm:$0xf]  ;;  %v353_v12 = vld [vmem:[%s742_s0 + $0x8] sm:$0xf0]  ;;  %v393_v14 = vld [vmem:[%s742_s0 + $0x58] sm:$0xf0] }
   0x4   :  { %v173_v7 = vpack.c.b16 %v163_v4, %v163_v4  ;;  %v356_v15 = vor.u32 %v457_v11, %v353_v12  ;;  %v477_v16 = vld [vmem:[%s741_s1 + $0x20] sm:$0xff]  ;;  %v396_v17 = vor.u32 %v467_v13, %v393_v14  ;;  %v476_v18 = vld [vmem:[%s741_s1 + $0x18] sm:$0xff]  ;;  %v475_v19 = vld [vmem:[%s741_s1 + $0x10] sm:$0xff] }
   0x5   :  { %v474_v20 = vld [vmem:[%s741_s1 + $0x8] sm:$0xff]  ;;  %v459_v21 = vld [vmem:[%s742_s0 + $0x14] sm:$0xf]  ;;  %v361_v22 = vld [vmem:[%s742_s0 + $0x18] sm:$0xf0] }
   0x6   :  { %v213_v8 = vand.u32 %v211_v6, %v173_v7  ;;  %216 = vmatpush.bf16.msra.mxu0 %v479_v5  ;;  %530 = vmatpush.bf16.msra.mxu2 %v479_v5  ;;  %v469_v23 = vld [vmem:[%s742_s0 + $0x64] sm:$0xf]  ;;  %v401_v24 = vld [vmem:[%s742_s0 + $0x68] sm:$0xf0]  ;;  %v364_v25 = vor.u32 %v459_v21, %v361_v22  ;;  %v351_v27 = vld [vmem:[%s742_s0] sm:$0xf] }
   0x7   :  { %v473_v26 = vld [vmem:[%s741_s1] sm:$0xff]  ;;  %v458_v28 = vld [vmem:[%s742_s0 + $0x4] sm:$0xf0]  ;;  %v404_v31 = vor.u32 %v469_v23, %v401_v24  ;;  %v369_v35 = vld [vmem:[%s742_s0 + $0x28] sm:$0xf0] }
   0x8   :  { %270 = vmatpush.bf16.msra.mxu1 %v213_v8  ;;  %537 = vmatpush.bf16.msra.mxu3 %v213_v8  ;;  %v383_v29 = vld [vmem:[%s742_s0 + $0x40] sm:$0xf]  ;;  %v466_v30 = vld [vmem:[%s742_s0 + $0x44] sm:$0xf0]  ;;  %v352_v32 = vor.u32 %v458_v28, %v351_v27  ;;  %v461_v34 = vld [vmem:[%s742_s0 + $0x24] sm:$0xf] }
   0x9   :  { %v384_v33 = vor.u32 %v466_v30, %v383_v29  ;;  %v471_v36 = vld [vmem:[%s742_s0 + $0x74] sm:$0xf]  ;;  %v409_v37 = vld [vmem:[%s742_s0 + $0x78] sm:$0xf0]  ;;  %v372_v38 = vor.u32 %v461_v34, %v369_v35  ;;  %v359_v39 = vld [vmem:[%s742_s0 + $0x10] sm:$0xf] }
   0xa   :  { %217 = vmatpush.bf16.msra.mxu0 %v478_v9  ;;  %531 = vmatpush.bf16.msra.mxu2 %v478_v9  ;;  %v460_v40 = vld [vmem:[%s742_s0 + $0x14] sm:$0xf0]  ;;  %v391_v41 = vld [vmem:[%s742_s0 + $0x50] sm:$0xf]  ;;  %v412_v43 = vor.u32 %v471_v36, %v409_v37  ;;  %v463_v46 = vld [vmem:[%s742_s0 + $0x34] sm:$0xf] }
   0xb   :  { %v468_v42 = vld [vmem:[%s742_s0 + $0x54] sm:$0xf0]  ;;  %v360_v44 = vor.u32 %v460_v40, %v359_v39  ;;  %v377_v47 = vld [vmem:[%s742_s0 + $0x38] sm:$0xf0]  ;;  %v367_v49 = vld [vmem:[%s742_s0 + $0x20] sm:$0xf] }
   0xc   :  { %271 = vmatpush.bf16.msra.mxu1 %v481_v10  ;;  %538 = vmatpush.bf16.msra.mxu3 %v481_v10  ;;  %v392_v45 = vor.u32 %v468_v42, %v391_v41  ;;  %v380_v48 = vor.u32 %v463_v46, %v377_v47  ;;  %v462_v50 = vld [vmem:[%s742_s0 + $0x24] sm:$0xf0]  ;;  %v399_v51 = vld [vmem:[%s742_s0 + $0x60] sm:$0xf]  ;;  %v465_v55 = vld [vmem:[%s742_s0 + $0x44] sm:$0xf] }
   0xd   :  { %v470_v52 = vld [vmem:[%s742_s0 + $0x64] sm:$0xf0]  ;;  %v368_v53 = vor.u32 %v462_v50, %v367_v49  ;;  %v385_v56 = vld [vmem:[%s742_s0 + $0x48] sm:$0xf0]  ;;  %v375_v58 = vld [vmem:[%s742_s0 + $0x30] sm:$0xf] }
   0xe   :  { %218 = vmatpush.bf16.msra.mxu0 %v477_v16  ;;  %532 = vmatpush.bf16.msra.mxu2 %v477_v16  ;;  %v400_v54 = vor.u32 %v470_v52, %v399_v51  ;;  %v388_v57 = vor.u32 %v465_v55, %v385_v56  ;;  %v464_v59 = vld [vmem:[%s742_s0 + $0x34] sm:$0xf0]  ;;  %v407_v60 = vld [vmem:[%s742_s0 + $0x70] sm:$0xf]  ;;  %v699_v4 = vld [vmem:[%s743_s2] ss:$0 sm:$0xff] }
   0xf   :  { %449 = vmatmul.msk.bf16.vlgmr.msra.gmra.mxu1 %vm183_vm2, %v356_v15  ;;  %454 = vmatmul.msk.bf16.vlgmr.msra.gmra.mxu3 %vm183_vm2, %v396_v17  ;;  %v472_v61 = vld [vmem:[%s742_s0 + $0x74] sm:$0xf0]  ;;  %v376_v62 = vor.u32 %v464_v59, %v375_v58 }
  0x10   :  { %v408_v63 = vor.u32 %v472_v61, %v407_v60 }
  0x12   :  { %219 = vmatpush.bf16.msra.mxu0 %v476_v18  ;;  %533 = vmatpush.bf16.msra.mxu2 %v476_v18 }
  0x16   :  { %220 = vmatpush.bf16.msra.mxu0 %v475_v19  ;;  %534 = vmatpush.bf16.msra.mxu2 %v475_v19 }
  0x1a   :  { %221 = vmatpush.bf16.msra.mxu0 %v474_v20  ;;  %535 = vmatpush.bf16.msra.mxu2 %v474_v20 }
  0x1e   :  { %222 = vmatpush.bf16.msra.mxu0 %v473_v26  ;;  %536 = vmatpush.bf16.msra.mxu2 %v473_v26 }
  0x1f   :  { %450 = vmatmul.msk.bf16.gmra.mxu1 %vm183_vm2, %v364_v25  ;;  %455 = vmatmul.msk.bf16.gmra.mxu3 %vm183_vm2, %v404_v31 }
  0x21   :  { %223 = vmatmul.bf16.vlgmr.msra.gmra.mxu0 %v352_v32  ;;  %243 = vmatmul.bf16.vlgmr.msra.gmra.mxu2 %v384_v33 }
  0x2f   :  { %451 = vmatmul.msk.bf16.gmra.mxu1 %vm183_vm2, %v372_v38  ;;  %456 = vmatmul.msk.bf16.gmra.mxu3 %vm183_vm2, %v412_v43 }
  0x31   :  { %228 = vmatmul.bf16.gmra.mxu0 %v360_v44  ;;  %248 = vmatmul.bf16.gmra.mxu2 %v392_v45 }
  0x3f   :  { %452 = vmatmul.msk.bf16.gmra.mxu1 %vm183_vm2, %v380_v48 }
  0x41   :  { %233 = vmatmul.bf16.gmra.mxu0 %v368_v53  ;;  %253 = vmatmul.bf16.gmra.mxu2 %v400_v54 }
  0x4f   :  { %453 = vmatmul.msk.bf16.gmra.mxu1 %vm183_vm2, %v388_v57 }
  0x51   :  { %238 = vmatmul.bf16.gmra.mxu0 %v376_v62  ;;  %258 = vmatmul.bf16.gmra.mxu2 %v408_v63 }
  0x8c   :  { %v273_v0 = vpop.f32.mrf.mxu1 }
  0x92   :  { %v298_v15 = vpop.f32.mrf.mxu3 }
  0x94   :  { %v275_v1 = vpop.f32.mrf.mxu1 }
  0x9a   :  { %v300_v22 = vpop.f32.mrf.mxu3 }
  0x9c   :  { %v278_v2 = vpop.f32.mrf.mxu1 }
  0x9e   :  { %v224_v3 = vpop.f32.mrf.mxu0 }
  0x9f   :  { %v225_v6 = vadd.f32 %v699_v4, %v224_v3 }
  0xa1   :  { %v274_v10 = vadd.f32 %v273_v0, %v225_v6 }
  0xa2   :  { %v303_v33 = vpop.f32.mrf.mxu3 }
  0xa4   :  { %v280_v5 = vpop.f32.mrf.mxu1  ;;  %v244_v7 = vpop.f32.mrf.mxu2 }
  0xa5   :  { %v245_v51 = vadd.f32 %v699_v4, %v244_v7 }
  0xa6   :  { %v226_v8 = vpop.f32.mrf.mxu0 }
  0xa7   :  { %v227_v9 = vadd.f32 %v699_v4, %v226_v8 }
  0xa9   :  { %v276_v11 = vadd.f32 %v275_v1, %v227_v9 }
  0xaa   :  { %v305_v43 = vpop.f32.mrf.mxu3 }
  0xab   :  { %v485_v12 = vpack.c.bf16 %v276_v11, %v274_v10 }
  0xac   :  { %v283_v13 = vpop.f32.mrf.mxu1  ;;  %v246_v14 = vpop.f32.mrf.mxu2 }
  0xad   :  { %486 = vst [vmem:[%s744_s3] sm:$0xff] %v485_v12   ;;  %v247_v52 = vadd.f32 %v699_v4, %v246_v14 }
  0xae   :  { %v229_v16 = vpop.f32.mrf.mxu0 }
  0xaf   :  { %v230_v18 = vadd.f32 %v699_v4, %v229_v16 }
  0xb1   :  { %v279_v23 = vadd.f32 %v278_v2, %v230_v18 }
  0xb2   :  { %v308_v58 = vpop.f32.mrf.mxu3 }
  0xb4   :  { %v285_v17 = vpop.f32.mrf.mxu1  ;;  %v249_v19 = vpop.f32.mrf.mxu2 }
  0xb5   :  { %v250_v27 = vadd.f32 %v699_v4, %v249_v19 }
  0xb6   :  { %v231_v20 = vpop.f32.mrf.mxu0 }
  0xb7   :  { %v232_v21 = vadd.f32 %v699_v4, %v231_v20  ;;  %v299_v31 = vadd.f32 %v298_v15, %v250_v27 }
  0xb9   :  { %v281_v24 = vadd.f32 %v280_v5, %v232_v21 }
  0xba   :  { %v310_v6 = vpop.f32.mrf.mxu3 }
  0xbb   :  { %v490_v25 = vpack.c.bf16 %v281_v24, %v279_v23 }
  0xbc   :  { %v288_v26 = vpop.f32.mrf.mxu1  ;;  %v251_v28 = vpop.f32.mrf.mxu2 }
  0xbd   :  { %522 = vst [vmem:[%s744_s3 + $0x8] sm:$0xff] %v490_v25   ;;  %v252_v29 = vadd.f32 %v699_v4, %v251_v28 }
  0xbe   :  { %v234_v30 = vpop.f32.mrf.mxu0 }
  0xbf   :  { %v301_v32 = vadd.f32 %v300_v22, %v252_v29  ;;  %v235_v36 = vadd.f32 %v699_v4, %v234_v30 }
  0xc1   :  { %v510_v34 = vpack.c.bf16 %v301_v32, %v299_v31  ;;  %v284_v40 = vadd.f32 %v283_v13, %v235_v36 }
  0xc3   :  { %526 = vst [vmem:[%s744_s3 + $0x28] sm:$0xff] %v510_v34  }
  0xc4   :  { %v290_v35 = vpop.f32.mrf.mxu1  ;;  %v254_v37 = vpop.f32.mrf.mxu2 }
  0xc5   :  { %v255_v45 = vadd.f32 %v699_v4, %v254_v37 }
  0xc6   :  { %v236_v38 = vpop.f32.mrf.mxu0 }
  0xc7   :  { %v237_v39 = vadd.f32 %v699_v4, %v236_v38  ;;  %v304_v49 = vadd.f32 %v303_v33, %v255_v45 }
  0xc9   :  { %v286_v41 = vadd.f32 %v285_v17, %v237_v39 }
  0xcb   :  { %v495_v42 = vpack.c.bf16 %v286_v41, %v284_v40 }
  0xcc   :  { %v293_v44 = vpop.f32.mrf.mxu1  ;;  %v256_v46 = vpop.f32.mrf.mxu2 }
  0xcd   :  { %523 = vst [vmem:[%s744_s3 + $0x10] sm:$0xff] %v495_v42   ;;  %v257_v47 = vadd.f32 %v699_v4, %v256_v46  ;;  %v294_v55 = vadd.f32 %v293_v44, %v245_v51 }
  0xce   :  { %v239_v48 = vpop.f32.mrf.mxu0 }
  0xcf   :  { %v306_v50 = vadd.f32 %v305_v43, %v257_v47  ;;  %v240_v57 = vadd.f32 %v699_v4, %v239_v48 }
  0xd1   :  { %v515_v53 = vpack.c.bf16 %v306_v50, %v304_v49  ;;  %v289_v63 = vadd.f32 %v288_v26, %v240_v57 }
  0xd3   :  { %527 = vst [vmem:[%s744_s3 + $0x30] sm:$0xff] %v515_v53  }
  0xd4   :  { %v295_v54 = vpop.f32.mrf.mxu1  ;;  %v259_v59 = vpop.f32.mrf.mxu2 }
  0xd5   :  { %v296_v56 = vadd.f32 %v295_v54, %v247_v52  ;;  %v260_v2 = vadd.f32 %v699_v4, %v259_v59 }
  0xd6   :  { %v241_v61 = vpop.f32.mrf.mxu0 }
  0xd7   :  { %v505_v60 = vpack.c.bf16 %v296_v56, %v294_v55  ;;  %v242_v62 = vadd.f32 %v699_v4, %v241_v61  ;;  %v309_v7 = vadd.f32 %v308_v58, %v260_v2 }
  0xd9   :  { %525 = vst [vmem:[%s744_s3 + $0x20] sm:$0xff] %v505_v60   ;;  %v291_v0 = vadd.f32 %v290_v35, %v242_v62 }
  0xdb   :  { %v500_v1 = vpack.c.bf16 %v291_v0, %v289_v63 }
  0xdc   :  { %v261_v3 = vpop.f32.mrf.mxu2 }
  0xdd   :  { %524 = vst [vmem:[%s744_s3 + $0x18] sm:$0xff] %v500_v1   ;;  %v262_v5 = vadd.f32 %v699_v4, %v261_v3 }
  0xdf   :  { %v311_v8 = vadd.f32 %v310_v6, %v262_v5 }
  0xe1   :  { %v520_v9 = vpack.c.bf16 %v311_v8, %v309_v7 }
  0xe3   :  { %528 = vst [vmem:[%s744_s3 + $0x38] sm:$0xff] %v520_v9  }

// kernel: _lambda_.10
= control target key start
LH: loop header
LB: loop body
LE: loop exit
PB: predicated region body
PF: predicated region fallthrough
CT: control target
= control target key end

     0   :  { %s1100_s0 = inlined_call_operand.vmem [shape: bf16[128,128], index: 0, kind: input, shape index: {}]   ;;  %s1101_s1 = inlined_call_operand.vmem [shape: f32[1,128], index: 1, kind: input, shape index: {}]   ;;  %s1102_s2 = inlined_call_operand.vmem [shape: f32[1,128], index: 2, kind: input, shape index: {}]   ;;  %s1103_s3 = inlined_call_operand.vmem [shape: bf16[128,128], index: 3, kind: output, shape index: {}]  }
   0x1   :  { %v547_v0 = vld [vmem:[%s1100_s0 + $0x10] sm:$0xff]   ;;  %v546_v1 = vld [vmem:[%s1100_s0 + $0x8] sm:$0xff]   ;;  %v475_v2 = vld [vmem:[%s1100_s0] sm:$0xff]  }
   0x2   :  { %v623_v3 = vunpack.c.l.bf16 %v547_v0  ;;  %v625_v4 = vunpack.c.l.bf16 %v546_v1  ;;  %v627_v5 = vunpack.c.l.bf16 %v475_v2  ;;  %v632_v6 = vunpack.c.h.bf16 %v547_v0  ;;  %v549_v9 = vld [vmem:[%s1100_s0 + $0x20] sm:$0xff]   ;;  %v548_v10 = vld [vmem:[%s1100_s0 + $0x18] sm:$0xff]   ;;  %v550_v14 = vld [vmem:[%s1100_s0 + $0x28] sm:$0xff]  }
   0x3   :  { %v634_v7 = vunpack.c.h.bf16 %v546_v1  ;;  %v636_v8 = vunpack.c.h.bf16 %v475_v2  ;;  %v647_v11 = vunpack.c.l.bf16 %v549_v9  ;;  %v649_v12 = vunpack.c.h.bf16 %v548_v10  ;;  %v552_v18 = vld [vmem:[%s1100_s0 + $0x38] sm:$0xff]   ;;  %v551_v19 = vld [vmem:[%s1100_s0 + $0x30] sm:$0xff]  }
   0x4   :  { %54 = vadd.xlane.f32.xlu2 %v623_v3  ;;  %50 = vadd.xlane.f32.xlu1 %v625_v4  ;;  %v651_v13 = vunpack.c.l.bf16 %v548_v10  ;;  %v659_v15 = vunpack.c.h.bf16 %v550_v14  ;;  %v661_v16 = vunpack.c.l.bf16 %v550_v14  ;;  %v663_v17 = vunpack.c.h.bf16 %v549_v9 }
   0x5   :  { %46 = vadd.xlane.f32.xlu0 %v627_v5  ;;  %v674_v20 = vunpack.c.l.bf16 %v552_v18  ;;  %v676_v21 = vunpack.c.h.bf16 %v551_v19  ;;  %v678_v22 = vunpack.c.l.bf16 %v551_v19  ;;  %v95_v23 = vmul.f32 %v636_v8, %v636_v8 }
   0x6   :  { %v94_v24 = vmul.f32 %v627_v5, %v627_v5  ;;  %v687_v25 = vunpack.c.h.bf16 %v552_v18  ;;  %v98_v26 = vmul.f32 %v623_v3, %v623_v3  ;;  %v97_v27 = vmul.f32 %v634_v7, %v634_v7 }
   0x7   :  { %1106 = vst [vmem:[#allocation2_spill] sm:$0xff] %v674_v20  ;;  %v96_v28 = vmul.f32 %v625_v4, %v625_v4  ;;  %v101_v29 = vmul.f32 %v649_v12, %v649_v12  ;;  %v100_v30 = vmul.f32 %v651_v13, %v651_v13  ;;  %v99_v31 = vmul.f32 %v632_v6, %v632_v6 }
   0x8   :  { %1107 = vst [vmem:[#allocation3_spill] sm:$0xff] %v687_v25  ;;  %v104_v32 = vmul.f32 %v661_v16, %v661_v16  ;;  %v103_v33 = vmul.f32 %v663_v17, %v663_v17  ;;  %v102_v34 = vmul.f32 %v647_v11, %v647_v11  ;;  %v107_v35 = vmul.f32 %v676_v21, %v676_v21 }
   0x9   :  { %v106_v36 = vmul.f32 %v678_v22, %v678_v22  ;;  %v105_v37 = vmul.f32 %v659_v15, %v659_v15  ;;  %v109_v38 = vmul.f32 %v687_v25, %v687_v25  ;;  %v108_v39 = vmul.f32 %v674_v20, %v674_v20 }
   0xc   :  { %56 = vadd.xlane.f32.xlu2 %v632_v6  ;;  %52 = vadd.xlane.f32.xlu1 %v634_v7 }
   0xd   :  { %48 = vadd.xlane.f32.xlu0 %v636_v8 }
  0x14   :  { %62 = vadd.xlane.f32.xlu2 %v647_v11  ;;  %60 = vadd.xlane.f32.xlu1 %v649_v12 }
  0x15   :  { %58 = vadd.xlane.f32.xlu0 %v651_v13 }
  0x1c   :  { %68 = vadd.xlane.f32.xlu2 %v659_v15  ;;  %66 = vadd.xlane.f32.xlu1 %v661_v16 }
  0x1d   :  { %64 = vadd.xlane.f32.xlu0 %v663_v17 }
  0x24   :  { %74 = vadd.xlane.f32.xlu2 %v674_v20  ;;  %72 = vadd.xlane.f32.xlu1 %v676_v21 }
  0x25   :  { %70 = vadd.xlane.f32.xlu0 %v678_v22 }
  0x2c   :  { %112 = vadd.xlane.f32.xlu2 %v95_v23  ;;  %110 = vadd.xlane.f32.xlu1 %v94_v24 }
  0x2d   :  { %76 = vadd.xlane.f32.xlu0 %v687_v25 }
  0x34   :  { %118 = vadd.xlane.f32.xlu2 %v98_v26  ;;  %116 = vadd.xlane.f32.xlu1 %v97_v27 }
  0x35   :  { %114 = vadd.xlane.f32.xlu0 %v96_v28 }
  0x3c   :  { %124 = vadd.xlane.f32.xlu2 %v101_v29  ;;  %122 = vadd.xlane.f32.xlu1 %v100_v30 }
  0x3d   :  { %120 = vadd.xlane.f32.xlu0 %v99_v31 }
  0x44   :  { %130 = vadd.xlane.f32.xlu2 %v104_v32  ;;  %128 = vadd.xlane.f32.xlu1 %v103_v33 }
  0x45   :  { %126 = vadd.xlane.f32.xlu0 %v102_v34 }
  0x4c   :  { %136 = vadd.xlane.f32.xlu2 %v107_v35  ;;  %134 = vadd.xlane.f32.xlu1 %v106_v36 }
  0x4d   :  { %132 = vadd.xlane.f32.xlu0 %v105_v37 }
  0x54   :  { %140 = vadd.xlane.f32.xlu1 %v109_v38 }
  0x55   :  { %138 = vadd.xlane.f32.xlu0 %v108_v39 }
  0x77   :  { %v55_v40 = vpop.xlane.xlu2 %54  ;;  %v51_v41 = vpop.xlane.xlu1 %50 }
  0x78   :  { %v47_v42 = vpop.xlane.xlu0 %46  ;;  %v730_v0 = vmul.f32 0.03125, %v55_v40  ;;  %v732_v1 = vmul.f32 0.03125, %v51_v41 }
  0x79   :  { %v720_v55 = vmul.f32 0.03125, %v47_v42 }
  0x7a   :  { %v162_v23 = vmul.f32 %v730_v0, %v730_v0  ;;  %v160_v26 = vmul.f32 %v732_v1, %v732_v1 }
  0x7b   :  { %v158_v59 = vmul.f32 %v720_v55, %v720_v55 }
  0x7f   :  { %v57_v43 = vpop.xlane.xlu2 %56  ;;  %v53_v44 = vpop.xlane.xlu1 %52 }
  0x80   :  { %v49_v45 = vpop.xlane.xlu0 %48  ;;  %v734_v10 = vmul.f32 0.03125, %v57_v43  ;;  %v736_v14 = vmul.f32 0.03125, %v53_v44 }
  0x81   :  { %v722_v56 = vmul.f32 0.03125, %v49_v45 }
  0x82   :  { %v757_v30 = vmul.f32 %v734_v10, %v734_v10  ;;  %v161_v34 = vmul.f32 %v736_v14, %v736_v14 }
  0x83   :  { %v159_v60 = vmul.f32 %v722_v56, %v722_v56  ;;  %v191_v41 = vsub.f32 %v636_v8, %v722_v56 }
  0x87   :  { %v63_v46 = vpop.xlane.xlu2 %62  ;;  %v61_v47 = vpop.xlane.xlu1 %60 }
  0x88   :  { %v59_v48 = vpop.xlane.xlu0 %58  ;;  %v750_v28 = vmul.f32 0.03125, %v63_v46  ;;  %v759_v31 = vmul.f32 0.03125, %v61_v47 }
  0x89   :  { %v764_v35 = vmul.f32 0.03125, %v59_v48 }
  0x8a   :  { %v774_v43 = vmul.f32 %v750_v28, %v750_v28  ;;  %v165_v47 = vmul.f32 %v759_v31, %v759_v31 }
  0x8f   :  { %v69_v49 = vpop.xlane.xlu2 %68  ;;  %v67_v50 = vpop.xlane.xlu1 %66 }
  0x90   :  { %v65_v51 = vpop.xlane.xlu0 %64  ;;  %v776_v44 = vmul.f32 0.03125, %v69_v49  ;;  %v780_v48 = vmul.f32 0.03125, %v67_v50 }
  0x97   :  { %v75_v52 = vpop.xlane.xlu2 %74  ;;  %v73_v53 = vpop.xlane.xlu1 %72 }
  0x98   :  { %v718_v54 = vpop.xlane.xlu0 %70  ;;  %v794_v50 = vmul.f32 0.03125, %v75_v52 }
  0x9f   :  { %v113_v57 = vpop.xlane.xlu2 %112  ;;  %v111_v58 = vpop.xlane.xlu1 %110 }
  0xa0   :  { %v143_v61 = vmul.f32 0.03125, %v113_v57  ;;  %v728_v62 = vpop.xlane.xlu0 %76  ;;  %v142_v63 = vmul.f32 0.03125, %v111_v58  ;;  %v782_v57 = vmul.f32 0.03125, %v65_v51 }
  0xa2   :  { %v175_v2 = vsub.f32 %v143_v61, %v159_v60  ;;  %v174_v9 = vsub.f32 %v142_v63, %v158_v59  ;;  %v164_v61 = vmul.f32 %v764_v35, %v764_v35  ;;  %v813_v52 = vmul.f32 %v782_v57, %v782_v57 }
  0xa4   :  { %v738_v18 = vadd.f32 1e-05, %v175_v2  ;;  %v740_v19 = vadd.f32 1e-05, %v174_v9  ;;  %v822_v9 = vmul.f32 0.03125, %v718_v54 }
  0xa6   :  { %562 = vrsqrt.f32 %v738_v18  ;;  %vm238_vm0 = vweird.f32 %v738_v18  ;;  %vm228_vm2 = vweird.f32 %v740_v19 }
  0xa7   :  { %564 = vrsqrt.f32 %v740_v19  ;;  %v119_v32 = vpop.xlane.xlu2 %118  ;;  %v117_v33 = vpop.xlane.xlu1 %116 }
  0xa8   :  { %v146_v36 = vmul.f32 0.03125, %v119_v32  ;;  %v115_v37 = vpop.xlane.xlu0 %114  ;;  %v145_v38 = vmul.f32 0.03125, %v117_v33  ;;  %v803_v32 = vmul.f32 0.03125, %v73_v53 }
  0xa9   :  { %v144_v42 = vmul.f32 0.03125, %v115_v37 }
  0xaa   :  { %v178_v45 = vsub.f32 %v146_v36, %v162_v23  ;;  %v177_v46 = vsub.f32 %v145_v38, %v161_v34  ;;  %v809_v34 = vmul.f32 %v780_v48, %v780_v48 }
  0xab   :  { %v176_v58 = vsub.f32 %v144_v42, %v160_v26  ;;  %v801_v26 = vmul.f32 %v776_v44, %v776_v44 }
  0xac   :  { %v563_v59 = vpop.eup %562  ;;  %v788_v63 = vadd.f32 1e-05, %v178_v45  ;;  %v790_v49 = vadd.f32 1e-05, %v177_v46 }
  0xad   :  { %v565_v2 = vpop.eup %564  ;;  %v233_v51 = vmul.f32 %v563_v59, %v738_v18  ;;  %v797_v23 = vadd.f32 1e-05, %v176_v58  ;;  %v819_v58 = vmul.f32 %v794_v50, %v794_v50  ;;  %vm239_vm1 = vweird.f32 %v563_v59 }
  0xae   :  { %v223_v33 = vmul.f32 %v565_v2, %v740_v19  ;;  %566 = vrsqrt.f32 %v788_v63  ;;  %vm229_vm3 = vweird.f32 %v565_v2  ;;  %vm268_vm4 = vweird.f32 %v788_v63  ;;  %vm240_vm5 = vmor %vm238_vm0, %vm239_vm1 }
  0xaf   :  { %v234_v36 = vmul.f32 %v563_v59, %v233_v51  ;;  %568 = vrsqrt.f32 %v797_v23  ;;  %v125_v37 = vpop.xlane.xlu2 %124  ;;  %v123_v38 = vpop.xlane.xlu1 %122  ;;  %v826_v51 = vmul.f32 %v803_v32, %v803_v32  ;;  %vm230_vm6 = vmor %vm228_vm2, %vm229_vm3  ;;  %vm248_vm7 = vweird.f32 %v797_v23 }
  0xb0   :  { %v224_v42 = vmul.f32 %v565_v2, %v223_v33  ;;  %570 = vrsqrt.f32 %v790_v49  ;;  %v149_v53 = vmul.f32 0.03125, %v125_v37  ;;  %v121_v45 = vpop.xlane.xlu0 %120  ;;  %v148_v46 = vmul.f32 0.03125, %v123_v38 }
  0xb1   :  { %v235_v39 = vmul.f32 0.5, %v234_v36  ;;  %v147_v60 = vmul.f32 0.03125, %v121_v45  ;;  %vm258_vm12 = vweird.f32 %v790_v49 }
  0xb2   :  { %v225_v40 = vmul.f32 0.5, %v224_v42  ;;  %v181_v33 = vsub.f32 %v149_v53, %v165_v47  ;;  %v180_v24 = vsub.f32 %v148_v46, %v164_v61 }
  0xb3   :  { %v236_v27 = vsub.f32 1.5, %v235_v39  ;;  %v179_v37 = vsub.f32 %v147_v60, %v757_v30  ;;  %v847_v30 = vld [vmem:[%s1101_s1] ss:$0 sm:$0xff] }
  0xb4   :  { %v830_v38 = vpop.eup %566  ;;  %v226_v29 = vsub.f32 1.5, %v225_v40  ;;  %v833_v54 = vadd.f32 1e-05, %v181_v33  ;;  %v854_v60 = vadd.f32 1e-05, %v180_v24  ;;  %v1108_v33 = vsub.f32 %v627_v5, %v720_v55 }
  0xb5   :  { %v835_v36 = vpop.eup %568  ;;  %v237_v45 = vmul.f32 %v563_v59, %v236_v27  ;;  %v263_v47 = vmul.f32 %v830_v38, %v788_v63  ;;  %v840_v39 = vadd.f32 1e-05, %v179_v37  ;;  %vm269_vm8 = vweird.f32 %v830_v38 }
  0xb6   :  { %v842_v61 = vpop.eup %570  ;;  %v227_v40 = vmul.f32 %v565_v2, %v226_v29  ;;  %v243_v27 = vmul.f32 %v835_v36, %v797_v23  ;;  %572 = vrsqrt.f32 %v833_v54  ;;  %v866_v29 = vld [vmem:[%s1102_s2] ss:$0 sm:$0xff]  ;;  %vm249_vm9 = vweird.f32 %v835_v36  ;;  %vm894_vm11 = vmor %vm268_vm4, %vm269_vm8 }
  0xb7   :  { %v241_v42 = vsel %vm240_vm5, %v563_v59, %v237_v45  ;;  %v264_v53 = vmul.f32 %v830_v38, %v263_v47  ;;  %v253_v18 = vmul.f32 %v842_v61, %v790_v49  ;;  %574 = vrsqrt.f32 %v840_v39  ;;  %v131_v25 = vpop.xlane.xlu2 %130  ;;  %vm250_vm14 = vmor %vm248_vm7, %vm249_vm9 }
  0xb8   :  { %v383_v24 = vmul.f32 %v241_v42, %v191_v41  ;;  %v231_v59 = vsel %vm230_vm6, %v565_v2, %v227_v40  ;;  %v244_v19 = vmul.f32 %v835_v36, %v243_v27  ;;  %v127_v46 = vpop.xlane.xlu0 %126  ;;  %576 = vrsqrt.f32 %v854_v60 }
  0xb9   :  { %v382_v37 = vmul.f32 %v231_v59, %v1108_v33  ;;  %v265_v45 = vmul.f32 0.5, %v264_v53  ;;  %v254_v47 = vmul.f32 %v842_v61, %v253_v18  ;;  %vm259_vm10 = vweird.f32 %v842_v61  ;;  %v129_v53 = vpop.xlane.xlu1 %128 }
  0xba   :  { %v403_v20 = vmul.f32 %v847_v30, %v383_v24  ;;  %v245_v8 = vmul.f32 0.5, %v244_v19  ;;  %v152_v27 = vmul.f32 0.03125, %v131_v25  ;;  %v150_v42 = vmul.f32 0.03125, %v127_v46  ;;  %vm260_vm15 = vmor %vm258_vm12, %vm259_vm10 }
  0xbb   :  { %v402_v56 = vmul.f32 %v847_v30, %v382_v37  ;;  %v266_v41 = vsub.f32 1.5, %v265_v45  ;;  %v255_v2 = vmul.f32 0.5, %v254_v47  ;;  %vm298_vm13 = vweird.f32 %v833_v54 }
  0xbc   :  { %v883_v5 = vpop.eup %572  ;;  %v423_v55 = vadd.f32 %v866_v29, %v403_v20  ;;  %v246_v40 = vsub.f32 1.5, %v245_v8  ;;  %v184_v25 = vsub.f32 %v152_v27, %v809_v34  ;;  %vm278_vm0 = vweird.f32 %v840_v39 }
  0xbd   :  { %v422_v18 = vadd.f32 %v866_v29, %v402_v56  ;;  %v267_v24 = vmul.f32 %v830_v38, %v266_v41  ;;  %v256_v59 = vsub.f32 1.5, %v255_v2  ;;  %v293_v19 = vmul.f32 %v883_v5, %v833_v54  ;;  %v902_v46 = vpop.eup %574 }
  0xbe   :  { %v247_v20 = vmul.f32 %v835_v36, %v246_v40  ;;  %v913_v47 = vpop.eup %576  ;;  %v273_v8 = vmul.f32 %v902_v46, %v840_v39  ;;  %v1111_v56 = vsub.f32 %v625_v4, %v732_v1  ;;  %v1112_v40 = vsub.f32 %v623_v3, %v730_v0 }
  0xbf   :  { %v509_v37 = vpack.c.bf16 %v423_v55, %v422_v18  ;;  %v271_v45 = vsel %vm894_vm11, %v830_v38, %v267_v24  ;;  %v257_v63 = vmul.f32 %v842_v61, %v256_v59  ;;  %v294_v49 = vmul.f32 %v883_v5, %v293_v19  ;;  %v137_v33 = vpop.xlane.xlu2 %136 }
  0xc0   :  { %v251_v34 = vsel %vm250_vm14, %v835_v36, %v247_v20  ;;  %v182_v38 = vsub.f32 %v150_v42, %v774_v43  ;;  %v133_v23 = vpop.xlane.xlu0 %132  ;;  %v283_v55 = vmul.f32 %v913_v47, %v854_v60  ;;  %v386_v27 = vmul.f32 %v271_v45, %v1112_v40 }
  0xc1   :  { %510 = vst [vmem:[%s1103_s3] sm:$0xff] %v509_v37   ;;  %v384_v41 = vmul.f32 %v251_v34, %v1111_v56  ;;  %v261_v36 = vsel %vm260_vm15, %v842_v61, %v257_v63  ;;  %v295_v2 = vmul.f32 0.5, %v294_v49  ;;  %v1113_v43 = vsub.f32 %v634_v7, %v736_v14  ;;  %v135_v45 = vpop.xlane.xlu1 %134 }
  0xc2   :  { %vm299_vm1 = vweird.f32 %v883_v5  ;;  %v274_v18 = vmul.f32 %v902_v46, %v273_v8  ;;  %v284_v61 = vmul.f32 %v913_v47, %v283_v55  ;;  %v941_v24 = vadd.f32 1e-05, %v184_v25 }
  0xc3   :  { %v385_v42 = vmul.f32 %v261_v36, %v1113_v43  ;;  %v404_v4 = vmul.f32 %v847_v30, %v384_v41  ;;  %v296_v1 = vsub.f32 1.5, %v295_v2  ;;  %vm279_vm2 = vweird.f32 %v902_v46  ;;  %vm300_vm3 = vmor %vm298_vm13, %vm299_vm1 }
  0xc4   :  { %v275_v19 = vmul.f32 0.5, %v274_v18  ;;  %v945_v3 = vadd.f32 1e-05, %v182_v38  ;;  %v285_v14 = vmul.f32 0.5, %v284_v61  ;;  %578 = vrsqrt.f32 %v941_v24  ;;  %vm280_vm5 = vmor %vm278_vm0, %vm279_vm2 }
  0xc5   :  { %v405_v59 = vmul.f32 %v847_v30, %v385_v42  ;;  %v424_v7 = vadd.f32 %v866_v29, %v404_v4  ;;  %v297_v0 = vmul.f32 %v883_v5, %v296_v1  ;;  %v406_v20 = vmul.f32 %v847_v30, %v386_v27 }
  0xc6   :  { %v276_v37 = vsub.f32 1.5, %v275_v19  ;;  %580 = vrsqrt.f32 %v945_v3  ;;  %v286_v49 = vsub.f32 1.5, %v285_v14  ;;  %vm289_vm4 = vweird.f32 %v913_v47 }
  0xc7   :  { %v425_v25 = vadd.f32 %v866_v29, %v405_v59  ;;  %v301_v63 = vsel %vm300_vm3, %v883_v5, %v297_v0  ;;  %v151_v34 = vmul.f32 0.03125, %v129_v53  ;;  %v1114_v38 = vsub.f32 %v649_v12, %v759_v31 }
  0xc8   :  { %v277_v41 = vmul.f32 %v902_v46, %v276_v37  ;;  %v155_v36 = vmul.f32 0.03125, %v137_v33  ;;  %v287_v54 = vmul.f32 %v913_v47, %v286_v49  ;;  %vm288_vm6 = vweird.f32 %v854_v60  ;;  %v139_v55 = vpop.xlane.xlu0 %138 }
  0xc9   :  { %v514_v8 = vpack.c.bf16 %v425_v25, %v424_v7  ;;  %v389_v56 = vmul.f32 %v301_v63, %v1114_v38  ;;  %v183_v5 = vsub.f32 %v151_v34, %v813_v52  ;;  %v153_v53 = vmul.f32 0.03125, %v133_v23  ;;  %vm290_vm7 = vmor %vm288_vm6, %vm289_vm4  ;;  %v141_v25 = vpop.xlane.xlu1 %140 }
  0xca   :  { %v281_v31 = vsel %vm280_vm5, %v902_v46, %v277_v41  ;;  %v187_v2 = vsub.f32 %v155_v36, %v826_v51  ;;  %v154_v39 = vmul.f32 0.03125, %v135_v45  ;;  %v976_v40 = vpop.eup %578  ;;  %v1115_v60 = vsub.f32 %v632_v6, %v734_v10 }
  0xcb   :  { %553 = vst [vmem:[%s1103_s3 + $0x8] sm:$0xff] %v514_v8   ;;  %v409_v12 = vmul.f32 %v847_v30, %v389_v56  ;;  %v291_v23 = vsel %vm290_vm7, %v913_v47, %v287_v54  ;;  %v982_v27 = vadd.f32 1e-05, %v183_v5  ;;  %v185_v43 = vsub.f32 %v153_v53, %v801_v26 }
  0xcc   :  { %v387_v52 = vmul.f32 %v281_v31, %v1115_v60  ;;  %v581_v42 = vpop.eup %580  ;;  %v170_v46 = vmul.f32 %v822_v9, %v822_v9  ;;  %v426_v51 = vadd.f32 %v866_v29, %v406_v20  ;;  %v1116_v18 = vsub.f32 %v651_v13, %v764_v35 }
  0xcd   :  { %v323_v6 = vmul.f32 %v976_v40, %v941_v24  ;;  %v303_v47 = vmul.f32 %v581_v42, %v945_v3  ;;  %582 = vrsqrt.f32 %v982_v27  ;;  %v156_v26 = vmul.f32 0.03125, %v139_v55 }
  0xce   :  { %v388_v4 = vmul.f32 %v291_v23, %v1116_v18  ;;  %v407_v10 = vmul.f32 %v847_v30, %v387_v52  ;;  %v429_v1 = vadd.f32 %v866_v29, %v409_v12  ;;  %v999_v19 = vadd.f32 1e-05, %v187_v2 }
  0xcf   :  { %v324_v59 = vmul.f32 %v976_v40, %v323_v6  ;;  %v304_v35 = vmul.f32 %v581_v42, %v303_v47  ;;  %v1002_v7 = vadd.f32 1e-05, %v185_v43  ;;  %v186_v0 = vsub.f32 %v154_v39, %v170_v46 }
  0xd0   :  { %v408_v61 = vmul.f32 %v847_v30, %v388_v4  ;;  %v427_v13 = vadd.f32 %v866_v29, %v407_v10  ;;  %v1005_v14 = vmul.f32 0.03125, %v728_v62  ;;  %584 = vrsqrt.f32 %v999_v19 }
  0xd1   :  { %v325_v20 = vmul.f32 0.5, %v324_v59  ;;  %v305_v45 = vmul.f32 0.5, %v304_v35  ;;  %586 = vrsqrt.f32 %v1002_v7  ;;  %v1010_v49 = vadd.f32 1e-05, %v186_v0 }
  0xd2   :  { %v428_v33 = vadd.f32 %v866_v29, %v408_v61  ;;  %v519_v37 = vpack.c.bf16 %v427_v13, %v426_v51  ;;  %v188_v34 = vsub.f32 %v156_v26, %v819_v58  ;;  %vm309_vm8 = vweird.f32 %v581_v42 }
  0xd3   :  { %v583_v8 = vpop.eup %582  ;;  %v326_v62 = vsub.f32 1.5, %v325_v20  ;;  %v306_v38 = vsub.f32 1.5, %v305_v45  ;;  %v157_v56 = vmul.f32 0.03125, %v141_v25  ;;  %v173_v41 = vmul.f32 %v1005_v14, %v1005_v14 }
  0xd4   :  { %v524_v63 = vpack.c.bf16 %v429_v1, %v428_v33  ;;  %554 = vst [vmem:[%s1103_s3 + $0x10] sm:$0xff] %v519_v37   ;;  %v313_v36 = vmul.f32 %v583_v8, %v982_v27  ;;  %588 = vrsqrt.f32 %v1010_v49  ;;  %v198_v58 = vsub.f32 %v647_v11, %v750_v28 }
  0xd5   :  { %v307_v54 = vmul.f32 %v581_v42, %v306_v38  ;;  %vm308_vm9 = vweird.f32 %v945_v3  ;;  %v1026_v5 = vadd.f32 1e-05, %v188_v34  ;;  %v201_v12 = vsub.f32 %v659_v15, %v776_v44 }
  0xd6   :  { %555 = vst [vmem:[%s1103_s3 + $0x18] sm:$0xff] %v524_v63   ;;  %v585_v53 = vpop.eup %584  ;;  %v200_v31 = vsub.f32 %v661_v16, %v780_v48  ;;  %vm310_vm10 = vmor %vm308_vm9, %vm309_vm8  ;;  %v314_v2 = vmul.f32 %v583_v8, %v313_v36  ;;  %v189_v39 = vsub.f32 %v157_v56, %v173_v41  ;;  %v327_v60 = vmul.f32 %v976_v40, %v326_v62 }
  0xd7   :  { %v587_v55 = vpop.eup %586  ;;  %vm329_vm11 = vweird.f32 %v976_v40  ;;  %v311_v11 = vsel %vm310_vm10, %v581_v42, %v307_v54  ;;  %v353_v28 = vmul.f32 %v585_v53, %v999_v19  ;;  %v199_v3 = vsub.f32 %v663_v17, %v782_v57 }
  0xd8   :  { %v203_v15 = vsub.f32 %v676_v21, %v803_v32  ;;  %v315_v44 = vmul.f32 0.5, %v314_v2  ;;  %v333_v16 = vmul.f32 %v587_v55, %v1002_v7  ;;  %vm328_vm12 = vweird.f32 %v941_v24 }
  0xd9   :  { %v390_v48 = vmul.f32 %v311_v11, %v198_v58  ;;  %v354_v52 = vmul.f32 %v585_v53, %v353_v28  ;;  %590 = vrsqrt.f32 %v1026_v5  ;;  %vm1042_vm13 = vmor %vm328_vm12, %vm329_vm11  ;;  %vm319_vm14 = vweird.f32 %v583_v8 }
  0xda   :  { %v589_v23 = vpop.eup %588  ;;  %v316_v42 = vsub.f32 1.5, %v315_v44  ;;  %v334_v17 = vmul.f32 %v587_v55, %v333_v16  ;;  %v1046_v57 = vadd.f32 1e-05, %v189_v39  ;;  %v331_v21 = vsel %vm1042_vm13, %v976_v40, %v327_v60  ;;  %v1119_v60 = vld [vmem:[#allocation2_spill] sm:$0xff] }
  0xdb   :  { %vm318_vm15 = vweird.f32 %v982_v27  ;;  %v355_v32 = vmul.f32 0.5, %v354_v52  ;;  %v343_v24 = vmul.f32 %v589_v23, %v1010_v49  ;;  %vm358_vm0 = vweird.f32 %v999_v19 }
  0xdc   :  { %v317_v46 = vmul.f32 %v583_v8, %v316_v42  ;;  %v335_v51 = vmul.f32 0.5, %v334_v17  ;;  %592 = vrsqrt.f32 %v1046_v57  ;;  %v410_v18 = vmul.f32 %v847_v30, %v390_v48  ;;  %vm320_vm1 = vmor %vm318_vm15, %vm319_vm14 }
  0xdd   :  { %v356_v4 = vsub.f32 1.5, %v355_v32  ;;  %vm359_vm2 = vweird.f32 %v585_v53  ;;  %v344_v6 = vmul.f32 %v589_v23, %v343_v24  ;;  %v392_v10 = vmul.f32 %v331_v21, %v200_v31 }
  0xde   :  { %v321_v47 = vsel %vm320_vm1, %v583_v8, %v317_v46  ;;  %v336_v40 = vsub.f32 1.5, %v335_v51  ;;  %vm339_vm3 = vweird.f32 %v587_v55  ;;  %vm338_vm4 = vweird.f32 %v1002_v7  ;;  %vm360_vm5 = vmor %vm358_vm0, %vm359_vm2 }
  0xdf   :  { %v591_v27 = vpop.eup %590  ;;  %v391_v26 = vmul.f32 %v321_v47, %v199_v3  ;;  %v357_v1 = vmul.f32 %v585_v53, %v356_v4  ;;  %v345_v61 = vmul.f32 0.5, %v344_v6  ;;  %vm348_vm6 = vweird.f32 %v1010_v49  ;;  %vm340_vm8 = vmor %vm338_vm4, %vm339_vm3 }
  0xe0   :  { %v337_v59 = vmul.f32 %v587_v55, %v336_v40  ;;  %vm349_vm7 = vweird.f32 %v589_v23  ;;  %v363_v13 = vmul.f32 %v591_v27, %v1026_v5  ;;  %v430_v35 = vadd.f32 %v866_v29, %v410_v18 }
  0xe1   :  { %v411_v0 = vmul.f32 %v847_v30, %v391_v26  ;;  %v361_v33 = vsel %vm360_vm5, %v585_v53, %v357_v1  ;;  %v346_v20 = vsub.f32 1.5, %v345_v61  ;;  %v412_v7 = vmul.f32 %v847_v30, %v392_v10  ;;  %vm350_vm9 = vmor %vm348_vm6, %vm349_vm7 }
  0xe2   :  { %v593_v25 = vpop.eup %592  ;;  %v395_v37 = vmul.f32 %v361_v33, %v203_v15  ;;  %v341_v45 = vsel %vm340_vm8, %v587_v55, %v337_v59  ;;  %v364_v19 = vmul.f32 %v591_v27, %v363_v13  ;;  %v202_v38 = vsub.f32 %v678_v22, %v822_v9 }
  0xe3   :  { %v431_v63 = vadd.f32 %v866_v29, %v411_v0  ;;  %v393_v34 = vmul.f32 %v341_v45, %v201_v12  ;;  %v347_v8 = vmul.f32 %v589_v23, %v346_v20  ;;  %v373_v62 = vmul.f32 %v593_v25, %v1046_v57 }
  0xe4   :  { %v415_v56 = vmul.f32 %v847_v30, %v395_v37  ;;  %v365_v41 = vmul.f32 0.5, %v364_v19  ;;  %vm369_vm10 = vweird.f32 %v591_v27  ;;  %v432_v2 = vadd.f32 %v866_v29, %v412_v7 }
  0xe5   :  { %v529_v36 = vpack.c.bf16 %v431_v63, %v430_v35  ;;  %v413_v58 = vmul.f32 %v847_v30, %v393_v34  ;;  %v351_v54 = vsel %vm350_vm9, %v589_v23, %v347_v8  ;;  %v374_v53 = vmul.f32 %v593_v25, %v373_v62 }
  0xe6   :  { %v394_v31 = vmul.f32 %v351_v54, %v202_v38  ;;  %v366_v12 = vsub.f32 1.5, %v365_v41  ;;  %v435_v49 = vadd.f32 %v866_v29, %v415_v56  ;;  %vm368_vm11 = vweird.f32 %v1026_v5  ;;  %v1120_v5 = vld [vmem:[#allocation3_spill] sm:$0xff] }
  0xe7   :  { %556 = vst [vmem:[%s1103_s3 + $0x20] sm:$0xff] %v529_v36   ;;  %v433_v22 = vadd.f32 %v866_v29, %v413_v58  ;;  %v375_v9 = vmul.f32 0.5, %v374_v53  ;;  %v204_v11 = vsub.f32 %v1119_v60, %v794_v50  ;;  %vm370_vm12 = vmor %vm368_vm11, %vm369_vm10  ;;  %vm379_vm13 = vweird.f32 %v593_v25 }
  0xe8   :  { %v414_v39 = vmul.f32 %v847_v30, %v394_v31  ;;  %v367_v55 = vmul.f32 %v591_v27, %v366_v12  ;;  %vm378_vm14 = vweird.f32 %v1046_v57  ;;  %v205_v52 = vsub.f32 %v1120_v5, %v1005_v14 }
  0xe9   :  { %v534_v28 = vpack.c.bf16 %v433_v22, %v432_v2  ;;  %v376_v3 = vsub.f32 1.5, %v375_v9  ;;  %vm380_vm15 = vmor %vm378_vm14, %vm379_vm13 }
  0xea   :  { %v434_v15 = vadd.f32 %v866_v29, %v414_v39  ;;  %v371_v44 = vsel %vm370_vm12, %v591_v27, %v367_v55 }
  0xeb   :  { %557 = vst [vmem:[%s1103_s3 + $0x28] sm:$0xff] %v534_v28   ;;  %v396_v16 = vmul.f32 %v371_v44, %v204_v11  ;;  %v377_v48 = vmul.f32 %v593_v25, %v376_v3 }
  0xec   :  { %v539_v23 = vpack.c.bf16 %v435_v49, %v434_v15 }
  0xed   :  { %v416_v50 = vmul.f32 %v847_v30, %v396_v16  ;;  %v381_v43 = vsel %vm380_vm15, %v593_v25, %v377_v48 }
  0xee   :  { %558 = vst [vmem:[%s1103_s3 + $0x30] sm:$0xff] %v539_v23   ;;  %v397_v42 = vmul.f32 %v381_v43, %v205_v52 }
  0xef   :  { %v436_v17 = vadd.f32 %v866_v29, %v416_v50 }
  0xf0   :  { %v417_v21 = vmul.f32 %v847_v30, %v397_v42 }
  0xf2   :  { %v437_v32 = vadd.f32 %v866_v29, %v417_v21 }
  0xf4   :  { %v544_v57 = vpack.c.bf16 %v437_v32, %v436_v17 }
  0xf6   :  { %559 = vst [vmem:[%s1103_s3 + $0x38] sm:$0xff] %v544_v57  }

// kernel: _lambda_.11
= control target key start
LH: loop header
LB: loop body
LE: loop exit
PB: predicated region body
PF: predicated region fallthrough
CT: control target
= control target key end

     0   :  { %s1440_s17 = smov 0   ;;  %s1442_s18 = smov 0   ;;  %s1599_s0 = inlined_call_operand.vmem [shape: bf16[2,64,128], index: 0, kind: input, shape index: {}]   ;;  %s1600_s1 = inlined_call_operand.vmem [shape: bf16[2,64,128], index: 1, kind: input, shape index: {}]   ;;  %s1601_s2 = inlined_call_operand.vmem [shape: bf16[2,64,128], index: 2, kind: input, shape index: {}]   ;;  %s1602_s3 = inlined_call_operand.vmem [shape: f32[2,1,128], index: 3, kind: input, shape index: {}]   ;;  %s1603_s4 = inlined_call_operand.vmem [shape: f32[2,1,128], index: 4, kind: input, shape index: {}]   ;;  %s1604_s5 = inlined_call_operand.vmem [shape: bf16[128,128], index: 5, kind: input, shape index: {}]   ;;  %s1605_s6 = inlined_call_operand.vmem [shape: f32[1,128], index: 6, kind: input, shape index: {}]   ;;  %s1606_s7 = inlined_call_operand.vmem [shape: bf16[128,128], index: 7, kind: input, shape index: {}]   ;;  %s1607_s8 = inlined_call_operand.vmem [shape: f32[1,128], index: 8, kind: input, shape index: {}]   ;;  %s1608_s9 = inlined_call_operand.vmem [shape: bf16[128,128], index: 9, kind: input, shape index: {}]   ;;  %s1609_s10 = inlined_call_operand.vmem [shape: f32[1,128], index: 10, kind: input, shape index: {}]   ;;  %s1610_s11 = inlined_call_operand.vmem [shape: bf16[2,64,128], index: 11, kind: output, shape index: {}]  }
   0x1   :  { %s1444_s19 = smov 0  }
   0x2 LB: > { %s33_s20 = sadd.s32 1, %s1374_s18  ;;  %p1102_p0 = scmp.ge.s32.totalorder %s1378_s19, 1  ;;  %s1378_s19 = sphi %s1444_s19, %s21_s19   ;;  %s1374_s18 = sphi %s1442_s18, %s1612_s18   ;;  %s1370_s17 = sphi %s1440_s17, %s1611_s17  }
   0x3   : > { %p35_p1 = scmp.ge.s32.totalorder %s33_s20, 2  ;;  %p408_p2 = scmp.lt.s32.totalorder %s1378_s19, 3 }
   0x5   : > { %s1614_s20 = smov (%p35_p1, %s33_s20), 0  ;;  %p409_p3 = pnand %p1102_p0, %p408_p2 }
   0x6   : > { %p481_p4 = scmp.lt.s32.totalorder (!%p409_p3), %s1370_s17, 1 }
   0x7   : > { %412 = sbr.rel (%p409_p3) target bundleno = 382 (0x17e), region = 64 }
   0xc   : > { %v1256_v0 = vld [vmem:[%s1604_s5 + $0x38] sm:$0xff]  ;;  %v1255_v2 = vld [vmem:[%s1604_s5 + $0x30] sm:$0xff]  ;;  %s1616_s17 = smov (!%p481_p4, %s1370_s17), 1  ;;  %v1254_v4 = vld [vmem:[%s1604_s5 + $0x28] sm:$0xff] }
   0xd   : > { %v1268_v1 = vld [vmem:[%s1606_s7 + $0x38] sm:$0xff]  ;;  %626 = vmatpush.bf16.msra.mxu0 %v1256_v0  ;;  %v1267_v3 = vld [vmem:[%s1606_s7 + $0x30] sm:$0xff]  ;;  %1319 = vmatpush.bf16.msra.mxu3 %v1256_v0  ;;  %s512_s12 = scalar_lea.vmem %s1602_s3, %s1616_s17  ;;  %s515_s15 = scalar_lea.vmem %s1603_s4, %s1616_s17  ;;  %v1266_v5 = vld [vmem:[%s1606_s7 + $0x28] sm:$0xff] }
   0xe   : > { %755 = vmatpush.bf16.msra.mxu1 %v1268_v1  ;;  %v1253_v6 = vld [vmem:[%s1604_s5 + $0x20] sm:$0xff]  ;;  %v1252_v8 = vld [vmem:[%s1604_s5 + $0x18] sm:$0xff]  ;;  %v1251_v10 = vld [vmem:[%s1604_s5 + $0x10] sm:$0xff]  ;;  %s1511_s27 = sshll.u32 %s1616_s17, 5 }
   0xf   : > { %v1265_v7 = vld [vmem:[%s1606_s7 + $0x20] sm:$0xff]  ;;  %v1264_v9 = vld [vmem:[%s1606_s7 + $0x18] sm:$0xff]  ;;  %v1263_v11 = vld [vmem:[%s1606_s7 + $0x10] sm:$0xff]  ;;  %s508_s21 = scalar_lea.vmem %s1601_s2, %s1511_s27  ;;  %s498_s24 = scalar_lea.vmem %s1600_s1, %s1511_s27 }
  0x10   : > { %v1250_v12 = vld [vmem:[%s1604_s5 + $0x8] sm:$0xff]  ;;  %v1249_v14 = vld [vmem:[%s1604_s5] sm:$0xff]  ;;  %v1247_v20 = vld [vmem:[%s508_s21 + $0x10] sm:$0xff] }
  0x11   : > { %627 = vmatpush.bf16.msra.mxu0 %v1255_v2  ;;  %1320 = vmatpush.bf16.msra.mxu3 %v1255_v2  ;;  %v1262_v13 = vld [vmem:[%s1606_s7 + $0x8] sm:$0xff]  ;;  %v1261_v15 = vld [vmem:[%s1606_s7] sm:$0xff]  ;;  %v1276_v21 = vld [vmem:[%s1608_s9 + $0x38] sm:$0xff] }
  0x12   : > { %756 = vmatpush.bf16.msra.mxu1 %v1267_v3  ;;  %v1245_v16 = vld [vmem:[%s508_s21] sm:$0xff]  ;;  %v1246_v18 = vld [vmem:[%s508_s21 + $0x8] sm:$0xff]  ;;  %888 = vmatpush.bf16.msra.mxu2 %v1276_v21  ;;  %v1275_v22 = vld [vmem:[%s1608_s9 + $0x30] sm:$0xff] }
  0x13   : > { %v1257_v17 = vld [vmem:[%s498_s24] sm:$0xff]  ;;  %v1258_v19 = vld [vmem:[%s498_s24 + $0x8] sm:$0xff]  ;;  %v1259_v25 = vld [vmem:[%s498_s24 + $0x10] sm:$0xff] }
  0x14   : > { %v1274_v23 = vld [vmem:[%s1608_s9 + $0x28] sm:$0xff]  ;;  %v1273_v24 = vld [vmem:[%s1608_s9 + $0x20] sm:$0xff]  ;;  %v1248_v26 = vld [vmem:[%s508_s21 + $0x18] sm:$0xff] }
  0x15   : > { %628 = vmatpush.bf16.msra.mxu0 %v1254_v4  ;;  %1321 = vmatpush.bf16.msra.mxu3 %v1254_v4  ;;  %v1260_v27 = vld [vmem:[%s498_s24 + $0x18] sm:$0xff]  ;;  %v1271_v29 = vld [vmem:[%s1608_s9 + $0x10] sm:$0xff]  ;;  %v1270_v30 = vld [vmem:[%s1608_s9 + $0x8] sm:$0xff]  ;;  %s1581_s24 = scalar_lea.vmem %s1610_s11, %s1511_s27 }
  0x16   : > { %757 = vmatpush.bf16.msra.mxu1 %v1266_v5  ;;  %889 = vmatpush.bf16.msra.mxu2 %v1275_v22  ;;  %v1272_v28 = vld [vmem:[%s1608_s9 + $0x18] sm:$0xff]  ;;  %v1269_v31 = vld [vmem:[%s1608_s9] sm:$0xff] }
  0x17   : > { %v1353_v32 = vld [vmem:[%s1605_s6] ss:$0 sm:$0xff] }
  0x18   : > { %v1354_v33 = vld [vmem:[%s1607_s8] ss:$0 sm:$0xff] }
  0x19   : > { %629 = vmatpush.bf16.msra.mxu0 %v1253_v6  ;;  %1322 = vmatpush.bf16.msra.mxu3 %v1253_v6  ;;  %v1351_v34 = vld [vmem:[%s512_s12] ss:$0 sm:$0xff] }
  0x1a   : > { %758 = vmatpush.bf16.msra.mxu1 %v1265_v7  ;;  %890 = vmatpush.bf16.msra.mxu2 %v1274_v23  ;;  %v1352_v35 = vld [vmem:[%s515_s15] ss:$0 sm:$0xff]  ;;  %s1571_s15 = scalar_lea.vmem %s1599_s0, %s1511_s27 }
  0x1d   : > { %630 = vmatpush.bf16.msra.mxu0 %v1252_v8  ;;  %1323 = vmatpush.bf16.msra.mxu3 %v1252_v8 }
  0x1e   : > { %759 = vmatpush.bf16.msra.mxu1 %v1264_v9  ;;  %891 = vmatpush.bf16.msra.mxu2 %v1273_v24 }
  0x21   : > { %631 = vmatpush.bf16.msra.mxu0 %v1251_v10  ;;  %1324 = vmatpush.bf16.msra.mxu3 %v1251_v10 }
  0x22   : > { %760 = vmatpush.bf16.msra.mxu1 %v1263_v11  ;;  %892 = vmatpush.bf16.msra.mxu2 %v1272_v28 }
  0x25   : > { %632 = vmatpush.bf16.msra.mxu0 %v1250_v12  ;;  %1325 = vmatpush.bf16.msra.mxu3 %v1250_v12 }
  0x26   : > { %761 = vmatpush.bf16.msra.mxu1 %v1262_v13  ;;  %893 = vmatpush.bf16.msra.mxu2 %v1271_v29 }
  0x29   : > { %633 = vmatpush.bf16.msra.mxu0 %v1249_v14  ;;  %1326 = vmatpush.bf16.msra.mxu3 %v1249_v14 }
  0x2a   : > { %762 = vmatpush.bf16.msra.mxu1 %v1261_v15  ;;  %894 = vmatpush.bf16.msra.mxu2 %v1270_v30 }
  0x2c   : > { %634 = vmatmul.bf16.vlgmr.msra.gmra.mxu0 %v1245_v16  ;;  %639 = vmatmul.bf16.vlgmr.msra.gmra.mxu3 %v1246_v18 }
  0x2d   : > { %763 = vmatmul.bf16.vlgmr.msra.gmra.mxu1 %v1257_v17 }
  0x2e   : > { %895 = vmatpush.bf16.msra.mxu2 %v1269_v31 }
  0x3c   : > { %644 = vmatmul.bf16.gmra.mxu3 %v1247_v20 }
  0x3d   : > { %768 = vmatmul.bf16.gmra.mxu1 %v1258_v19 }
  0x4c   : > { %649 = vmatmul.bf16.gmra.mxu3 %v1248_v26 }
  0x4d   : > { %773 = vmatmul.bf16.gmra.mxu1 %v1259_v25 }
  0x5d   : > { %778 = vmatmul.bf16.gmra.mxu1 %v1260_v27 }
  0xa9   : > { %v635_v36 = vpop.f32.mrf.mxu0 }
  0xaa   : > { %v764_v37 = vpop.f32.mrf.mxu1  ;;  %v636_v38 = vadd.f32 %v1353_v32, %v635_v36 }
  0xab   : > { %v765_v39 = vadd.f32 %v1354_v33, %v764_v37  ;;  %v1278_v37 = vld [vmem:[%s1571_s15] sm:$0xff]  }
  0xac   : > { %v788_v40 = vmul.f32 %v1351_v34, %v636_v38  ;;  %v1280_v38 = vunpack.c.h.bf16 %v1278_v37 }
  0xad   : > { %v800_v41 = vmul.f32 %v1352_v35, %v765_v39 }
  0xaf   : > { %v808_v42 = vadd.f32 %v800_v41, %v788_v40  ;;  %v640_v43 = vpop.f32.mrf.mxu3 }
  0xb0   : > { %v641_v50 = vadd.f32 %v1353_v32, %v640_v43 }
  0xb1   : > { %v637_v44 = vpop.f32.mrf.mxu0 }
  0xb2   : > { %v766_v45 = vpop.f32.mrf.mxu1  ;;  %v638_v46 = vadd.f32 %v1353_v32, %v637_v44  ;;  %v790_v55 = vmul.f32 %v1351_v34, %v641_v50  ;;  %v1313_v44 = vld [vmem:[%s1571_s15 + $0x8] sm:$0xff]  }
  0xb3   : > { %v767_v47 = vadd.f32 %v1354_v33, %v766_v45 }
  0xb4   : > { %v789_v48 = vmul.f32 %v1351_v34, %v638_v46  ;;  %v1283_v46 = vunpack.c.l.bf16 %v1313_v44 }
  0xb5   : > { %v801_v49 = vmul.f32 %v1352_v35, %v767_v47  ;;  %v1284_v47 = vunpack.c.h.bf16 %v1313_v44 }
  0xb7   : > { %v809_v51 = vadd.f32 %v801_v49, %v789_v48  ;;  %v642_v52 = vpop.f32.mrf.mxu3 }
  0xb8   : > { %v643_v59 = vadd.f32 %v1353_v32, %v642_v52 }
  0xb9   : > { %v816_v53 = vpack.c.bf16 %v809_v51, %v808_v42 }
  0xba   : > { %v769_v54 = vpop.f32.mrf.mxu1  ;;  %v791_v63 = vmul.f32 %v1351_v34, %v643_v59 }
  0xbb   : > { %v770_v56 = vadd.f32 %v1354_v33, %v769_v54  ;;  %896 = vmatmul.bf16.vlgmr.msra.gmra.mxu2 %v816_v53  ;;  %v1314_v54 = vld [vmem:[%s1571_s15 + $0x10] sm:$0xff]  }
  0xbd   : > { %v802_v57 = vmul.f32 %v1352_v35, %v770_v56  ;;  %v1287_v56 = vunpack.c.l.bf16 %v1314_v54 }
  0xbf   : > { %v810_v58 = vadd.f32 %v802_v57, %v790_v55  ;;  %v645_v60 = vpop.f32.mrf.mxu3  ;;  %v1288_v57 = vunpack.c.h.bf16 %v1314_v54 }
  0xc0   : > { %v646_v1 = vadd.f32 %v1353_v32, %v645_v60 }
  0xc2   : > { %v771_v61 = vpop.f32.mrf.mxu1  ;;  %v792_v6 = vmul.f32 %v1351_v34, %v646_v1 }
  0xc3   : > { %v772_v62 = vadd.f32 %v1354_v33, %v771_v61 }
  0xc5   : > { %v803_v0 = vmul.f32 %v1352_v35, %v772_v62 }
  0xc7   : > { %v811_v2 = vadd.f32 %v803_v0, %v791_v63  ;;  %v647_v4 = vpop.f32.mrf.mxu3  ;;  %v1315_v0 = vld [vmem:[%s1571_s15 + $0x18] sm:$0xff]  }
  0xc8   : > { %v648_v10 = vadd.f32 %v1353_v32, %v647_v4 }
  0xc9   : > { %v817_v3 = vpack.c.bf16 %v811_v2, %v810_v58  ;;  %v1291_v2 = vunpack.c.l.bf16 %v1315_v0 }
  0xca   : > { %v774_v5 = vpop.f32.mrf.mxu1  ;;  %v793_v14 = vmul.f32 %v1351_v34, %v648_v10 }
  0xcb   : > { %v775_v7 = vadd.f32 %v1354_v33, %v774_v5  ;;  %901 = vmatmul.bf16.gmra.mxu2 %v817_v3  ;;  %v1292_v3 = vunpack.c.h.bf16 %v1315_v0 }
  0xcd   : > { %v804_v8 = vmul.f32 %v1352_v35, %v775_v7 }
  0xcf   : > { %v812_v9 = vadd.f32 %v804_v8, %v792_v6  ;;  %v650_v13 = vpop.f32.mrf.mxu3 }
  0xd0   : > { %v651_v16 = vadd.f32 %v1353_v32, %v650_v13 }
  0xd2   : > { %v776_v11 = vpop.f32.mrf.mxu1  ;;  %v794_v20 = vmul.f32 %v1351_v34, %v651_v16 }
  0xd3   : > { %v777_v12 = vadd.f32 %v1354_v33, %v776_v11 }
  0xd5   : > { %v805_v15 = vmul.f32 %v1352_v35, %v777_v12 }
  0xd7   : > { %v813_v17 = vadd.f32 %v805_v15, %v793_v14  ;;  %v652_v23 = vpop.f32.mrf.mxu3 }
  0xd8   : > { %v653_v25 = vadd.f32 %v1353_v32, %v652_v23  ;;  %v1355_v32 = vld [vmem:[%s1609_s10] ss:$0 sm:$0xff] }
  0xd9   : > { %v818_v18 = vpack.c.bf16 %v813_v17, %v812_v9 }
  0xda   : > { %v779_v19 = vpop.f32.mrf.mxu1  ;;  %v795_v28 = vmul.f32 %v1351_v34, %v653_v25  ;;  %v1279_v34 = vunpack.c.l.bf16 %v1278_v37 }
  0xdb   : > { %v780_v21 = vadd.f32 %v1354_v33, %v779_v19  ;;  %906 = vmatmul.bf16.gmra.mxu2 %v818_v18 }
  0xdd   : > { %v806_v22 = vmul.f32 %v1352_v35, %v780_v21 }
  0xdf   : > { %v814_v24 = vadd.f32 %v806_v22, %v794_v20 }
  0xe2   : > { %v781_v26 = vpop.f32.mrf.mxu1 }
  0xe3   : > { %v782_v27 = vadd.f32 %v1354_v33, %v781_v26 }
  0xe5   : > { %v807_v29 = vmul.f32 %v1352_v35, %v782_v27 }
  0xe7   : > { %v815_v30 = vadd.f32 %v807_v29, %v795_v28 }
  0xe9   : > { %v819_v31 = vpack.c.bf16 %v815_v30, %v814_v24 }
  0xeb   : > { %911 = vmatmul.bf16.gmra.mxu2 %v819_v31 }
 0x13e   : > { %v897_v36 = vpop.f32.mrf.mxu2 }
 0x13f   : > { %v898_v33 = vadd.f32 %v1355_v32, %v897_v36 }
 0x141   : > { %v933_v40 = vadd.f32 %v1279_v34, %v898_v33 }
 0x146   : > { %v899_v35 = vpop.f32.mrf.mxu2 }
 0x147   : > { %v900_v39 = vadd.f32 %v1355_v32, %v899_v35 }
 0x149   : > { %v934_v41 = vadd.f32 %v1280_v38, %v900_v39 }
 0x14b   : > { %v1296_v42 = vpack.c.bf16 %v934_v41, %v933_v40 }
 0x14d   : > { %1297 = vst [vmem:[%s1581_s24] sm:$0xff] %v1296_v42  }
 0x14e   : > { %v902_v43 = vpop.f32.mrf.mxu2 }
 0x14f   : > { %v903_v45 = vadd.f32 %v1355_v32, %v902_v43 }
 0x151   : > { %v935_v50 = vadd.f32 %v1283_v46, %v903_v45 }
 0x156   : > { %v904_v48 = vpop.f32.mrf.mxu2 }
 0x157   : > { %v905_v49 = vadd.f32 %v1355_v32, %v904_v48 }
 0x159   : > { %v936_v51 = vadd.f32 %v1284_v47, %v905_v49 }
 0x15b   : > { %v1301_v52 = vpack.c.bf16 %v936_v51, %v935_v50 }
 0x15d   : > { %1316 = vst [vmem:[%s1581_s24 + $0x8] sm:$0xff] %v1301_v52  }
 0x15e   : > { %v907_v53 = vpop.f32.mrf.mxu2 }
 0x15f   : > { %v908_v55 = vadd.f32 %v1355_v32, %v907_v53 }
 0x161   : > { %v937_v60 = vadd.f32 %v1287_v56, %v908_v55 }
 0x166   : > { %v909_v58 = vpop.f32.mrf.mxu2 }
 0x167   : > { %v910_v59 = vadd.f32 %v1355_v32, %v909_v58 }
 0x169   : > { %v938_v61 = vadd.f32 %v1288_v57, %v910_v59 }
 0x16b   : > { %v1306_v62 = vpack.c.bf16 %v938_v61, %v937_v60 }
 0x16d   : > { %1317 = vst [vmem:[%s1581_s24 + $0x10] sm:$0xff] %v1306_v62  }
 0x16e   : > { %v912_v63 = vpop.f32.mrf.mxu2 }
 0x16f   : > { %v913_v1 = vadd.f32 %v1355_v32, %v912_v63 }
 0x171   : > { %v939_v6 = vadd.f32 %v1291_v2, %v913_v1 }
 0x176   : > { %v914_v4 = vpop.f32.mrf.mxu2 }
 0x177   : > { %v915_v5 = vadd.f32 %v1355_v32, %v914_v4 }
 0x179   : > { %v940_v7 = vadd.f32 %v1292_v3, %v915_v5 }
 0x17b   : > { %v1311_v8 = vpack.c.bf16 %v940_v7, %v939_v6 }
 0x17d   : > { %1318 = vst [vmem:[%s1581_s24 + $0x18] sm:$0xff] %v1311_v8  }
 0x17e PF: > { %s21_s19 = sadd.s32 1, %s1378_s19   ;;  %s1611_s17 = smov %s1374_s18 }
 0x17f   : > { %p18_p5 = scmp.ge.s32.totalorder %s21_s19, 4   ;;  %s1612_s18 = smov %s1614_s20 }
 0x181   :  { %20 = sbr.rel (!%p18_p5) target bundleno = 2 (0x2), region = 106 }

// kernel: _lambda_.12
= control target key start
LH: loop header
LB: loop body
LE: loop exit
PB: predicated region body
PF: predicated region fallthrough
CT: control target
= control target key end

     0   :  { %s3049_s0 = inlined_call_operand.vmem [shape: bf16[128,128], index: 0, kind: input, shape index: {}]   ;;  %s3050_s1 = inlined_call_operand.vmem [shape: f32[1,128], index: 1, kind: input, shape index: {}]   ;;  %s3051_s2 = inlined_call_operand.vmem [shape: f32[1,128], index: 2, kind: input, shape index: {}]   ;;  %s3052_s3 = inlined_call_operand.vmem [shape: bf16[128,128], index: 3, kind: input, shape index: {}]   ;;  %s3053_s4 = inlined_call_operand.vmem [shape: f32[1,128], index: 4, kind: input, shape index: {}]   ;;  %s3054_s5 = inlined_call_operand.vmem [shape: bf16[128,128], index: 5, kind: input, shape index: {}]   ;;  %s3055_s6 = inlined_call_operand.vmem [shape: f32[1,128], index: 6, kind: input, shape index: {}]   ;;  %s3056_s7 = inlined_call_operand.vmem [shape: bf16[128,128], index: 7, kind: output, shape index: {}]  }
   0x1   :  { %v1643_v0 = vld [vmem:[%s3049_s0 + $0x20] sm:$0xff]   ;;  %v1644_v8 = vld [vmem:[%s3049_s0 + $0x28] sm:$0xff]   ;;  %v1645_v19 = vld [vmem:[%s3049_s0 + $0x30] sm:$0xff]  }
   0x2   :  { %v1569_v1 = vld [vmem:[%s3049_s0] sm:$0xff]   ;;  %v1784_v2 = vunpack.c.l.bf16 %v1643_v0  ;;  %v1792_v5 = vunpack.c.h.bf16 %v1643_v0  ;;  %v1805_v10 = vunpack.c.l.bf16 %v1644_v8  ;;  %v1810_v12 = vunpack.c.h.bf16 %v1644_v8  ;;  %v1640_v14 = vld [vmem:[%s3049_s0 + $0x8] sm:$0xff]   ;;  %v1641_v23 = vld [vmem:[%s3049_s0 + $0x10] sm:$0xff]  }
   0x3   :  { %v1786_v3 = vunpack.c.l.bf16 %v1569_v1  ;;  %v1794_v6 = vunpack.c.h.bf16 %v1569_v1  ;;  %v1820_v16 = vunpack.c.l.bf16 %v1640_v14  ;;  %v1824_v18 = vunpack.c.h.bf16 %v1640_v14  ;;  %v1646_v29 = vld [vmem:[%s3049_s0 + $0x38] sm:$0xff]   ;;  %v1558_v41 = vld [vmem:[%s3052_s3 + $0x30] sm:$0xff]  ;;  %v1557_v42 = vld [vmem:[%s3052_s3 + $0x28] sm:$0xff] }
   0x4   :  { %3091 = vst [vmem:[#allocation2_spill] sm:$0xff] %v1784_v2  ;;  %74 = vadd.xlane.f32.xlu0 %v1784_v2  ;;  %v114_v4 = vmul.f32 %v1784_v2, %v1784_v2  ;;  %v115_v7 = vmul.f32 %v1792_v5, %v1792_v5  ;;  %v117_v13 = vmul.f32 %v1810_v12, %v1810_v12  ;;  %v1833_v21 = vunpack.c.h.bf16 %v1645_v19  ;;  %v1642_v34 = vld [vmem:[%s3049_s0 + $0x18] sm:$0xff]   ;;  %v1556_v43 = vld [vmem:[%s3052_s3 + $0x20] sm:$0xff]  ;;  %v1554_v45 = vld [vmem:[%s3052_s3 + $0x10] sm:$0xff] }
   0x5   :  { %3092 = vst [vmem:[#allocation3_spill] sm:$0xff] %v1786_v3  ;;  %58 = vadd.xlane.f32.xlu2 %v1786_v3  ;;  %v106_v9 = vmul.f32 %v1786_v3, %v1786_v3  ;;  %v107_v11 = vmul.f32 %v1794_v6, %v1794_v6  ;;  %v116_v15 = vmul.f32 %v1805_v10, %v1805_v10  ;;  %v1835_v22 = vunpack.c.l.bf16 %v1645_v19  ;;  %v1559_v40 = vld [vmem:[%s3052_s3 + $0x38] sm:$0xff]  ;;  %v1553_v52 = vld [vmem:[%s3052_s3 + $0x8] sm:$0xff]  ;;  %v1552_v55 = vld [vmem:[%s3052_s3] sm:$0xff] }
   0x6   :  { %138 = vadd.xlane.f32.xlu1 %v114_v4  ;;  %3093 = vst [vmem:[#allocation4_spill] sm:$0xff] %v1792_v5  ;;  %v108_v17 = vmul.f32 %v1820_v16, %v1820_v16  ;;  %v109_v20 = vmul.f32 %v1824_v18, %v1824_v18  ;;  %v1844_v25 = vunpack.c.l.bf16 %v1641_v23  ;;  %v119_v26 = vmul.f32 %v1833_v21, %v1833_v21  ;;  %v1555_v44 = vld [vmem:[%s3052_s3 + $0x18] sm:$0xff] }
   0x7   :  { %3094 = vst [vmem:[#allocation5_spill] sm:$0xff] %v1794_v6  ;;  %v118_v24 = vmul.f32 %v1835_v22, %v1835_v22  ;;  %v1849_v27 = vunpack.c.h.bf16 %v1641_v23  ;;  %v1859_v31 = vunpack.c.l.bf16 %v1646_v29  ;;  %v1863_v33 = vunpack.c.h.bf16 %v1646_v29  ;;  %1654 = vmatpush.bf16.msra.mxu2 %v1559_v40  ;;  %526 = vmatpush.bf16.msra.mxu0 %v1559_v40 }
   0x8   :  { %3095 = vst [vmem:[#allocation6_spill] sm:$0xff] %v1805_v10  ;;  %v110_v30 = vmul.f32 %v1844_v25, %v1844_v25  ;;  %v1872_v36 = vunpack.c.h.bf16 %v1642_v34  ;;  %v1874_v37 = vunpack.c.l.bf16 %v1642_v34 }
   0x9   :  { %3096 = vst [vmem:[#allocation7_spill] sm:$0xff] %v1810_v12  ;;  %v111_v28 = vmul.f32 %v1849_v27, %v1849_v27  ;;  %v120_v32 = vmul.f32 %v1859_v31, %v1859_v31  ;;  %v121_v35 = vmul.f32 %v1863_v33, %v1863_v33 }
   0xa   :  { %3097 = vst [vmem:[#allocation8_spill] sm:$0xff] %v1820_v16  ;;  %v112_v38 = vmul.f32 %v1874_v37, %v1874_v37  ;;  %v113_v39 = vmul.f32 %v1872_v36, %v1872_v36 }
   0xb   :  { %3098 = vst [vmem:[#allocation9_spill] sm:$0xff] %v1824_v18  ;;  %1655 = vmatpush.bf16.msra.mxu2 %v1558_v41  ;;  %527 = vmatpush.bf16.msra.mxu0 %v1558_v41 }
   0xc   :  { %76 = vadd.xlane.f32.xlu0 %v1792_v5  ;;  %3099 = vst [vmem:[#allocation10_spill] sm:$0xff] %v1833_v21 }
   0xd   :  { %60 = vadd.xlane.f32.xlu2 %v1794_v6  ;;  %3100 = vst [vmem:[#allocation11_spill] sm:$0xff] %v1835_v22 }
   0xe   :  { %140 = vadd.xlane.f32.xlu1 %v115_v7  ;;  %3101 = vst [vmem:[#allocation12_spill] sm:$0xff] %v1844_v25 }
   0xf   :  { %3102 = vst [vmem:[#allocation13_spill] sm:$0xff] %v1849_v27  ;;  %1656 = vmatpush.bf16.msra.mxu2 %v1557_v42  ;;  %528 = vmatpush.bf16.msra.mxu0 %v1557_v42 }
  0x10   :  { %3103 = vst [vmem:[#allocation14_spill] sm:$0xff] %v1859_v31 }
  0x11   :  { %3104 = vst [vmem:[#allocation15_spill] sm:$0xff] %v1863_v33 }
  0x12   :  { %3105 = vst [vmem:[#allocation16_spill] sm:$0xff] %v1872_v36 }
  0x13   :  { %3106 = vst [vmem:[#allocation17_spill] sm:$0xff] %v1874_v37  ;;  %1657 = vmatpush.bf16.msra.mxu2 %v1556_v43  ;;  %529 = vmatpush.bf16.msra.mxu0 %v1556_v43 }
  0x14   :  { %122 = vadd.xlane.f32.xlu0 %v106_v9 }
  0x15   :  { %78 = vadd.xlane.f32.xlu2 %v1805_v10 }
  0x16   :  { %124 = vadd.xlane.f32.xlu1 %v107_v11 }
  0x17   :  { %1658 = vmatpush.bf16.msra.mxu2 %v1555_v44  ;;  %530 = vmatpush.bf16.msra.mxu0 %v1555_v44 }
  0x1b   :  { %1659 = vmatpush.bf16.msra.mxu2 %v1554_v45  ;;  %531 = vmatpush.bf16.msra.mxu0 %v1554_v45 }
  0x1c   :  { %80 = vadd.xlane.f32.xlu0 %v1810_v12 }
  0x1d   :  { %144 = vadd.xlane.f32.xlu2 %v117_v13 }
  0x1e   :  { %142 = vadd.xlane.f32.xlu1 %v116_v15 }
  0x1f   :  { %1660 = vmatpush.bf16.msra.mxu2 %v1553_v52  ;;  %532 = vmatpush.bf16.msra.mxu0 %v1553_v52 }
  0x23   :  { %1661 = vmatpush.bf16.msra.mxu2 %v1552_v55  ;;  %533 = vmatpush.bf16.msra.mxu0 %v1552_v55 }
  0x24   :  { %62 = vadd.xlane.f32.xlu0 %v1820_v16 }
  0x25   :  { %126 = vadd.xlane.f32.xlu2 %v108_v17 }
  0x26   :  { %64 = vadd.xlane.f32.xlu1 %v1824_v18 }
  0x2c   :  { %128 = vadd.xlane.f32.xlu0 %v109_v20 }
  0x2d   :  { %84 = vadd.xlane.f32.xlu2 %v1833_v21 }
  0x2e   :  { %82 = vadd.xlane.f32.xlu1 %v1835_v22 }
  0x34   :  { %146 = vadd.xlane.f32.xlu0 %v118_v24 }
  0x35   :  { %66 = vadd.xlane.f32.xlu2 %v1844_v25 }
  0x36   :  { %148 = vadd.xlane.f32.xlu1 %v119_v26 }
  0x3c   :  { %68 = vadd.xlane.f32.xlu0 %v1849_v27 }
  0x3d   :  { %132 = vadd.xlane.f32.xlu2 %v111_v28 }
  0x3e   :  { %130 = vadd.xlane.f32.xlu1 %v110_v30 }
  0x44   :  { %86 = vadd.xlane.f32.xlu0 %v1859_v31 }
  0x45   :  { %150 = vadd.xlane.f32.xlu2 %v120_v32 }
  0x46   :  { %88 = vadd.xlane.f32.xlu1 %v1863_v33 }
  0x4c   :  { %152 = vadd.xlane.f32.xlu0 %v121_v35 }
  0x4d   :  { %72 = vadd.xlane.f32.xlu2 %v1872_v36 }
  0x4e   :  { %70 = vadd.xlane.f32.xlu1 %v1874_v37 }
  0x54   :  { %134 = vadd.xlane.f32.xlu0 %v112_v38 }
  0x56   :  { %136 = vadd.xlane.f32.xlu1 %v113_v39 }
  0x77   :  { %v75_v46 = vpop.xlane.xlu0 %74 }
  0x78   :  { %v59_v47 = vpop.xlane.xlu2 %58  ;;  %v1900_v48 = vmul.f32 0.03125, %v75_v46 }
  0x79   :  { %v139_v49 = vpop.xlane.xlu1 %138  ;;  %v1914_v62 = vmul.f32 0.03125, %v59_v47 }
  0x7a   :  { %v178_v50 = vmul.f32 %v1900_v48, %v1900_v48  ;;  %v162_v51 = vmul.f32 0.03125, %v139_v49  ;;  %v210_v55 = vsub.f32 %v1784_v2, %v1900_v48 }
  0x7b   :  { %v170_v11 = vmul.f32 %v1914_v62, %v1914_v62 }
  0x7c   :  { %v194_v53 = vsub.f32 %v162_v51, %v178_v50 }
  0x7e   :  { %v226_v54 = vadd.f32 1e-05, %v194_v53 }
  0x7f   :  { %v77_v56 = vpop.xlane.xlu0 %76 }
  0x80   :  { %v61_v57 = vpop.xlane.xlu2 %60  ;;  %1674 = vrsqrt.f32 %v226_v54  ;;  %v1910_v58 = vmul.f32 0.03125, %v77_v56  ;;  %vm320_vm1 = vweird.f32 %v226_v54 }
  0x81   :  { %v141_v59 = vpop.xlane.xlu1 %140  ;;  %v1916_v0 = vmul.f32 0.03125, %v61_v57 }
  0x82   :  { %v179_v60 = vmul.f32 %v1910_v58, %v1910_v58  ;;  %v163_v61 = vmul.f32 0.03125, %v141_v59 }
  0x83   :  { %v171_v13 = vmul.f32 %v1916_v0, %v1916_v0 }
  0x84   :  { %v195_v63 = vsub.f32 %v163_v61, %v179_v60 }
  0x86   :  { %v1675_v1 = vpop.eup %1674  ;;  %v227_v4 = vadd.f32 1e-05, %v195_v63 }
  0x87   :  { %v315_v7 = vmul.f32 %v1675_v1, %v226_v54  ;;  %v123_v8 = vpop.xlane.xlu0 %122  ;;  %vm321_vm0 = vweird.f32 %v1675_v1 }
  0x88   :  { %v79_v9 = vpop.xlane.xlu2 %78  ;;  %1676 = vrsqrt.f32 %v227_v4  ;;  %v154_v14 = vmul.f32 0.03125, %v123_v8  ;;  %vm1936_vm2 = vmor %vm320_vm1, %vm321_vm0  ;;  %vm330_vm4 = vweird.f32 %v227_v4 }
  0x89   :  { %v316_v15 = vmul.f32 %v1675_v1, %v315_v7  ;;  %v125_v17 = vpop.xlane.xlu1 %124  ;;  %v1922_v24 = vmul.f32 0.03125, %v79_v9  ;;  %v1960_v9 = vld [vmem:[%s3050_s1] ss:$0 sm:$0xff] }
  0x8a   :  { %v186_v19 = vsub.f32 %v154_v14, %v170_v11  ;;  %v155_v20 = vmul.f32 0.03125, %v125_v17  ;;  %v211_v11 = vsub.f32 %v1792_v5, %v1910_v58 }
  0x8b   :  { %v317_v23 = vmul.f32 0.5, %v316_v15  ;;  %v180_v35 = vmul.f32 %v1922_v24, %v1922_v24 }
  0x8c   :  { %v1924_v26 = vadd.f32 1e-05, %v186_v19  ;;  %v187_v28 = vsub.f32 %v155_v20, %v171_v13 }
  0x8d   :  { %v318_v29 = vsub.f32 1.5, %v317_v23 }
  0x8e   :  { %v1677_v30 = vpop.eup %1676  ;;  %1678 = vrsqrt.f32 %v1924_v26  ;;  %v1927_v32 = vadd.f32 1e-05, %v187_v28  ;;  %vm240_vm7 = vweird.f32 %v1924_v26 }
  0x8f   :  { %v325_v34 = vmul.f32 %v1677_v30, %v227_v4  ;;  %v81_v38 = vpop.xlane.xlu0 %80  ;;  %v319_v40 = vmul.f32 %v1675_v1, %v318_v29  ;;  %vm331_vm3 = vweird.f32 %v1677_v30 }
  0x90   :  { %v145_v39 = vpop.xlane.xlu2 %144  ;;  %1680 = vrsqrt.f32 %v1927_v32  ;;  %v1932_v41 = vmul.f32 0.03125, %v81_v38  ;;  %vm332_vm5 = vmor %vm330_vm4, %vm331_vm3  ;;  %vm250_vm10 = vweird.f32 %v1927_v32 }
  0x91   :  { %v165_v42 = vmul.f32 0.03125, %v145_v39  ;;  %v326_v43 = vmul.f32 %v1677_v30, %v325_v34  ;;  %v143_v44 = vpop.xlane.xlu1 %142  ;;  %v323_v53 = vsel %vm1936_vm2, %v1675_v1, %v319_v40  ;;  %v1975_v34 = vld [vmem:[%s3051_s2] ss:$0 sm:$0xff] }
  0x92   :  { %v181_v45 = vmul.f32 %v1932_v41, %v1932_v41  ;;  %v164_v46 = vmul.f32 0.03125, %v143_v44  ;;  %v402_v48 = vmul.f32 %v323_v53, %v210_v55  ;;  %v213_v55 = vsub.f32 %v1810_v12, %v1932_v41 }
  0x93   :  { %v327_v49 = vmul.f32 0.5, %v326_v43 }
  0x94   :  { %v1940_v50 = vpop.eup %1678  ;;  %v196_v51 = vsub.f32 %v164_v46, %v180_v35  ;;  %v197_v52 = vsub.f32 %v165_v42, %v181_v45  ;;  %v422_v4 = vmul.f32 %v1960_v9, %v402_v48 }
  0x95   :  { %v328_v54 = vsub.f32 1.5, %v327_v49  ;;  %v235_v56 = vmul.f32 %v1940_v50, %v1924_v26  ;;  %vm241_vm6 = vweird.f32 %v1940_v50 }
  0x96   :  { %v1948_v57 = vpop.eup %1680  ;;  %v1950_v59 = vadd.f32 1e-05, %v196_v51  ;;  %v1952_v60 = vadd.f32 1e-05, %v197_v52  ;;  %v1994_v51 = vadd.f32 %v1975_v34, %v422_v4  ;;  %vm2001_vm9 = vmor %vm240_vm7, %vm241_vm6 }
  0x97   :  { %v329_v61 = vmul.f32 %v1677_v30, %v328_v54  ;;  %v236_v63 = vmul.f32 %v1940_v50, %v235_v56  ;;  %v245_v1 = vmul.f32 %v1948_v57, %v1927_v32  ;;  %v63_v7 = vpop.xlane.xlu0 %62  ;;  %vm251_vm8 = vweird.f32 %v1948_v57 }
  0x98   :  { %v127_v8 = vpop.xlane.xlu2 %126  ;;  %1682 = vrsqrt.f32 %v1950_v59  ;;  %v1965_v13 = vmul.f32 0.03125, %v63_v7  ;;  %3109 = vst [vmem:[#allocation18_spill] sm:$0xff] %v1994_v51  ;;  %vm2009_vm11 = vmor %vm250_vm10, %vm251_vm8  ;;  %v202_v32 = vsub.f32 %v1786_v3, %v1914_v62  ;;  %vm340_vm13 = vweird.f32 %v1950_v59 }
  0x99   :  { %v237_v14 = vmul.f32 0.5, %v236_v63  ;;  %v246_v15 = vmul.f32 %v1948_v57, %v245_v1  ;;  %1684 = vrsqrt.f32 %v1952_v60  ;;  %v65_v17 = vpop.xlane.xlu1 %64  ;;  %v156_v19 = vmul.f32 0.03125, %v127_v8 }
  0x9a   :  { %v172_v20 = vmul.f32 %v1965_v13, %v1965_v13  ;;  %v333_v23 = vsel %vm332_vm5, %v1677_v30, %v329_v61  ;;  %v1978_v39 = vmul.f32 0.03125, %v65_v17  ;;  %vm350_vm0 = vweird.f32 %v1952_v60 }
  0x9b   :  { %v238_v28 = vsub.f32 1.5, %v237_v14  ;;  %v247_v29 = vmul.f32 0.5, %v246_v15  ;;  %v403_v58 = vmul.f32 %v333_v23, %v211_v11  ;;  %v203_v11 = vsub.f32 %v1794_v6, %v1916_v0 }
  0x9c   :  { %v188_v35 = vsub.f32 %v156_v19, %v172_v20  ;;  %v173_v56 = vmul.f32 %v1978_v39, %v1978_v39  ;;  %v212_v0 = vsub.f32 %v1805_v10, %v1922_v24 }
  0x9d   :  { %v248_v38 = vsub.f32 1.5, %v247_v29  ;;  %v423_v40 = vmul.f32 %v1960_v9, %v403_v58  ;;  %v239_v30 = vmul.f32 %v1940_v50, %v238_v28 }
  0x9e   :  { %v1981_v42 = vpop.eup %1682  ;;  %v1986_v43 = vadd.f32 1e-05, %v188_v35 }
  0x9f   :  { %v1988_v44 = vpop.eup %1684  ;;  %v249_v45 = vmul.f32 %v1948_v57, %v248_v38  ;;  %v335_v46 = vmul.f32 %v1981_v42, %v1950_v59  ;;  %v129_v47 = vpop.xlane.xlu0 %128  ;;  %v1997_v52 = vadd.f32 %v1975_v34, %v423_v40  ;;  %v243_v8 = vsel %vm2001_vm9, %v1940_v50, %v239_v30 }
  0xa0   :  { %v85_v49 = vpop.xlane.xlu2 %84  ;;  %v345_v53 = vmul.f32 %v1988_v44, %v1952_v60  ;;  %1686 = vrsqrt.f32 %v1986_v43  ;;  %v157_v61 = vmul.f32 0.03125, %v129_v47  ;;  %v394_v20 = vmul.f32 %v243_v8, %v202_v32 }
  0xa1   :  { %3110 = vst [vmem:[#allocation19_spill] sm:$0xff] %v1997_v52  ;;  %v336_v54 = vmul.f32 %v1981_v42, %v335_v46  ;;  %v83_v63 = vpop.xlane.xlu1 %82  ;;  %v454_v1 = vpack.c.bf16 %v1997_v52, %v1994_v51  ;;  %v253_v48 = vsel %vm2009_vm11, %v1948_v57, %v249_v45  ;;  %v2031_v62 = vmul.f32 0.03125, %v85_v49 }
  0xa2   :  { %v346_v7 = vmul.f32 %v1988_v44, %v345_v53  ;;  %v189_v15 = vsub.f32 %v157_v61, %v173_v56  ;;  %v2029_v19 = vmul.f32 0.03125, %v83_v63  ;;  %vm341_vm12 = vweird.f32 %v1981_v42 }
  0xa3   :  { %v337_v14 = vmul.f32 0.5, %v336_v54  ;;  %554 = vmatmul.bf16.vlgmr.msra.gmra.mxu2 %v454_v1  ;;  %v395_v28 = vmul.f32 %v253_v48, %v203_v11  ;;  %v414_v58 = vmul.f32 %v1960_v9, %v394_v20  ;;  %vm351_vm14 = vweird.f32 %v1988_v44  ;;  %vm2047_vm15 = vmor %vm340_vm13, %vm341_vm12 }
  0xa4   :  { %v347_v17 = vmul.f32 0.5, %v346_v7  ;;  %v2034_v50 = vadd.f32 1e-05, %v189_v15  ;;  %v182_v59 = vmul.f32 %v2029_v19, %v2029_v19  ;;  %v183_v45 = vmul.f32 %v2031_v62, %v2031_v62  ;;  %vm352_vm1 = vmor %vm350_vm0, %vm351_vm14 }
  0xa5   :  { %v338_v23 = vsub.f32 1.5, %v337_v14  ;;  %v415_v26 = vmul.f32 %v1960_v9, %v395_v28  ;;  %v2067_v61 = vadd.f32 %v1975_v34, %v414_v58  ;;  %vm260_vm3 = vweird.f32 %v1986_v43 }
  0xa6   :  { %v2036_v29 = vpop.eup %1686  ;;  %v348_v57 = vsub.f32 1.5, %v347_v17  ;;  %1688 = vrsqrt.f32 %v2034_v50  ;;  %vm270_vm6 = vweird.f32 %v2034_v50 }
  0xa7   :  { %v339_v4 = vmul.f32 %v1981_v42, %v338_v23  ;;  %v255_v35 = vmul.f32 %v2036_v29, %v1986_v43  ;;  %v147_v38 = vpop.xlane.xlu0 %146  ;;  %3117 = vst [vmem:[#allocation20_spill] sm:$0xff] %v2067_v61  ;;  %v2070_v63 = vadd.f32 %v1975_v34, %v415_v26  ;;  %vm261_vm2 = vweird.f32 %v2036_v29 }
  0xa8   :  { %v67_v40 = vpop.xlane.xlu2 %66  ;;  %v349_v24 = vmul.f32 %v1988_v44, %v348_v57  ;;  %v166_v46 = vmul.f32 0.03125, %v147_v38  ;;  %vm2101_vm4 = vmor %vm260_vm3, %vm261_vm2  ;;  %v204_v26 = vsub.f32 %v1820_v16, %v1965_v13 }
  0xa9   :  { %v256_v47 = vmul.f32 %v2036_v29, %v255_v35  ;;  %v149_v49 = vpop.xlane.xlu1 %148  ;;  %v343_v53 = vsel %vm2047_vm15, %v1981_v42, %v339_v4  ;;  %3118 = vst [vmem:[#allocation21_spill] sm:$0xff] %v2070_v63  ;;  %v2075_v8 = vmul.f32 0.03125, %v67_v40  ;;  %v450_v14 = vpack.c.bf16 %v2070_v63, %v2067_v61 }
  0xaa   :  { %v198_v54 = vsub.f32 %v166_v46, %v182_v59  ;;  %v167_v56 = vmul.f32 0.03125, %v149_v49  ;;  %v353_v1 = vsel %vm352_vm1, %v1988_v44, %v349_v24  ;;  %v404_v32 = vmul.f32 %v343_v53, %v212_v0 }
  0xab   :  { %v257_v60 = vmul.f32 0.5, %v256_v47  ;;  %v405_v41 = vmul.f32 %v353_v1, %v213_v55  ;;  %534 = vmatmul.bf16.vlgmr.msra.gmra.mxu0 %v450_v14  ;;  %v174_v4 = vmul.f32 %v2075_v8, %v2075_v8 }
  0xac   :  { %v2073_v7 = vadd.f32 1e-05, %v198_v54  ;;  %v199_v42 = vsub.f32 %v167_v56, %v183_v45  ;;  %v1689_v48 = vpop.eup %1688  ;;  %v424_v15 = vmul.f32 %v1960_v9, %v404_v32 }
  0xad   :  { %v258_v11 = vsub.f32 1.5, %v257_v60  ;;  %v265_v17 = vmul.f32 %v1689_v48, %v2034_v50  ;;  %v425_v0 = vmul.f32 %v1960_v9, %v405_v41  ;;  %vm271_vm5 = vweird.f32 %v1689_v48 }
  0xae   :  { %1690 = vrsqrt.f32 %v2073_v7  ;;  %v2084_v20 = vadd.f32 1e-05, %v199_v42  ;;  %v2088_v57 = vadd.f32 %v1975_v34, %v424_v15  ;;  %v205_v15 = vsub.f32 %v1824_v18, %v1978_v39  ;;  %vm272_vm7 = vmor %vm270_vm6, %vm271_vm5 }
  0xaf   :  { %v259_v44 = vmul.f32 %v2036_v29, %v258_v11  ;;  %v69_v23 = vpop.xlane.xlu0 %68  ;;  %v266_v58 = vmul.f32 %v1689_v48, %v265_v17  ;;  %v2097_v30 = vadd.f32 %v1975_v34, %v425_v0  ;;  %vm360_vm8 = vweird.f32 %v2073_v7 }
  0xb0   :  { %v133_v28 = vpop.xlane.xlu2 %132  ;;  %3119 = vst [vmem:[#allocation22_spill] sm:$0xff] %v2088_v57  ;;  %v2092_v35 = vmul.f32 0.03125, %v69_v23  ;;  %1692 = vrsqrt.f32 %v2084_v20  ;;  %vm370_vm12 = vweird.f32 %v2084_v20 }
  0xb1   :  { %v159_v38 = vmul.f32 0.03125, %v133_v28  ;;  %v131_v40 = vpop.xlane.xlu1 %130  ;;  %3120 = vst [vmem:[#allocation23_spill] sm:$0xff] %v2097_v30  ;;  %v267_v59 = vmul.f32 0.5, %v266_v58  ;;  %v455_v43 = vpack.c.bf16 %v2097_v30, %v2088_v57  ;;  %v263_v47 = vsel %vm2101_vm4, %v2036_v29, %v259_v44 }
  0xb2   :  { %v175_v45 = vmul.f32 %v2092_v35, %v2092_v35  ;;  %v158_v46 = vmul.f32 0.03125, %v131_v40  ;;  %v396_v42 = vmul.f32 %v263_v47, %v204_v26 }
  0xb3   :  { %v268_v53 = vsub.f32 1.5, %v267_v59  ;;  %559 = vmatmul.bf16.gmra.mxu2 %v455_v43 }
  0xb4   :  { %v2112_v49 = vpop.eup %1690  ;;  %v190_v55 = vsub.f32 %v158_v46, %v174_v4  ;;  %v191_v54 = vsub.f32 %v159_v38, %v175_v45  ;;  %v416_v58 = vmul.f32 %v1960_v9, %v396_v42 }
  0xb5   :  { %v355_v56 = vmul.f32 %v2112_v49, %v2073_v7  ;;  %v269_v60 = vmul.f32 %v1689_v48, %v268_v53  ;;  %vm361_vm9 = vweird.f32 %v2112_v49 }
  0xb6   :  { %v2118_v1 = vadd.f32 1e-05, %v190_v55  ;;  %v2120_v32 = vadd.f32 1e-05, %v191_v54  ;;  %v2122_v29 = vpop.eup %1692  ;;  %v2148_v43 = vadd.f32 %v1975_v34, %v416_v58  ;;  %vm2167_vm11 = vmor %vm360_vm8, %vm361_vm9 }
  0xb7   :  { %v356_v41 = vmul.f32 %v2112_v49, %v355_v56  ;;  %v87_v11 = vpop.xlane.xlu0 %86  ;;  %v365_v14 = vmul.f32 %v2122_v29, %v2084_v20  ;;  %v273_v50 = vsel %vm272_vm7, %v1689_v48, %v269_v60  ;;  %vm371_vm10 = vweird.f32 %v2122_v29 }
  0xb8   :  { %v151_v13 = vpop.xlane.xlu2 %150  ;;  %1694 = vrsqrt.f32 %v2118_v1  ;;  %v2133_v44 = vmul.f32 0.03125, %v87_v11  ;;  %v397_v40 = vmul.f32 %v273_v50, %v205_v15  ;;  %3123 = vst [vmem:[#allocation24_spill] sm:$0xff] %v2148_v43  ;;  %vm2180_vm13 = vmor %vm370_vm12, %vm371_vm10  ;;  %vm280_vm14 = vweird.f32 %v2118_v1 }
  0xb9   :  { %v357_v17 = vmul.f32 0.5, %v356_v41  ;;  %1696 = vrsqrt.f32 %v2120_v32  ;;  %v89_v23 = vpop.xlane.xlu1 %88  ;;  %v366_v28 = vmul.f32 %v2122_v29, %v365_v14  ;;  %v168_v0 = vmul.f32 0.03125, %v151_v13 }
  0xba   :  { %v184_v38 = vmul.f32 %v2133_v44, %v2133_v44  ;;  %v2139_v24 = vmul.f32 0.03125, %v89_v23  ;;  %v417_v45 = vmul.f32 %v1960_v9, %v397_v40  ;;  %vm290_vm1 = vweird.f32 %v2120_v32 }
  0xbb   :  { %v358_v4 = vsub.f32 1.5, %v357_v17  ;;  %v367_v39 = vmul.f32 0.5, %v366_v28  ;;  %v214_v28 = vsub.f32 %v1835_v22, %v2029_v19 }
  0xbc   :  { %v200_v59 = vsub.f32 %v168_v0, %v184_v38  ;;  %v2158_v56 = vadd.f32 %v1975_v34, %v417_v45  ;;  %v185_v41 = vmul.f32 %v2139_v24, %v2139_v24  ;;  %v215_v38 = vsub.f32 %v1833_v21, %v2031_v62 }
  0xbd   :  { %v368_v48 = vsub.f32 1.5, %v367_v39  ;;  %v359_v26 = vmul.f32 %v2112_v49, %v358_v4 }
  0xbe   :  { %v2143_v46 = vpop.eup %1694  ;;  %v2155_v55 = vadd.f32 1e-05, %v200_v59  ;;  %3124 = vst [vmem:[#allocation25_spill] sm:$0xff] %v2158_v56  ;;  %v451_v15 = vpack.c.bf16 %v2158_v56, %v2148_v43 }
  0xbf   :  { %v2150_v47 = vpop.eup %1696  ;;  %v275_v53 = vmul.f32 %v2143_v46, %v2118_v1  ;;  %v153_v54 = vpop.xlane.xlu0 %152  ;;  %v369_v60 = vmul.f32 %v2122_v29, %v368_v48  ;;  %v363_v4 = vsel %vm2167_vm11, %v2112_v49, %v359_v26  ;;  %vm281_vm15 = vweird.f32 %v2143_v46 }
  0xc0   :  { %v285_v42 = vmul.f32 %v2150_v47, %v2120_v32  ;;  %v169_v11 = vmul.f32 0.03125, %v153_v54  ;;  %1698 = vrsqrt.f32 %v2155_v55  ;;  %v73_v23 = vpop.xlane.xlu2 %72  ;;  %539 = vmatmul.bf16.gmra.mxu0 %v451_v15  ;;  %v406_v48 = vmul.f32 %v363_v4, %v214_v28  ;;  %vm2208_vm2 = vmor %vm280_vm14, %vm281_vm15 }
  0xc1   :  { %v276_v14 = vmul.f32 %v2143_v46, %v275_v53  ;;  %v71_v17 = vpop.xlane.xlu1 %70  ;;  %v373_v19 = vsel %vm2180_vm13, %v2122_v29, %v369_v60  ;;  %v2197_v59 = vmul.f32 0.03125, %v73_v23  ;;  %vm291_vm0 = vweird.f32 %v2150_v47 }
  0xc2   :  { %v286_v20 = vmul.f32 %v2150_v47, %v285_v42  ;;  %v201_v0 = vsub.f32 %v169_v11, %v185_v41  ;;  %v2185_v58 = vmul.f32 0.03125, %v71_v17  ;;  %v407_v49 = vmul.f32 %v373_v19, %v215_v38  ;;  %vm292_vm3 = vmor %vm290_vm1, %vm291_vm0 }
  0xc3   :  { %v277_v50 = vmul.f32 0.5, %v276_v14  ;;  %v426_v1 = vmul.f32 %v1960_v9, %v406_v48  ;;  %v177_v11 = vmul.f32 %v2197_v59, %v2197_v59  ;;  %v206_v32 = vsub.f32 %v1844_v25, %v2075_v8 }
  0xc4   :  { %v287_v40 = vmul.f32 0.5, %v286_v20  ;;  %v2195_v39 = vadd.f32 1e-05, %v201_v0  ;;  %v176_v26 = vmul.f32 %v2185_v58, %v2185_v58  ;;  %v207_v14 = vsub.f32 %v1849_v27, %v2092_v35 }
  0xc5   :  { %v278_v45 = vsub.f32 1.5, %v277_v50  ;;  %v427_v17 = vmul.f32 %v1960_v9, %v407_v49  ;;  %v2228_v8 = vadd.f32 %v1975_v34, %v426_v1  ;;  %vm380_vm5 = vweird.f32 %v2155_v55 }
  0xc6   :  { %v288_v53 = vsub.f32 1.5, %v287_v40  ;;  %1700 = vrsqrt.f32 %v2195_v39  ;;  %v1699_v29 = vpop.eup %1698  ;;  %vm390_vm8 = vweird.f32 %v2195_v39 }
  0xc7   :  { %v279_v62 = vmul.f32 %v2143_v46, %v278_v45  ;;  %v135_v54 = vpop.xlane.xlu0 %134  ;;  %v375_v41 = vmul.f32 %v1699_v29, %v2155_v55  ;;  %3131 = vst [vmem:[#allocation26_spill] sm:$0xff] %v2228_v8  ;;  %v2231_v35 = vadd.f32 %v1975_v34, %v427_v17  ;;  %vm381_vm4 = vweird.f32 %v1699_v29 }
  0xc8   :  { %v289_v42 = vmul.f32 %v2150_v47, %v288_v53  ;;  %v160_v13 = vmul.f32 0.03125, %v135_v54  ;;  %vm382_vm6 = vmor %vm380_vm5, %vm381_vm4 }
  0xc9   :  { %v137_v15 = vpop.xlane.xlu1 %136  ;;  %v283_v23 = vsel %vm2208_vm2, %v2143_v46, %v279_v62  ;;  %v376_v28 = vmul.f32 %v1699_v29, %v375_v41  ;;  %3132 = vst [vmem:[#allocation27_spill] sm:$0xff] %v2231_v35  ;;  %v456_v46 = vpack.c.bf16 %v2231_v35, %v2228_v8  ;;  %v216_v41 = vsub.f32 %v1859_v31, %v2133_v44 }
  0xca   :  { %v192_v7 = vsub.f32 %v160_v13, %v176_v26  ;;  %v161_v20 = vmul.f32 0.03125, %v137_v15  ;;  %v293_v0 = vsel %vm292_vm3, %v2150_v47, %v289_v42  ;;  %v398_v50 = vmul.f32 %v283_v23, %v206_v32 }
  0xcb   :  { %v399_v4 = vmul.f32 %v293_v0, %v207_v14  ;;  %v377_v38 = vmul.f32 0.5, %v376_v28  ;;  %564 = vmatmul.bf16.gmra.mxu2 %v456_v46  ;;  %v217_v28 = vsub.f32 %v1863_v33, %v2139_v24 }
  0xcc   :  { %v1701_v19 = vpop.eup %1700  ;;  %v224_v40 = vadd.f32 1e-05, %v192_v7  ;;  %v193_v45 = vsub.f32 %v161_v20, %v177_v11  ;;  %v418_v53 = vmul.f32 %v1960_v9, %v398_v50 }
  0xcd   :  { %v385_v48 = vmul.f32 %v1701_v19, %v2195_v39  ;;  %v378_v47 = vsub.f32 1.5, %v377_v38  ;;  %v419_v26 = vmul.f32 %v1960_v9, %v399_v4  ;;  %vm391_vm7 = vweird.f32 %v1701_v19 }
  0xce   :  { %1702 = vrsqrt.f32 %v224_v40  ;;  %v225_v49 = vadd.f32 1e-05, %v193_v45  ;;  %v2239_v54 = vadd.f32 %v1975_v34, %v418_v53  ;;  %vm392_vm9 = vmor %vm390_vm8, %vm391_vm7  ;;  %vm300_vm11 = vweird.f32 %v224_v40 }
  0xcf   :  { %v386_v62 = vmul.f32 %v1701_v19, %v385_v48  ;;  %v379_v1 = vmul.f32 %v1699_v29, %v378_v47  ;;  %v2243_v42 = vadd.f32 %v1975_v34, %v419_v26 }
  0xd0   :  { %3133 = vst [vmem:[#allocation28_spill] sm:$0xff] %v2239_v54  ;;  %1704 = vrsqrt.f32 %v225_v49  ;;  %vm310_vm14 = vweird.f32 %v225_v49 }
  0xd1   :  { %v387_v60 = vmul.f32 0.5, %v386_v62  ;;  %3134 = vst [vmem:[#allocation29_spill] sm:$0xff] %v2243_v42  ;;  %v383_v11 = vsel %vm382_vm6, %v1699_v29, %v379_v1  ;;  %v452_v32 = vpack.c.bf16 %v2243_v42, %v2239_v54  ;;  %v209_v1 = vsub.f32 %v1872_v36, %v2197_v59  ;;  %v2279_v59 = vld [vmem:[%s3053_s4] ss:$0 sm:$0xff] }
  0xd2   :  { %v408_v15 = vmul.f32 %v383_v11, %v216_v41 }
  0xd3   :  { %v388_v13 = vsub.f32 1.5, %v387_v60  ;;  %544 = vmatmul.bf16.gmra.mxu0 %v452_v32 }
  0xd4   :  { %v1703_v14 = vpop.eup %1702  ;;  %v428_v0 = vmul.f32 %v1960_v9, %v408_v15 }
  0xd5   :  { %v389_v17 = vmul.f32 %v1701_v19, %v388_v13  ;;  %v295_v55 = vmul.f32 %v1703_v14, %v224_v40  ;;  %vm301_vm10 = vweird.f32 %v1703_v14 }
  0xd6   :  { %v1705_v23 = vpop.eup %1704  ;;  %v2255_v48 = vadd.f32 %v1975_v34, %v428_v0  ;;  %vm302_vm13 = vmor %vm300_vm11, %vm301_vm10 }
  0xd7   :  { %v296_v7 = vmul.f32 %v1703_v14, %v295_v55  ;;  %v305_v44 = vmul.f32 %v1705_v23, %v225_v49  ;;  %v393_v29 = vsel %vm392_vm9, %v1701_v19, %v389_v17  ;;  %vm311_vm12 = vweird.f32 %v1705_v23 }
  0xd8   :  { %v409_v20 = vmul.f32 %v393_v29, %v217_v28  ;;  %3135 = vst [vmem:[#allocation30_spill] sm:$0xff] %v2255_v48  ;;  %v208_v19 = vsub.f32 %v1874_v37, %v2185_v58  ;;  %vm312_vm15 = vmor %vm310_vm14, %vm311_vm12 }
  0xd9   :  { %v297_v50 = vmul.f32 0.5, %v296_v7  ;;  %v306_v4 = vmul.f32 %v1705_v23, %v305_v44  ;;  %v1566_v44 = vld [vmem:[%s3054_s5 + $0x30] sm:$0xff] }
  0xda   :  { %v429_v38 = vmul.f32 %v1960_v9, %v409_v20 }
  0xdb   :  { %v298_v45 = vsub.f32 1.5, %v297_v50  ;;  %v307_v39 = vmul.f32 0.5, %v306_v4 }
  0xdc   :  { %v2258_v46 = vadd.f32 %v1975_v34, %v429_v38 }
  0xdd   :  { %v299_v24 = vmul.f32 %v1703_v14, %v298_v45  ;;  %v308_v53 = vsub.f32 1.5, %v307_v39  ;;  %v1565_v39 = vld [vmem:[%s3054_s5 + $0x28] sm:$0xff] }
  0xde   :  { %3136 = vst [vmem:[#allocation31_spill] sm:$0xff] %v2258_v46  ;;  %v457_v47 = vpack.c.bf16 %v2258_v46, %v2255_v48 }
  0xdf   :  { %v309_v62 = vmul.f32 %v1705_v23, %v308_v53  ;;  %v303_v26 = vsel %vm302_vm13, %v1703_v14, %v299_v24 }
  0xe0   :  { %569 = vmatmul.bf16.gmra.mxu2 %v457_v47  ;;  %v400_v60 = vmul.f32 %v303_v26, %v208_v19 }
  0xe1   :  { %v313_v41 = vsel %vm312_vm15, %v1705_v23, %v309_v62 }
  0xe2   :  { %v401_v40 = vmul.f32 %v313_v41, %v209_v1  ;;  %v420_v11 = vmul.f32 %v1960_v9, %v400_v60 }
  0xe4   :  { %v421_v13 = vmul.f32 %v1960_v9, %v401_v40  ;;  %v2269_v58 = vadd.f32 %v1975_v34, %v420_v11  ;;  %v1564_v11 = vld [vmem:[%s3054_s5 + $0x20] sm:$0xff] }
  0xe6   :  { %3137 = vst [vmem:[#allocation32_spill] sm:$0xff] %v2269_v58  ;;  %v2272_v32 = vadd.f32 %v1975_v34, %v421_v13  ;;  %v1567_v34 = vld [vmem:[%s3054_s5 + $0x38] sm:$0xff] }
  0xe7   :  { %1662 = vmatpush.bf16.msra.mxu3 %v1567_v34  ;;  %1355 = vmatpush.bf16.msra.mxu1 %v1567_v34 }
  0xe8   :  { %3138 = vst [vmem:[#allocation33_spill] sm:$0xff] %v2272_v32  ;;  %v453_v49 = vpack.c.bf16 %v2272_v32, %v2269_v58 }
  0xea   :  { %549 = vmatmul.bf16.gmra.mxu0 %v453_v49 }
  0xeb   :  { %1663 = vmatpush.bf16.msra.mxu3 %v1566_v44  ;;  %1356 = vmatpush.bf16.msra.mxu1 %v1566_v44 }
  0xef   :  { %1664 = vmatpush.bf16.msra.mxu3 %v1565_v39  ;;  %1357 = vmatpush.bf16.msra.mxu1 %v1565_v39 }
  0xf3   :  { %1665 = vmatpush.bf16.msra.mxu3 %v1564_v11  ;;  %1358 = vmatpush.bf16.msra.mxu1 %v1564_v11 }
 0x126   :  { %v555_v14 = vpop.f32.mrf.mxu2 }
 0x127   :  { %v2282_v15 = vadd.f32 %v2279_v59, %v555_v14 }
 0x128   :  { %v535_v55 = vpop.f32.mrf.mxu0 }
 0x129   :  { %v2285_v9 = vmul.f32 0.70710677, %v2282_v15  ;;  %v2295_v28 = vadd.f32 %v2279_v59, %v535_v55 }
 0x12b   :  { %v927_v17 = vmul.f32 %v2285_v9, %v2285_v9  ;;  %v2302_v20 = vmul.f32 0.70710677, %v2295_v28  ;;  %v2416_v21 = vmul.f32 0.5, %v2295_v28 }
 0x12d   :  { %v2292_v23 = vmin.f32 %v927_v17, 16.0  ;;  %v607_v38 = vmul.f32 %v2302_v20, %v2302_v20 }
 0x12e   :  { %v557_v7 = vpop.f32.mrf.mxu2 }
 0x12f   :  { %v929_v29 = vmul.f32 2.1237322e-06, %v2292_v23  ;;  %v2305_v0 = vadd.f32 %v2279_v59, %v557_v7  ;;  %v940_v50 = vmul.f32 3.8918573e-05, %v2292_v23  ;;  %v2317_v19 = vmin.f32 %v607_v38, 16.0  ;;  %v1563_v38 = vld [vmem:[%s3054_s5 + $0x18] sm:$0xff] }
 0x130   :  { %v537_v62 = vpop.f32.mrf.mxu0  ;;  %1666 = vmatpush.bf16.msra.mxu3 %v1563_v38  ;;  %1359 = vmatpush.bf16.msra.mxu1 %v1563_v38 }
 0x131   :  { %v930_v4 = vadd.f32 0.00028619796, %v929_v29  ;;  %v2311_v45 = vmul.f32 0.70710677, %v2305_v0  ;;  %v941_v24 = vadd.f32 0.001143296, %v940_v50  ;;  %v2326_v40 = vadd.f32 %v2279_v59, %v537_v62 }
 0x132   :  { %v609_v60 = vmul.f32 2.1237322e-06, %v2317_v19  ;;  %v620_v38 = vmul.f32 3.8918573e-05, %v2317_v19 }
 0x133   :  { %v931_v53 = vmul.f32 %v930_v4, %v2292_v23  ;;  %v967_v47 = vmul.f32 %v2311_v45, %v2311_v45  ;;  %v942_v26 = vmul.f32 %v941_v24, %v2292_v23  ;;  %v2333_v34 = vmul.f32 0.70710677, %v2326_v40 }
 0x134   :  { %v610_v49 = vadd.f32 0.00028619796, %v609_v60  ;;  %v2431_v27 = vmul.f32 0.5, %v2326_v40 }
 0x135   :  { %v932_v1 = vadd.f32 0.0036580483, %v931_v53  ;;  %v2323_v41 = vmin.f32 %v967_v47, 16.0  ;;  %v943_v13 = vadd.f32 0.014752088, %v942_v26  ;;  %v647_v4 = vmul.f32 %v2333_v34, %v2333_v34 }
 0x136   :  { %v560_v17 = vpop.f32.mrf.mxu2  ;;  %v611_v44 = vmul.f32 %v610_v49, %v2317_v19  ;;  %v1562_v49 = vld [vmem:[%s3054_s5 + $0x10] sm:$0xff] }
 0x137   :  { %v969_v14 = vmul.f32 2.1237322e-06, %v2323_v41  ;;  %v944_v55 = vmul.f32 %v943_v13, %v2292_v23  ;;  %v933_v7 = vmul.f32 %v932_v1, %v2292_v23  ;;  %v2339_v50 = vadd.f32 %v2279_v59, %v560_v17  ;;  %1667 = vmatpush.bf16.msra.mxu3 %v1562_v49  ;;  %1360 = vmatpush.bf16.msra.mxu1 %v1562_v49 }
 0x138   :  { %v612_v53 = vadd.f32 0.0036580483, %v611_v44  ;;  %v2347_v47 = vmin.f32 %v647_v4, 16.0  ;;  %v980_v17 = vmul.f32 3.8918573e-05, %v2323_v41 }
 0x139   :  { %v970_v29 = vadd.f32 0.00028619796, %v969_v14  ;;  %v945_v39 = vadd.f32 0.112945676, %v944_v55  ;;  %v2350_v62 = vmul.f32 0.70710677, %v2339_v50 }
 0x13a   :  { %v934_v1 = vadd.f32 0.05243302, %v933_v7  ;;  %v649_v11 = vmul.f32 2.1237322e-06, %v2347_v47  ;;  %v613_v55 = vmul.f32 %v612_v53, %v2317_v19  ;;  %v981_v37 = vadd.f32 0.001143296, %v980_v17 }
 0x13b   :  { %v971_v24 = vmul.f32 %v970_v29, %v2323_v41  ;;  %v946_v26 = vmul.f32 %v945_v39, %v2292_v23  ;;  %v1007_v13 = vmul.f32 %v2350_v62, %v2350_v62  ;;  %v1560_v17 = vld [vmem:[%s3054_s5] sm:$0xff]  ;;  %v2434_v8 = vmul.f32 0.5, %v2339_v50 }
 0x13c   :  { %v650_v44 = vadd.f32 0.00028619796, %v649_v11  ;;  %v935_v36 = vmul.f32 %v934_v1, %v2292_v23 }
 0x13d   :  { %v972_v60 = vadd.f32 0.0036580483, %v971_v24  ;;  %v947_v14 = vadd.f32 0.4994258, %v946_v26  ;;  %v2361_v29 = vmin.f32 %v1007_v13, 16.0  ;;  %v540_v4 = vpop.f32.mrf.mxu0  ;;  %v1561_v13 = vld [vmem:[%s3054_s5 + $0x8] sm:$0xff] }
 0x13e   :  { %v562_v7 = vpop.f32.mrf.mxu2  ;;  %v2366_v24 = vadd.f32 %v2279_v59, %v540_v4  ;;  %v651_v53 = vmul.f32 %v650_v44, %v2347_v47  ;;  %1668 = vmatpush.bf16.msra.mxu3 %v1561_v13  ;;  %1361 = vmatpush.bf16.msra.mxu1 %v1561_v13  ;;  %v936_v32 = vadd.f32 0.18741608, %v935_v36 }
 0x13f   :  { %v973_v39 = vmul.f32 %v972_v60, %v2323_v41  ;;  %v948_v26 = vmul.f32 %v947_v14, %v2292_v23  ;;  %v2372_v11 = vadd.f32 %v2279_v59, %v562_v7  ;;  %v1009_v49 = vmul.f32 2.1237322e-06, %v2361_v29 }
 0x140   :  { %v614_v60 = vadd.f32 0.05243302, %v613_v55  ;;  %v2379_v4 = vmul.f32 0.70710677, %v2366_v24  ;;  %v621_v14 = vadd.f32 0.001143296, %v620_v38  ;;  %v982_v38 = vmul.f32 %v981_v37, %v2323_v41 }
 0x141   :  { %v974_v1 = vadd.f32 0.05243302, %v973_v39  ;;  %v2382_v44 = vmul.f32 0.70710677, %v2372_v11  ;;  %v2384_v7 = vadd.f32 1.0, %v948_v26 }
 0x142   :  { %v652_v58 = vadd.f32 0.0036580483, %v651_v53  ;;  %v687_v33 = vmul.f32 %v2379_v4, %v2379_v4  ;;  %v1010_v55 = vadd.f32 0.00028619796, %v1009_v49  ;;  %v615_v39 = vmul.f32 %v614_v60, %v2317_v19  ;;  %1669 = vmatpush.bf16.msra.mxu3 %v1560_v17  ;;  %1362 = vmatpush.bf16.msra.mxu1 %v1560_v17 }
 0x143   :  { %v1047_v13 = vmul.f32 %v2382_v44, %v2382_v44  ;;  %v975_v36 = vmul.f32 %v974_v1, %v2323_v41  ;;  %1706 = vrcp.f32 %v2384_v7  ;;  %v937_v49 = vmul.f32 %v936_v32, %v2292_v23 }
 0x144   :  { %v2395_v31 = vmin.f32 %v687_v33, 16.0  ;;  %v653_v37 = vmul.f32 %v652_v58, %v2347_v47  ;;  %v622_v60 = vmul.f32 %v621_v14, %v2317_v19  ;;  %v1011_v33 = vmul.f32 %v1010_v55, %v2361_v29 }
 0x145   :  { %v542_v26 = vpop.f32.mrf.mxu0  ;;  %v2398_v53 = vmin.f32 %v1047_v13, 16.0  ;;  %v983_v17 = vadd.f32 0.014752088, %v982_v38  ;;  %v2412_v1 = vmul.f32 0.5, %v2282_v15  ;;  %v616_v13 = vadd.f32 0.18741608, %v615_v39 }
 0x146   :  { %v2401_v46 = vadd.f32 %v2279_v59, %v542_v26  ;;  %v689_v26 = vmul.f32 2.1237322e-06, %v2395_v31  ;;  %v976_v32 = vadd.f32 0.18741608, %v975_v36  ;;  %v938_v14 = vadd.f32 1.1283791, %v937_v49 }
 0x147   :  { %v1049_v58 = vmul.f32 2.1237322e-06, %v2398_v53  ;;  %v654_v55 = vadd.f32 0.05243302, %v653_v37  ;;  %v623_v22 = vadd.f32 0.014752088, %v622_v60  ;;  %v984_v28 = vmul.f32 %v983_v17, %v2323_v41 }
 0x148   :  { %v2409_v48 = vmul.f32 0.70710677, %v2401_v46  ;;  %v2424_v15 = vmul.f32 0.5, %v2305_v0  ;;  %v1012_v38 = vadd.f32 0.0036580483, %v1011_v33  ;;  %v617_v36 = vmul.f32 %v616_v13, %v2317_v19 }
 0x149   :  { %v2421_v35 = vpop.eup %1706  ;;  %v690_v49 = vadd.f32 0.00028619796, %v689_v26  ;;  %v977_v37 = vmul.f32 %v976_v32, %v2323_v41  ;;  %v1050_v60 = vadd.f32 0.00028619796, %v1049_v58  ;;  %v985_v25 = vadd.f32 0.112945676, %v984_v28 }
 0x14a   :  { %v727_v23 = vmul.f32 %v2409_v48, %v2409_v48  ;;  %v2439_v33 = vmul.f32 %v938_v14, %v2285_v9  ;;  %v655_v17 = vmul.f32 %v654_v55, %v2347_v47  ;;  %v951_v40 = vmul.f32 %v2421_v35, %v2384_v7 }
 0x14b   :  { %v624_v50 = vmul.f32 %v623_v22, %v2317_v19  ;;  %v1013_v26 = vmul.f32 %v1012_v38, %v2361_v29  ;;  %v618_v9 = vadd.f32 1.1283791, %v617_v36  ;;  %v2453_v14 = vmul.f32 0.5, %v2366_v24 }
 0x14c   :  { %v2426_v39 = vmin.f32 %v727_v23, 16.0  ;;  %v691_v55 = vmul.f32 %v690_v49, %v2395_v31  ;;  %v986_v28 = vmul.f32 %v985_v25, %v2323_v41  ;;  %v978_v54 = vadd.f32 1.1283791, %v977_v37 }
 0x14d   :  { %v2458_v22 = vmul.f32 0.5, %v2372_v11  ;;  %v1051_v38 = vmul.f32 %v1050_v60, %v2398_v53  ;;  %v952_v24 = vsub.f32 1.0, %v951_v40  ;;  %v656_v49 = vadd.f32 0.18741608, %v655_v17 }
 0x14e   :  { %v729_v0 = vmul.f32 2.1237322e-06, %v2426_v39  ;;  %v565_v23 = vpop.f32.mrf.mxu2  ;;  %v1014_v18 = vadd.f32 0.05243302, %v1013_v26  ;;  %v961_v11 = vand.u32 2147483648, %v2384_v7  ;;  %v2473_v37 = vmul.f32 %v618_v9, %v2302_v20 }
 0x14f   :  { %v2447_v32 = vadd.f32 %v2279_v59, %v565_v23  ;;  %v692_v60 = vadd.f32 0.0036580483, %v691_v55  ;;  %vm955_vm0 = vweird.f32 %v2384_v7  ;;  %v987_v16 = vadd.f32 0.4994258, %v986_v28 }
 0x150   :  { %v545_v13 = vpop.f32.mrf.mxu0  ;;  %v730_v42 = vadd.f32 0.00028619796, %v729_v0  ;;  %v2479_v40 = vmul.f32 %v978_v54, %v2311_v45  ;;  %v1052_v17 = vadd.f32 0.0036580483, %v1051_v38  ;;  %v625_v56 = vadd.f32 0.112945676, %v624_v50 }
 0x151   :  { %v2450_v58 = vadd.f32 %v2279_v59, %v545_v13  ;;  %v2462_v0 = vmul.f32 0.70710677, %v2447_v32  ;;  %v959_v13 = vand.u32 2147483647, %v2384_v7  ;;  %v953_v9 = vmul.f32 %v2421_v35, %v952_v24 }
 0x152   :  { %v731_v23 = vmul.f32 %v730_v42, %v2426_v39  ;;  %v988_v55 = vmul.f32 %v987_v16, %v2323_v41  ;;  %v657_v30 = vmul.f32 %v656_v49, %v2347_v47  ;;  %v1015_v28 = vmul.f32 %v1014_v18, %v2361_v29 }
 0x153   :  { %v2466_v36 = vmul.f32 0.70710677, %v2450_v58  ;;  %v1087_v25 = vmul.f32 %v2462_v0, %v2462_v0  ;;  %v693_v50 = vmul.f32 %v692_v60, %v2395_v31  ;;  %vm2498_vm1 = vcmp.eq.f32.partialorder %v959_v13, 8.507059e+37 }
 0x154   :  { %v732_v43 = vadd.f32 0.0036580483, %v731_v23  ;;  %v2502_v16 = vadd.f32 1.0, %v988_v55  ;;  %v1053_v18 = vmul.f32 %v1052_v17, %v2398_v53  ;;  %vm956_vm2 = vweird.f32 %v2421_v35 }
 0x155   :  { %v767_v42 = vmul.f32 %v2466_v36, %v2466_v36  ;;  %v2481_v26 = vmin.f32 %v1087_v25, 16.0  ;;  %v954_v13 = vadd.f32 %v2421_v35, %v953_v9  ;;  %v694_v17 = vadd.f32 0.05243302, %v693_v50  ;;  %vm2526_vm3 = vmor %vm955_vm0, %vm956_vm2 }
 0x156   :  { %v567_v10 = vpop.f32.mrf.mxu2  ;;  %v733_v49 = vmul.f32 %v732_v43, %v2426_v39  ;;  %1708 = vrcp.f32 %v2502_v16  ;;  %v1054_v43 = vadd.f32 0.05243302, %v1053_v18  ;;  %v2537_v6 = vmul.f32 0.5, %v2401_v46 }
 0x157   :  { %v2483_v12 = vmin.f32 %v767_v42, 16.0  ;;  %v1089_v54 = vmul.f32 2.1237322e-06, %v2481_v26  ;;  %v2491_v45 = vadd.f32 %v2279_v59, %v567_v10  ;;  %v626_v10 = vmul.f32 %v625_v56, %v2317_v19 }
 0x158   :  { %v547_v20 = vpop.f32.mrf.mxu0  ;;  %v658_v42 = vadd.f32 1.1283791, %v657_v30  ;;  %v734_v50 = vadd.f32 0.05243302, %v733_v49  ;;  %v958_v18 = vsel %vm2526_vm3, %v2421_v35, %v954_v13  ;;  %v962_v63 = vor.u32 1.1754944e-38, %v961_v11 }
 0x159   :  { %v769_v38 = vmul.f32 2.1237322e-06, %v2483_v12  ;;  %v2496_v23 = vadd.f32 %v2279_v59, %v547_v20  ;;  %v1090_v41 = vadd.f32 0.00028619796, %v1089_v54  ;;  %v2509_v60 = vmul.f32 0.70710677, %v2491_v45 }
 0x15a   :  { %v1016_v20 = vadd.f32 0.18741608, %v1015_v28  ;;  %v627_v28 = vadd.f32 0.4994258, %v626_v10  ;;  %v695_v61 = vmul.f32 %v694_v17, %v2395_v31  ;;  %v1055_v35 = vmul.f32 %v1054_v43, %v2398_v53 }
 0x15b   :  { %v770_v25 = vadd.f32 0.00028619796, %v769_v38  ;;  %v1091_v55 = vmul.f32 %v1090_v41, %v2481_v26  ;;  %v2514_v57 = vmul.f32 0.70710677, %v2496_v23  ;;  %v1127_v56 = vmul.f32 %v2509_v60, %v2509_v60 }
 0x15c   :  { %v2553_v11 = vmul.f32 %v658_v42, %v2333_v34  ;;  %v735_v17 = vmul.f32 %v734_v50, %v2426_v39  ;;  %v696_v5 = vadd.f32 0.18741608, %v695_v61  ;;  %v2562_v24 = vmul.f32 0.5, %v2447_v32 }
 0x15d   :  { %v771_v54 = vmul.f32 %v770_v25, %v2483_v12  ;;  %v1092_v38 = vadd.f32 0.0036580483, %v1091_v55  ;;  %v807_v9 = vmul.f32 %v2514_v57, %v2514_v57  ;;  %v2530_v25 = vmin.f32 %v1127_v56, 16.0  ;;  %v1709_v56 = vpop.eup %1708 }
 0x15e   :  { %v1017_v55 = vmul.f32 %v1016_v20, %v2361_v29  ;;  %v963_v20 = vsel %vm2498_vm1, %v962_v63, %v958_v18  ;;  %v1056_v42 = vadd.f32 0.18741608, %v1055_v35  ;;  %vm996_vm4 = vweird.f32 %v1709_v56 }
 0x15f   :  { %v772_v41 = vadd.f32 0.0036580483, %v771_v54  ;;  %v2539_v3 = vmin.f32 %v807_v9, 16.0  ;;  %v1093_v10 = vmul.f32 %v1092_v38, %v2481_v26  ;;  %v1129_v49 = vmul.f32 2.1237322e-06, %v2530_v25 }
 0x160   :  { %v628_v9 = vmul.f32 %v627_v28, %v2317_v19  ;;  %v1018_v30 = vadd.f32 1.1283791, %v1017_v55  ;;  %v964_v34 = vmul.f32 %v963_v20, %v2439_v33  ;;  %v736_v28 = vadd.f32 0.18741608, %v735_v17 }
 0x161   :  { %v773_v13 = vmul.f32 %v772_v41, %v2483_v12  ;;  %v809_v46 = vmul.f32 2.1237322e-06, %v2539_v3  ;;  %v1130_v38 = vadd.f32 0.00028619796, %v1129_v49  ;;  %v991_v41 = vmul.f32 %v1709_v56, %v2502_v16 }
 0x162   :  { %v1094_v63 = vadd.f32 0.05243302, %v1093_v10  ;;  %v1001_v49 = vand.u32 2147483648, %v2502_v16  ;;  %v999_v10 = vand.u32 2147483647, %v2502_v16  ;;  %v697_v33 = vmul.f32 %v696_v5, %v2395_v31 }
 0x163   :  { %v570_v7 = vpop.f32.mrf.mxu2  ;;  %v774_v18 = vadd.f32 0.05243302, %v773_v13  ;;  %v992_v19 = vsub.f32 1.0, %v991_v41  ;;  %v1131_v55 = vmul.f32 %v1130_v38, %v2530_v25  ;;  %v1512_v38 = vclamps-f32 %v964_v34, 1.0 }
 0x164   :  { %v2545_v54 = vadd.f32 %v2279_v59, %v570_v7  ;;  %v810_v7 = vadd.f32 0.00028619796, %v809_v46  ;;  %v2569_v46 = vadd.f32 1.0, %v628_v9  ;;  %v1095_v35 = vmul.f32 %v1094_v63, %v2481_v26 }
 0x165   :  { %v993_v32 = vmul.f32 %v1709_v56, %v992_v19  ;;  %v775_v17 = vmul.f32 %v774_v18, %v2483_v12  ;;  %vm995_vm5 = vweird.f32 %v2502_v16  ;;  %v737_v41 = vmul.f32 %v736_v28, %v2426_v39 }
 0x166   :  { %v2558_v43 = vmul.f32 0.70710677, %v2545_v54  ;;  %v811_v61 = vmul.f32 %v810_v7, %v2539_v3  ;;  %1710 = vrcp.f32 %v2569_v46  ;;  %v1057_v7 = vmul.f32 %v1056_v42, %v2398_v53  ;;  %vm997_vm6 = vmor %vm995_vm5, %vm996_vm4 }
 0x167   :  { %v550_v20 = vpop.f32.mrf.mxu0  ;;  %v994_v9 = vadd.f32 %v1709_v56, %v993_v32  ;;  %v1132_v19 = vadd.f32 0.0036580483, %v1131_v55  ;;  %v1002_v5 = vor.u32 1.1754944e-38, %v1001_v49  ;;  %vm1000_vm7 = vcmp.eq.f32.partialorder %v999_v10, 8.507059e+37 }
 0x168   :  { %v1167_v50 = vmul.f32 %v2558_v43, %v2558_v43  ;;  %v812_v2 = vadd.f32 0.0036580483, %v811_v61  ;;  %v698_v52 = vadd.f32 1.1283791, %v697_v33  ;;  %v1096_v51 = vadd.f32 0.18741608, %v1095_v35 }
 0x169   :  { %v998_v63 = vsel %vm997_vm6, %v1709_v56, %v994_v9  ;;  %v2587_v16 = vmul.f32 %v1018_v30, %v2350_v62  ;;  %v2590_v42 = vmul.f32 0.5, %v2450_v58  ;;  %v776_v28 = vadd.f32 0.18741608, %v775_v17 }
 0x16a   :  { %v2575_v13 = vmin.f32 %v1167_v50, 16.0  ;;  %v2583_v50 = vadd.f32 %v2279_v59, %v550_v20  ;;  %v1003_v18 = vsel %vm1000_vm7, %v1002_v5, %v998_v63  ;;  %v1058_v56 = vadd.f32 1.1283791, %v1057_v7 }
 0x16b   :  { %v1004_v55 = vmul.f32 %v1003_v18, %v2479_v40  ;;  %v738_v61 = vadd.f32 1.1283791, %v737_v41  ;;  %v1133_v32 = vmul.f32 %v1132_v19, %v2530_v25  ;;  %v1255_v10 = vadd.f32 1.0, %v1512_v38 }
 0x16c   :  { %3143 = vst [vmem:[#allocation34_spill] sm:$0xff] %v2583_v50  ;;  %v1169_v34 = vmul.f32 2.1237322e-06, %v2575_v13  ;;  %v2593_v49 = vpop.eup %1710  ;;  %v813_v33 = vmul.f32 %v812_v2, %v2539_v3  ;;  %v2598_v20 = vmul.f32 0.70710677, %v2583_v50  ;;  %v2603_v58 = vmul.f32 %v698_v52, %v2379_v4 }
 0x16d   :  { %v1513_v35 = vclamps-f32 %v1004_v55, 1.0  ;;  %v631_v62 = vmul.f32 %v2593_v49, %v2569_v46  ;;  %v1097_v40 = vmul.f32 %v1096_v51, %v2481_v26  ;;  %v2607_v30 = vmul.f32 0.5, %v2491_v45 }
 0x16e   :  { %3144 = vst [vmem:[#allocation35_spill] sm:$0xff] %v2598_v20  ;;  %v1170_v17 = vadd.f32 0.00028619796, %v1169_v34  ;;  %v777_v38 = vmul.f32 %v776_v28, %v2483_v12  ;;  %v2611_v2 = vmul.f32 0.5, %v2496_v23  ;;  %v2614_v41 = vmul.f32 %v1058_v56, %v2382_v44 }
 0x16f   :  { %v1256_v9 = vadd.f32 1.0, %v1513_v35  ;;  %v632_v7 = vsub.f32 1.0, %v631_v62  ;;  %v2617_v19 = vmul.f32 %v738_v61, %v2409_v48  ;;  %v1134_v52 = vadd.f32 0.05243302, %v1133_v32 }
 0x170   :  { %v660_v51 = vmul.f32 3.8918573e-05, %v2347_v47  ;;  %v814_v4 = vadd.f32 0.05243302, %v813_v33  ;;  %v1271_v45 = vmul.f32 %v1255_v10, %v2412_v1  ;;  %v847_v23 = vmul.f32 %v2598_v20, %v2598_v20 }
 0x171   :  { %v1272_v5 = vmul.f32 %v1256_v9, %v2424_v15  ;;  %v2624_v63 = vadd.f32 1.1283791, %v1097_v40  ;;  %v1171_v34 = vmul.f32 %v1170_v17, %v2575_v13  ;;  %v1020_v18 = vmul.f32 3.8918573e-05, %v2361_v29 }
 0x172   :  { %v661_v44 = vadd.f32 0.001143296, %v660_v51  ;;  %v2628_v48 = vadd.f32 1.1283791, %v777_v38  ;;  %v633_v55 = vmul.f32 %v2593_v49, %v632_v7  ;;  %vm635_vm8 = vweird.f32 %v2569_v46 }
 0x173   :  { %v1283_v28 = vpack.c.bf16 %v1272_v5, %v1271_v45  ;;  %v1135_v1 = vmul.f32 %v1134_v52, %v2530_v25  ;;  %v1021_v56 = vadd.f32 0.001143296, %v1020_v18  ;;  %v1060_v61 = vmul.f32 3.8918573e-05, %v2398_v53 }
 0x174   :  { %v662_v15 = vmul.f32 %v661_v44, %v2347_v47  ;;  %v815_v32 = vmul.f32 %v814_v4, %v2539_v3  ;;  %v2636_v10 = vmin.f32 %v847_v23, 16.0  ;;  %v700_v33 = vmul.f32 3.8918573e-05, %v2395_v31 }
 0x175   :  { %1383 = vmatmul.bf16.vlgmr.msra.gmra.mxu3 %v1283_v28  ;;  %v740_v35 = vmul.f32 3.8918573e-05, %v2426_v39  ;;  %v1172_v62 = vadd.f32 0.0036580483, %v1171_v34  ;;  %v639_v40 = vand.u32 2147483647, %v2569_v46  ;;  %v1022_v38 = vmul.f32 %v1021_v56, %v2361_v29 }
 0x176   :  { %v663_v17 = vadd.f32 0.014752088, %v662_v15  ;;  %v634_v9 = vadd.f32 %v2593_v49, %v633_v55  ;;  %vm636_vm9 = vweird.f32 %v2593_v49  ;;  %v1061_v7 = vadd.f32 0.001143296, %v1060_v61 }
 0x177   :  { %v701_v52 = vadd.f32 0.001143296, %v700_v33  ;;  %v641_v51 = vand.u32 2147483648, %v2569_v46  ;;  %v1023_v45 = vadd.f32 0.014752088, %v1022_v38  ;;  %v1173_v28 = vmul.f32 %v1172_v62, %v2575_v13  ;;  %vm2652_vm10 = vmor %vm635_vm8, %vm636_vm9 }
 0x178   :  { %v664_v4 = vmul.f32 %v663_v17, %v2347_v47  ;;  %v741_v5 = vadd.f32 0.001143296, %v740_v35  ;;  %v1136_v23 = vadd.f32 0.18741608, %v1135_v1  ;;  %v849_v34 = vmul.f32 2.1237322e-06, %v2636_v10 }
 0x179   :  { %v1062_v44 = vmul.f32 %v1061_v7, %v2398_v53  ;;  %v702_v18 = vmul.f32 %v701_v52, %v2395_v31  ;;  %v1024_v56 = vmul.f32 %v1023_v45, %v2361_v29  ;;  %v816_v1 = vadd.f32 0.18741608, %v815_v32 }
 0x17a   :  { %v665_v15 = vadd.f32 0.112945676, %v664_v4  ;;  %v742_v61 = vmul.f32 %v741_v5, %v2426_v39  ;;  %v638_v33 = vsel %vm2652_vm10, %v2593_v49, %v634_v9  ;;  %v642_v38 = vor.u32 1.1754944e-38, %v641_v51  ;;  %v572_v51 = vpop.f32.mrf.mxu2 }
 0x17b   :  { %v1063_v35 = vadd.f32 0.014752088, %v1062_v44  ;;  %v703_v17 = vadd.f32 0.014752088, %v702_v18  ;;  %v1025_v46 = vadd.f32 0.112945676, %v1024_v56  ;;  %v1137_v49 = vmul.f32 %v1136_v23, %v2530_v25  ;;  %v552_v44 = vpop.f32.mrf.mxu0 }
 0x17c   :  { %v666_v62 = vmul.f32 %v665_v15, %v2347_v47  ;;  %v743_v7 = vadd.f32 0.014752088, %v742_v61  ;;  %v850_v52 = vadd.f32 0.00028619796, %v849_v34  ;;  %vm640_vm11 = vcmp.eq.f32.partialorder %v639_v40, 8.507059e+37 }
 0x17d   :  { %v1064_v4 = vmul.f32 %v1063_v35, %v2398_v53  ;;  %v704_v45 = vmul.f32 %v703_v17, %v2395_v31  ;;  %v1174_v50 = vadd.f32 0.05243302, %v1173_v28  ;;  %v643_v5 = vsel %vm640_vm11, %v642_v38, %v638_v33 }
 0x17e   :  { %v667_v32 = vadd.f32 0.4994258, %v666_v62  ;;  %v1026_v20 = vmul.f32 %v1025_v46, %v2361_v29  ;;  %v817_v9 = vmul.f32 %v816_v1, %v2539_v3  ;;  %v2669_v40 = vadd.f32 %v2279_v59, %v572_v51 }
 0x17f   :  { %v1065_v18 = vadd.f32 0.112945676, %v1064_v4  ;;  %v705_v55 = vadd.f32 0.112945676, %v704_v45  ;;  %v2672_v15 = vadd.f32 %v2279_v59, %v552_v44  ;;  %v744_v28 = vmul.f32 %v743_v7, %v2426_v39 }
 0x180   :  { %v668_v34 = vmul.f32 %v667_v32, %v2347_v47  ;;  %v644_v56 = vmul.f32 %v643_v5, %v2473_v37  ;;  %v1027_v61 = vadd.f32 0.4994258, %v1026_v20  ;;  %v1175_v33 = vmul.f32 %v1174_v50, %v2575_v13 }
 0x181   :  { %v1066_v23 = vmul.f32 %v1065_v18, %v2398_v53  ;;  %v706_v1 = vmul.f32 %v705_v55, %v2395_v31  ;;  %v851_v35 = vmul.f32 %v850_v52, %v2636_v10  ;;  %v2683_v17 = vmul.f32 0.70710677, %v2669_v40 }
 0x182   :  { %v2680_v47 = vadd.f32 1.0, %v668_v34  ;;  %v2686_v59 = vmul.f32 0.70710677, %v2672_v15  ;;  %v1028_v38 = vmul.f32 %v1027_v61, %v2361_v29  ;;  %v1138_v62 = vadd.f32 1.1283791, %v1137_v49 }
 0x183   :  { %v1067_v37 = vadd.f32 0.4994258, %v1066_v23  ;;  %v707_v20 = vadd.f32 0.4994258, %v706_v1  ;;  %v818_v46 = vadd.f32 1.1283791, %v817_v9  ;;  %v1207_v52 = vmul.f32 %v2683_v17, %v2683_v17 }
 0x184   :  { %1712 = vrcp.f32 %v2680_v47  ;;  %v745_v7 = vadd.f32 0.112945676, %v744_v28  ;;  %v1504_v50 = vclamps-f32 %v644_v56, 1.0  ;;  %v2692_v4 = vadd.f32 1.0, %v1028_v38 }
 0x185   :  { %v1068_v45 = vmul.f32 %v1067_v37, %v2398_v53  ;;  %v2697_v5 = vmul.f32 %v2624_v63, %v2462_v0  ;;  %v852_v29 = vadd.f32 0.0036580483, %v851_v35  ;;  %v887_v32 = vmul.f32 %v2686_v59, %v2686_v59 }
 0x186   :  { %v708_v49 = vmul.f32 %v707_v20, %v2395_v31  ;;  %v1176_v9 = vadd.f32 0.18741608, %v1175_v33  ;;  %v2702_v51 = vmin.f32 %v1207_v52, 16.0  ;;  %1714 = vrcp.f32 %v2692_v4 }
 0x187   :  { %v1100_v44 = vmul.f32 3.8918573e-05, %v2481_v26  ;;  %v2708_v53 = vmul.f32 %v2628_v48, %v2466_v36  ;;  %v2710_v18 = vadd.f32 1.0, %v1068_v45  ;;  %v746_v63 = vmul.f32 %v745_v7, %v2426_v39 }
 0x188   :  { %v2712_v0 = vadd.f32 1.0, %v708_v49  ;;  %v2716_v55 = vmul.f32 %v1138_v62, %v2509_v60  ;;  %v2719_v31 = vmul.f32 %v818_v46, %v2514_v57  ;;  %v1247_v34 = vadd.f32 1.0, %v1504_v50 }
 0x189   :  { %v1209_v28 = vmul.f32 2.1237322e-06, %v2702_v51  ;;  %v679_v61 = vand.u32 2147483647, %v2680_v47  ;;  %v681_v36 = vand.u32 2147483648, %v2680_v47  ;;  %v2724_v48 = vmin.f32 %v887_v32, 16.0 }
 0x18a   :  { %v1713_v56 = vpop.eup %1712  ;;  %1716 = vrcp.f32 %v2710_v18  ;;  %v2728_v23 = vmul.f32 %v1176_v9, %v2575_v13  ;;  %v2731_v60 = vmul.f32 %v852_v29, %v2636_v10  ;;  %v1101_v1 = vadd.f32 0.001143296, %v1100_v44 }
 0x18b   :  { %v671_v57 = vmul.f32 %v1713_v56, %v2680_v47  ;;  %v1039_v33 = vand.u32 2147483647, %v2692_v4  ;;  %v1041_v35 = vand.u32 2147483648, %v2692_v4  ;;  %1718 = vrcp.f32 %v2712_v0 }
 0x18c   :  { %v747_v38 = vadd.f32 0.4994258, %v746_v63  ;;  %v1715_v37 = vpop.eup %1714  ;;  %vm675_vm12 = vweird.f32 %v2680_v47  ;;  %v2739_v62 = vmul.f32 %v1247_v34, %v2416_v21  ;;  %v1210_v46 = vadd.f32 0.00028619796, %v1209_v28 }
 0x18d   :  { %v672_v20 = vsub.f32 1.0, %v671_v57  ;;  %vm2741_vm13 = vcmp.eq.f32.partialorder %v679_v61, 8.507059e+37  ;;  %v682_v50 = vor.u32 1.1754944e-38, %v681_v36  ;;  %v889_v52 = vmul.f32 2.1237322e-06, %v2724_v48 }
 0x18e   :  { %v1031_v45 = vmul.f32 %v1715_v37, %v2692_v4  ;;  %vm676_vm14 = vweird.f32 %v1713_v56  ;;  %vm1035_vm15 = vweird.f32 %v2692_v4  ;;  %v1102_v32 = vmul.f32 %v1101_v1, %v2481_v26 }
 0x18f   :  { %v673_v29 = vmul.f32 %v1713_v56, %v672_v20  ;;  %vm2749_vm0 = vcmp.eq.f32.partialorder %v1039_v33, 8.507059e+37  ;;  %v1042_v44 = vor.u32 1.1754944e-38, %v1041_v35  ;;  %v748_v63 = vmul.f32 %v747_v38, %v2426_v39  ;;  %vm677_vm2 = vmor %vm675_vm12, %vm676_vm14 }
 0x190   :  { %v1717_v49 = vpop.eup %1716  ;;  %v1032_v9 = vsub.f32 1.0, %v1031_v45  ;;  %v1211_v28 = vmul.f32 %v1210_v46, %v2702_v51  ;;  %vm1075_vm1 = vweird.f32 %v2710_v18  ;;  %v890_v57 = vadd.f32 0.00028619796, %v889_v52 }
 0x191   :  { %v674_v34 = vadd.f32 %v1713_v56, %v673_v29  ;;  %v1071_v61 = vmul.f32 %v1717_v49, %v2710_v18  ;;  %v1719_v36 = vpop.eup %1718  ;;  %vm1036_vm3 = vweird.f32 %v1715_v37  ;;  %v2759_v33 = vadd.f32 1.0, %v748_v63 }
 0x192   :  { %v1033_v1 = vmul.f32 %v1715_v37, %v1032_v9  ;;  %v1079_v39 = vand.u32 2147483647, %v2710_v18  ;;  %v1081_v38 = vand.u32 2147483648, %v2710_v18  ;;  %v711_v29 = vmul.f32 %v1719_v36, %v2712_v0  ;;  %vm1037_vm5 = vmor %vm1035_vm15, %vm1036_vm3 }
 0x193   :  { %v678_v20 = vsel %vm677_vm2, %v1713_v56, %v674_v34  ;;  %v1072_v35 = vsub.f32 1.0, %v1071_v61  ;;  %vm715_vm4 = vweird.f32 %v2712_v0  ;;  %v1212_v52 = vadd.f32 0.0036580483, %v1211_v28 }
 0x194   :  { %v683_v46 = vsel %vm2741_vm13, %v682_v50, %v678_v20  ;;  %v1034_v45 = vadd.f32 %v1715_v37, %v1033_v1  ;;  %v719_v9 = vand.u32 2147483647, %v2712_v0  ;;  %vm1076_vm6 = vweird.f32 %v1717_v49 }
 0x195   :  { %v684_v47 = vmul.f32 %v683_v46, %v2553_v11  ;;  %v1073_v56 = vmul.f32 %v1717_v49, %v1072_v35  ;;  %v712_v34 = vsub.f32 1.0, %v711_v29  ;;  %1720 = vrcp.f32 %v2759_v33  ;;  %vm1077_vm9 = vmor %vm1075_vm1, %vm1076_vm6 }
 0x196   :  { %v1038_v63 = vsel %vm1037_vm5, %v1715_v37, %v1034_v45  ;;  %vm2774_vm7 = vcmp.eq.f32.partialorder %v1079_v39, 8.507059e+37  ;;  %v721_v11 = vand.u32 2147483648, %v2712_v0  ;;  %vm716_vm8 = vweird.f32 %v1719_v36 }
 0x197   :  { %v1505_v7 = vclamps-f32 %v684_v47, 1.0  ;;  %v1043_v50 = vsel %vm2749_vm0, %v1042_v44, %v1038_v63  ;;  %v1074_v28 = vadd.f32 %v1717_v49, %v1073_v56  ;;  %v713_v1 = vmul.f32 %v1719_v36, %v712_v34  ;;  %vm717_vm10 = vmor %vm715_vm4, %vm716_vm8 }
 0x198   :  { %v1044_v4 = vmul.f32 %v1043_v50, %v2587_v16  ;;  %v1213_v20 = vmul.f32 %v1212_v52, %v2702_v51  ;;  %v1082_v35 = vor.u32 1.1754944e-38, %v1081_v38  ;;  %v1103_v21 = vadd.f32 0.014752088, %v1102_v32 }
 0x199   :  { %v1248_v37 = vadd.f32 1.0, %v1505_v7  ;;  %v1078_v39 = vsel %vm1077_vm9, %v1717_v49, %v1074_v28  ;;  %v714_v46 = vadd.f32 %v1719_v36, %v713_v1  ;;  %v759_v45 = vand.u32 2147483647, %v2759_v33 }
 0x19a   :  { %v1514_v44 = vclamps-f32 %v1044_v4, 1.0  ;;  %v1083_v16 = vsel %vm2774_vm7, %v1082_v35, %v1078_v39  ;;  %v722_v47 = vor.u32 1.1754944e-38, %v721_v11  ;;  %v761_v52 = vand.u32 2147483648, %v2759_v33 }
 0x19b   :  { %v1264_v29 = vmul.f32 %v1248_v37, %v2431_v27  ;;  %v1721_v18 = vpop.eup %1720  ;;  %v2791_v38 = vmul.f32 %v890_v57, %v2724_v48  ;;  %v1084_v32 = vmul.f32 %v1083_v16, %v2614_v41  ;;  %v718_v49 = vsel %vm717_vm10, %v1719_v36, %v714_v46 }
 0x19c   :  { %vm720_vm11 = vcmp.eq.f32.partialorder %v719_v9, 8.507059e+37  ;;  %v1214_v27 = vadd.f32 0.05243302, %v1213_v20  ;;  %v1257_v63 = vadd.f32 1.0, %v1514_v44  ;;  %v751_v0 = vmul.f32 %v1721_v18, %v2759_v33 }
 0x19d   :  { %v1279_v56 = vpack.c.bf16 %v1264_v29, %v2739_v62  ;;  %v723_v34 = vsel %vm720_vm11, %v722_v47, %v718_v49  ;;  %v1515_v7 = vclamps-f32 %v1084_v32, 1.0  ;;  %vm755_vm12 = vweird.f32 %v2759_v33 }
 0x19e   :  { %vm2797_vm13 = vcmp.eq.f32.partialorder %v759_v45, 8.507059e+37  ;;  %v762_v57 = vor.u32 1.1754944e-38, %v761_v52  ;;  %v1104_v41 = vmul.f32 %v1103_v21, %v2481_v26  ;;  %v1140_v36 = vmul.f32 3.8918573e-05, %v2530_v25 }
 0x19f   :  { %1363 = vmatmul.bf16.vlgmr.msra.gmra.mxu1 %v1279_v56  ;;  %v780_v62 = vmul.f32 3.8918573e-05, %v2483_v12  ;;  %v1258_v9 = vadd.f32 1.0, %v1515_v7  ;;  %v724_v61 = vmul.f32 %v723_v34, %v2603_v58  ;;  %v752_v11 = vsub.f32 1.0, %v751_v0 }
 0x1a0   :  { %v820_v4 = vmul.f32 3.8918573e-05, %v2539_v3  ;;  %v1273_v28 = vmul.f32 %v1257_v63, %v2434_v8  ;;  %v1105_v1 = vadd.f32 0.112945676, %v1104_v41  ;;  %v1141_v37 = vadd.f32 0.001143296, %v1140_v36 }
 0x1a1   :  { %v781_v20 = vadd.f32 0.001143296, %v780_v62  ;;  %v1274_v35 = vmul.f32 %v1258_v9, %v2458_v22  ;;  %v753_v44 = vmul.f32 %v1721_v18, %v752_v11  ;;  %vm756_vm14 = vweird.f32 %v1721_v18 }
 0x1a2   :  { %v821_v21 = vadd.f32 0.001143296, %v820_v4  ;;  %v1106_v39 = vmul.f32 %v1105_v1, %v2481_v26  ;;  %v1142_v46 = vmul.f32 %v1141_v37, %v2530_v25  ;;  %v1180_v58 = vmul.f32 3.8918573e-05, %v2575_v13  ;;  %vm757_vm15 = vmor %vm755_vm12, %vm756_vm14 }
 0x1a3   :  { %v782_v45 = vmul.f32 %v781_v20, %v2483_v12  ;;  %v1284_v29 = vpack.c.bf16 %v1274_v35, %v1273_v28  ;;  %v1506_v16 = vclamps-f32 %v724_v61, 1.0  ;;  %v754_v47 = vadd.f32 %v1721_v18, %v753_v44 }
 0x1a4   :  { %v822_v8 = vmul.f32 %v821_v21, %v2539_v3  ;;  %v1215_v52 = vmul.f32 %v1214_v27, %v2702_v51  ;;  %v1107_v22 = vadd.f32 0.4994258, %v1106_v39  ;;  %v1143_v32 = vadd.f32 0.014752088, %v1142_v46 }
 0x1a5   :  { %v783_v49 = vadd.f32 0.014752088, %v782_v45  ;;  %1388 = vmatmul.bf16.gmra.mxu3 %v1284_v29  ;;  %v758_v56 = vsel %vm757_vm15, %v1721_v18, %v754_v47  ;;  %v1181_v34 = vadd.f32 0.001143296, %v1180_v58  ;;  %v1220_v7 = vmul.f32 3.8918573e-05, %v2702_v51 }
 0x1a6   :  { %v823_v63 = vadd.f32 0.014752088, %v822_v8  ;;  %v763_v0 = vsel %vm2797_vm13, %v762_v57, %v758_v56  ;;  %v1108_v41 = vmul.f32 %v1107_v22, %v2481_v26  ;;  %v1144_v36 = vmul.f32 %v1143_v32, %v2530_v25 }
 0x1a7   :  { %v784_v27 = vmul.f32 %v783_v49, %v2483_v12  ;;  %v764_v33 = vmul.f32 %v763_v0, %v2617_v19  ;;  %v1182_v9 = vmul.f32 %v1181_v34, %v2575_v13  ;;  %v1221_v18 = vadd.f32 0.001143296, %v1220_v7 }
 0x1a8   :  { %v824_v62 = vmul.f32 %v823_v63, %v2539_v3  ;;  %v1249_v61 = vadd.f32 1.0, %v1506_v16  ;;  %v2825_v11 = vadd.f32 1.0, %v1108_v41  ;;  %v1145_v4 = vadd.f32 0.112945676, %v1144_v36 }
 0x1a9   :  { %v785_v28 = vadd.f32 0.112945676, %v784_v27  ;;  %v1507_v50 = vclamps-f32 %v764_v33, 1.0  ;;  %v1183_v1 = vadd.f32 0.014752088, %v1182_v9  ;;  %v1222_v26 = vmul.f32 %v1221_v18, %v2702_v51 }
 0x1aa   :  { %v825_v57 = vadd.f32 0.112945676, %v824_v62  ;;  %v1178_v37 = vadd.f32 1.1283791, %v2728_v23  ;;  %v854_v20 = vadd.f32 0.05243302, %v2731_v60  ;;  %1722 = vrcp.f32 %v2825_v11 }
 0x1ab   :  { %v1216_v19 = vadd.f32 0.18741608, %v1215_v52  ;;  %v1250_v35 = vadd.f32 1.0, %v1507_v50  ;;  %v1146_v44 = vmul.f32 %v1145_v4, %v2530_v25  ;;  %v786_v21 = vmul.f32 %v785_v28, %v2483_v12 }
 0x1ac   :  { %v826_v39 = vmul.f32 %v825_v57, %v2539_v3  ;;  %v892_v46 = vadd.f32 0.0036580483, %v2791_v38  ;;  %v1265_v45 = vmul.f32 %v1249_v61, %v2453_v14  ;;  %v1184_v58 = vmul.f32 %v1183_v1, %v2575_v13 }
 0x1ad   :  { %v1223_v29 = vadd.f32 0.014752088, %v1222_v26  ;;  %v1266_v23 = vmul.f32 %v1250_v35, %v2537_v6  ;;  %v1147_v60 = vadd.f32 0.4994258, %v1146_v44  ;;  %v787_v16 = vadd.f32 0.4994258, %v786_v21 }
 0x1ae   :  { %v827_v47 = vadd.f32 0.4994258, %v826_v39  ;;  %v2839_v8 = vmul.f32 %v854_v20, %v2636_v10  ;;  %v1217_v52 = vmul.f32 %v1216_v19, %v2702_v51  ;;  %v1185_v22 = vadd.f32 0.112945676, %v1184_v58 }
 0x1af   :  { %v1224_v32 = vmul.f32 %v1223_v29, %v2702_v51  ;;  %v1280_v49 = vpack.c.bf16 %v1266_v23, %v1265_v45  ;;  %v1148_v38 = vmul.f32 %v1147_v60, %v2530_v25  ;;  %v788_v14 = vmul.f32 %v787_v16, %v2483_v12 }
 0x1b0   :  { %v828_v56 = vmul.f32 %v827_v47, %v2539_v3  ;;  %v1723_v63 = vpop.eup %1722  ;;  %v2847_v6 = vmul.f32 %v1178_v37, %v2558_v43  ;;  %v1186_v34 = vmul.f32 %v1185_v22, %v2575_v13  ;;  %v860_v0 = vmul.f32 3.8918573e-05, %v2636_v10 }
 0x1b1   :  { %v1225_v7 = vadd.f32 0.112945676, %v1224_v32  ;;  %v2852_v41 = vmul.f32 %v892_v46, %v2724_v48  ;;  %1368 = vmatmul.bf16.gmra.mxu1 %v1280_v49  ;;  %v1111_v36 = vmul.f32 %v1723_v63, %v2825_v11  ;;  %v2855_v25 = vadd.f32 1.0, %v1148_v38 }
 0x1b2   :  { %v2857_v12 = vadd.f32 1.0, %v788_v14  ;;  %v2859_v3 = vadd.f32 1.1283791, %v1217_v52  ;;  %v1119_v43 = vand.u32 2147483647, %v2825_v11  ;;  %v1121_v27 = vand.u32 2147483648, %v2825_v11 }
 0x1b3   :  { %v2863_v33 = vadd.f32 1.0, %v828_v56  ;;  %v1112_v62 = vsub.f32 1.0, %v1111_v36  ;;  %1724 = vrcp.f32 %v2855_v25  ;;  %v1187_v9 = vadd.f32 0.4994258, %v1186_v34 }
 0x1b4   :  { %v900_v18 = vmul.f32 3.8918573e-05, %v2724_v48  ;;  %vm1115_vm0 = vweird.f32 %v2825_v11  ;;  %1726 = vrcp.f32 %v2857_v12  ;;  %v1226_v61 = vmul.f32 %v1225_v7, %v2702_v51 }
 0x1b5   :  { %v861_v4 = vadd.f32 0.001143296, %v860_v0  ;;  %v1113_v28 = vmul.f32 %v1723_v63, %v1112_v62  ;;  %vm1116_vm1 = vweird.f32 %v1723_v63  ;;  %v1161_v50 = vand.u32 2147483648, %v2855_v25 }
 0x1b6   :  { %1728 = vrcp.f32 %v2863_v33  ;;  %vm2872_vm2 = vcmp.eq.f32.partialorder %v1119_v43, 8.507059e+37  ;;  %v1122_v1 = vor.u32 1.1754944e-38, %v1121_v27  ;;  %v1159_v26 = vand.u32 2147483647, %v2855_v25  ;;  %vm1117_vm3 = vmor %vm1115_vm0, %vm1116_vm1 }
 0x1b7   :  { %v801_v37 = vand.u32 2147483648, %v2857_v12  ;;  %v1114_v20 = vadd.f32 %v1723_v63, %v1113_v28  ;;  %v799_v19 = vand.u32 2147483647, %v2857_v12  ;;  %v1188_v35 = vmul.f32 %v1187_v9, %v2575_v13 }
 0x1b8   :  { %v901_v44 = vadd.f32 0.001143296, %v900_v18  ;;  %vm1155_vm4 = vweird.f32 %v2855_v25  ;;  %v839_v21 = vand.u32 2147483647, %v2863_v33  ;;  %v1227_v39 = vadd.f32 0.4994258, %v1226_v61 }
 0x1b9   :  { %v862_v46 = vmul.f32 %v861_v4, %v2636_v10  ;;  %v1725_v45 = vpop.eup %1724  ;;  %v1118_v58 = vsel %vm1117_vm3, %v1723_v63, %v1114_v20  ;;  %v1162_v29 = vor.u32 1.1754944e-38, %v1161_v50  ;;  %vm795_vm5 = vweird.f32 %v2857_v12 }
 0x1ba   :  { %v2886_v23 = vadd.f32 1.0, %v1188_v35  ;;  %v1727_v60 = vpop.eup %1726  ;;  %v1123_v13 = vsel %vm2872_vm2, %v1122_v1, %v1118_v58  ;;  %v1151_v11 = vmul.f32 %v1725_v45, %v2855_v25  ;;  %vm2891_vm6 = vcmp.eq.f32.partialorder %v1159_v26, 8.507059e+37 }
 0x1bb   :  { %v802_v47 = vor.u32 1.1754944e-38, %v801_v37  ;;  %vm835_vm7 = vweird.f32 %v2863_v33  ;;  %v1228_v52 = vmul.f32 %v1227_v39, %v2702_v51  ;;  %v1124_v32 = vmul.f32 %v1123_v13, %v2697_v5 }
 0x1bc   :  { %v1729_v22 = vpop.eup %1728  ;;  %v791_v49 = vmul.f32 %v1727_v60, %v2857_v12  ;;  %vm2899_vm8 = vcmp.eq.f32.partialorder %v799_v19, 8.507059e+37  ;;  %v841_v14 = vand.u32 2147483648, %v2863_v33  ;;  %1730 = vrcp.f32 %v2886_v23 }
 0x1bd   :  { %v1152_v56 = vsub.f32 1.0, %v1151_v11  ;;  %v831_v63 = vmul.f32 %v1729_v22, %v2863_v33  ;;  %vm2906_vm9 = vcmp.eq.f32.partialorder %v839_v21, 8.507059e+37  ;;  %v863_v51 = vadd.f32 0.014752088, %v862_v46 }
 0x1be   :  { %v1516_v7 = vclamps-f32 %v1124_v32, 1.0  ;;  %vm1156_vm10 = vweird.f32 %v1725_v45  ;;  %v792_v5 = vsub.f32 1.0, %v791_v49  ;;  %v1199_v0 = vand.u32 2147483647, %v2886_v23 }
 0x1bf   :  { %v1153_v36 = vmul.f32 %v1725_v45, %v1152_v56  ;;  %v832_v43 = vsub.f32 1.0, %v831_v63  ;;  %v1201_v27 = vand.u32 2147483648, %v2886_v23  ;;  %v2912_v62 = vadd.f32 1.0, %v1228_v52  ;;  %vm1157_vm13 = vmor %vm1155_vm4, %vm1156_vm10 }
 0x1c0   :  { %v1259_v9 = vadd.f32 1.0, %v1516_v7  ;;  %v793_v18 = vmul.f32 %v1727_v60, %v792_v5  ;;  %vm796_vm11 = vweird.f32 %v1727_v60  ;;  %v902_v61 = vmul.f32 %v901_v44, %v2724_v48 }
 0x1c1   :  { %v1154_v4 = vadd.f32 %v1725_v45, %v1153_v36  ;;  %v833_v28 = vmul.f32 %v1729_v22, %v832_v43  ;;  %vm836_vm12 = vweird.f32 %v1729_v22  ;;  %1732 = vrcp.f32 %v2912_v62  ;;  %vm797_vm15 = vmor %vm795_vm5, %vm796_vm11 }
 0x1c2   :  { %v1731_v50 = vpop.eup %1730  ;;  %v794_v57 = vadd.f32 %v1727_v60, %v793_v18  ;;  %v842_v1 = vor.u32 1.1754944e-38, %v841_v14  ;;  %vm1195_vm14 = vweird.f32 %v2886_v23  ;;  %v864_v26 = vmul.f32 %v863_v51, %v2636_v10  ;;  %vm837_vm1 = vmor %vm835_vm7, %vm836_vm12 }
 0x1c3   :  { %v1158_v37 = vsel %vm1157_vm13, %v1725_v45, %v1154_v4  ;;  %v834_v20 = vadd.f32 %v1729_v22, %v833_v28  ;;  %v1191_v19 = vmul.f32 %v1731_v50, %v2886_v23  ;;  %vm2924_vm0 = vcmp.eq.f32.partialorder %v1199_v0, 8.507059e+37 }
 0x1c4   :  { %v1202_v44 = vor.u32 1.1754944e-38, %v1201_v27  ;;  %v1163_v25 = vsel %vm2891_vm6, %v1162_v29, %v1158_v37  ;;  %v1275_v21 = vmul.f32 %v1259_v9, %v2562_v24  ;;  %v798_v39 = vsel %vm797_vm15, %v1727_v60, %v794_v57 }
 0x1c5   :  { %v1239_v12 = vand.u32 2147483647, %v2912_v62  ;;  %v1164_v46 = vmul.f32 %v1163_v25, %v2716_v55  ;;  %v803_v45 = vsel %vm2899_vm8, %v802_v47, %v798_v39  ;;  %v838_v58 = vsel %vm837_vm1, %v1729_v22, %v834_v20 }
 0x1c6   :  { %v1192_v13 = vsub.f32 1.0, %v1191_v19  ;;  %v804_v11 = vmul.f32 %v803_v45, %v2708_v53  ;;  %v843_v29 = vsel %vm2906_vm9, %v842_v1, %v838_v58  ;;  %v865_v24 = vadd.f32 0.112945676, %v864_v26 }
 0x1c7   :  { %v903_v60 = vadd.f32 0.014752088, %v902_v61  ;;  %v1733_v16 = vpop.eup %1732  ;;  %v1517_v52 = vclamps-f32 %v1164_v46, 1.0  ;;  %v844_v33 = vmul.f32 %v843_v29, %v2719_v31  ;;  %vm1196_vm2 = vweird.f32 %v1731_v50 }
 0x1c8   :  { %v1193_v32 = vmul.f32 %v1731_v50, %v1192_v13  ;;  %v1508_v49 = vclamps-f32 %v804_v11, 1.0  ;;  %v1231_v55 = vmul.f32 %v1733_v16, %v2912_v62  ;;  %v1241_v47 = vand.u32 2147483648, %v2912_v62  ;;  %vm1197_vm3 = vmor %vm1195_vm14, %vm1196_vm2 }
 0x1c9   :  { %v866_v22 = vmul.f32 %v865_v24, %v2636_v10  ;;  %v1260_v38 = vadd.f32 1.0, %v1517_v52  ;;  %v1509_v53 = vclamps-f32 %v844_v33, 1.0  ;;  %v904_v56 = vmul.f32 %v903_v60, %v2724_v48 }
 0x1ca   :  { %v1194_v14 = vadd.f32 %v1731_v50, %v1193_v32  ;;  %v1251_v63 = vadd.f32 1.0, %v1508_v49  ;;  %v1232_v34 = vsub.f32 1.0, %v1231_v55  ;;  %vm1236_vm4 = vweird.f32 %v1733_v16 }
 0x1cb   :  { %v867_v31 = vadd.f32 0.4994258, %v866_v22  ;;  %v1276_v51 = vmul.f32 %v1260_v38, %v2607_v30  ;;  %v1252_v7 = vadd.f32 1.0, %v1509_v53  ;;  %v905_v0 = vadd.f32 0.112945676, %v904_v56 }
 0x1cc   :  { %v1198_v5 = vsel %vm1197_vm3, %v1731_v50, %v1194_v14  ;;  %v1267_v36 = vmul.f32 %v1251_v63, %v2590_v42  ;;  %v1233_v27 = vmul.f32 %v1733_v16, %v1232_v34  ;;  %v894_v30 = vadd.f32 0.05243302, %v2852_v41 }
 0x1cd   :  { %v1203_v43 = vsel %vm2924_vm0, %v1202_v44, %v1198_v5  ;;  %v868_v9 = vmul.f32 %v867_v31, %v2636_v10  ;;  %v1285_v18 = vpack.c.bf16 %v1276_v51, %v1275_v21  ;;  %v1268_v23 = vmul.f32 %v1252_v7, %v2611_v2 }
 0x1ce   :  { %v1204_v61 = vmul.f32 %v1203_v43, %v2847_v6  ;;  %v906_v4 = vmul.f32 %v905_v0, %v2724_v48  ;;  %v1234_v28 = vadd.f32 %v1733_v16, %v1233_v27  ;;  %vm1235_vm5 = vweird.f32 %v2912_v62  ;;  %v3166_v27 = vld [vmem:[#allocation34_spill] sm:$0xff] }
 0x1cf   :  { %v869_v50 = vadd.f32 1.0, %v868_v9  ;;  %1393 = vmatmul.bf16.gmra.mxu3 %v1285_v18  ;;  %v1281_v42 = vpack.c.bf16 %v1268_v23, %v1267_v36  ;;  %vm1237_vm6 = vmor %vm1235_vm5, %vm1236_vm4  ;;  %v1242_v57 = vor.u32 1.1754944e-38, %v1241_v47  ;;  %v1219_v26 = vmul.f32 %v2859_v3, %v2683_v17 }
 0x1d0   :  { %v907_v1 = vadd.f32 0.4994258, %v906_v4  ;;  %v1238_v2 = vsel %vm1237_vm6, %v1733_v16, %v1234_v28  ;;  %vm1240_vm7 = vcmp.eq.f32.partialorder %v1239_v12, 8.507059e+37  ;;  %v1518_v6 = vclamps-f32 %v1204_v61, 1.0 }
 0x1d1   :  { %1734 = vrcp.f32 %v869_v50  ;;  %1373 = vmatmul.bf16.gmra.mxu1 %v1281_v42  ;;  %v1243_v37 = vsel %vm1240_vm7, %v1242_v57, %v1238_v2  ;;  %v856_v62 = vadd.f32 0.18741608, %v2839_v8  ;;  %v895_v20 = vmul.f32 %v894_v30, %v2724_v48  ;;  %v3167_v57 = vld [vmem:[#allocation18_spill] sm:$0xff]  ;;  %v3168_v2 = vld [vmem:[#allocation19_spill] sm:$0xff] }
 0x1d2   :  { %v908_v41 = vmul.f32 %v907_v1, %v2724_v48  ;;  %v1244_v19 = vmul.f32 %v1243_v37, %v1219_v26  ;;  %v1261_v25 = vadd.f32 1.0, %v1518_v6  ;;  %v590_v3 = vmul.f32 0.5, %v2669_v40  ;;  %v3165_v40 = vld [vmem:[#allocation35_spill] sm:$0xff]  ;;  %v3169_v6 = vld [vmem:[#allocation2_spill] sm:$0xff] }
 0x1d3   :  { %v857_v17 = vmul.f32 %v856_v62, %v2636_v10  ;;  %v896_v39 = vadd.f32 0.18741608, %v895_v20  ;;  %v589_v46 = vmul.f32 0.5, %v2545_v54  ;;  %v881_v24 = vand.u32 2147483648, %v869_v50 }
 0x1d4   :  { %v909_v35 = vadd.f32 1.0, %v908_v41  ;;  %v1519_v44 = vclamps-f32 %v1244_v19, 1.0  ;;  %v879_v33 = vand.u32 2147483647, %v869_v50  ;;  %vm875_vm9 = vweird.f32 %v869_v50  ;;  %v3170_v41 = vld [vmem:[#allocation4_spill] sm:$0xff] }
 0x1d5   :  { %v1277_v13 = vmul.f32 %v1261_v25, %v589_v46  ;;  %v858_v11 = vadd.f32 1.1283791, %v857_v17  ;;  %v897_v29 = vmul.f32 %v896_v39, %v2724_v48  ;;  %v882_v54 = vor.u32 1.1754944e-38, %v881_v24  ;;  %v3171_v25 = vld [vmem:[#allocation20_spill] sm:$0xff] }
 0x1d6   :  { %1736 = vrcp.f32 %v909_v35  ;;  %v1262_v12 = vadd.f32 1.0, %v1519_v44  ;;  %vm880_vm11 = vcmp.eq.f32.partialorder %v879_v33, 8.507059e+37  ;;  %v921_v38 = vand.u32 2147483648, %v909_v35 }
 0x1d7   :  { %v1735_v21 = vpop.eup %1734  ;;  %v859_v49 = vmul.f32 %v858_v11, %v3165_v40  ;;  %v898_v47 = vadd.f32 1.1283791, %v897_v29  ;;  %v919_v14 = vand.u32 2147483647, %v909_v35  ;;  %vm915_vm13 = vweird.f32 %v909_v35  ;;  %v3177_v40 = vld [vmem:[#allocation6_spill] sm:$0xff] }
 0x1d8   :  { %v871_v45 = vmul.f32 %v1735_v21, %v869_v50  ;;  %v1278_v58 = vmul.f32 %v1262_v12, %v590_v3  ;;  %vm876_vm8 = vweird.f32 %v1735_v21  ;;  %v922_v34 = vor.u32 1.1754944e-38, %v921_v38  ;;  %v3172_v3 = vld [vmem:[#allocation21_spill] sm:$0xff]  ;;  %v3173_v12 = vld [vmem:[#allocation3_spill] sm:$0xff] }
 0x1d9   :  { %vm877_vm10 = vmor %vm875_vm9, %vm876_vm8  ;;  %v899_v31 = vmul.f32 %v898_v47, %v2686_v59  ;;  %vm920_vm15 = vcmp.eq.f32.partialorder %v919_v14, 8.507059e+37  ;;  %v581_v9 = vmul.f32 0.5, %v3166_v27  ;;  %v582_v18 = vmul.f32 0.5, %v2672_v15  ;;  %v2975_v59 = vld [vmem:[%s3055_s6] ss:$0 sm:$0xff]  ;;  %v3180_v14 = vld [vmem:[#allocation25_spill] sm:$0xff] }
 0x1da   :  { %v872_v8 = vsub.f32 1.0, %v871_v45  ;;  %v1286_v16 = vpack.c.bf16 %v1278_v58, %v1277_v13  ;;  %v3174_v45 = vld [vmem:[#allocation5_spill] sm:$0xff]  ;;  %v3183_v27 = vld [vmem:[#allocation28_spill] sm:$0xff] }
 0x1dc   :  { %v1737_v60 = vpop.eup %1736  ;;  %v873_v52 = vmul.f32 %v1735_v21, %v872_v8 }
 0x1dd   :  { %v911_v10 = vmul.f32 %v1737_v60, %v909_v35  ;;  %vm916_vm12 = vweird.f32 %v1737_v60 }
 0x1de   :  { %v874_v32 = vadd.f32 %v1735_v21, %v873_v52  ;;  %vm917_vm14 = vmor %vm915_vm13, %vm916_vm12 }
 0x1df   :  { %v912_v55 = vsub.f32 1.0, %v911_v10  ;;  %1398 = vmatmul.bf16.gmra.mxu3 %v1286_v16  ;;  %v3176_v10 = vld [vmem:[#allocation23_spill] sm:$0xff] }
 0x1e0   :  { %v878_v22 = vsel %vm877_vm10, %v1735_v21, %v874_v32 }
 0x1e1   :  { %v883_v48 = vsel %vm880_vm11, %v882_v54, %v878_v22  ;;  %v913_v53 = vmul.f32 %v1737_v60, %v912_v55  ;;  %v3178_v54 = vld [vmem:[#allocation7_spill] sm:$0xff]  ;;  %v3179_v22 = vld [vmem:[#allocation24_spill] sm:$0xff] }
 0x1e2   :  { %v884_v56 = vmul.f32 %v883_v48, %v859_v49 }
 0x1e3   :  { %v914_v63 = vadd.f32 %v1737_v60, %v913_v53 }
 0x1e4   :  { %v1510_v51 = vclamps-f32 %v884_v56, 1.0 }
 0x1e5   :  { %v918_v7 = vsel %vm917_vm14, %v1737_v60, %v914_v63  ;;  %v3175_v60 = vld [vmem:[#allocation22_spill] sm:$0xff]  ;;  %v3181_v63 = vld [vmem:[#allocation8_spill] sm:$0xff] }
 0x1e6   :  { %v923_v5 = vsel %vm920_vm15, %v922_v34, %v918_v7  ;;  %v1253_v43 = vadd.f32 1.0, %v1510_v51 }
 0x1e7   :  { %v924_v0 = vmul.f32 %v923_v5, %v899_v31  ;;  %v3182_v31 = vld [vmem:[#allocation9_spill] sm:$0xff] }
 0x1e8   :  { %v1269_v61 = vmul.f32 %v1253_v43, %v581_v9 }
 0x1e9   :  { %v1511_v36 = vclamps-f32 %v924_v0, 1.0 }
 0x1eb   :  { %v1254_v23 = vadd.f32 1.0, %v1511_v36 }
 0x1ed   :  { %v1270_v4 = vmul.f32 %v1254_v23, %v582_v18 }
 0x1ef   :  { %v1282_v30 = vpack.c.bf16 %v1270_v4, %v1269_v61  ;;  %v3184_v61 = vld [vmem:[#allocation29_spill] sm:$0xff] }
 0x1f1   :  { %1378 = vmatmul.bf16.gmra.mxu1 %v1282_v30 }
 0x1f8   :  { %v1384_v28 = vpop.f32.mrf.mxu3 }
 0x1f9   :  { %v1385_v50 = vadd.f32 %v2975_v59, %v1384_v28  ;;  %v3185_v28 = vld [vmem:[#allocation12_spill] sm:$0xff] }
 0x1fb   :  { %v1412_v1 = vadd.f32 %v1385_v50, %v3167_v57 }
 0x1fd   :  { %v1428_v37 = vadd.f32 %v3169_v6, %v1412_v1  ;;  %v3187_v1 = vld [vmem:[#allocation13_spill] sm:$0xff]  ;;  %v3188_v6 = vld [vmem:[#allocation27_spill] sm:$0xff] }
 0x200   :  { %v1386_v42 = vpop.f32.mrf.mxu3 }
 0x201   :  { %v1387_v26 = vadd.f32 %v2975_v59, %v1386_v42  ;;  %v3186_v42 = vld [vmem:[#allocation26_spill] sm:$0xff] }
 0x203   :  { %v1413_v15 = vadd.f32 %v1387_v26, %v3168_v2 }
 0x205   :  { %v1429_v62 = vadd.f32 %v3170_v41, %v1413_v15  ;;  %v3189_v41 = vld [vmem:[#allocation11_spill] sm:$0xff] }
 0x207   :  { %v1623_v20 = vpack.c.bf16 %v1429_v62, %v1428_v37 }
 0x209   :  { %1650 = vst [vmem:[%s3056_s7 + $0x20] sm:$0xff] %v1623_v20   ;;  %v3190_v20 = vld [vmem:[#allocation10_spill] sm:$0xff] }
 0x21c   :  { %v1364_v19 = vpop.f32.mrf.mxu1 }
 0x21d   :  { %v1365_v35 = vadd.f32 %v2975_v59, %v1364_v19 }
 0x21f   :  { %v1404_v21 = vadd.f32 %v1365_v35, %v3171_v25 }
 0x221   :  { %v1420_v46 = vadd.f32 %v3173_v12, %v1404_v21 }
 0x224   :  { %v1366_v44 = vpop.f32.mrf.mxu1 }
 0x225   :  { %v1367_v17 = vadd.f32 %v2975_v59, %v1366_v44 }
 0x227   :  { %v1405_v39 = vadd.f32 %v1367_v17, %v3172_v3  ;;  %v3191_v17 = vld [vmem:[#allocation30_spill] sm:$0xff] }
 0x228   :  { %v1389_v13 = vpop.f32.mrf.mxu3 }
 0x229   :  { %v1421_v58 = vadd.f32 %v3174_v45, %v1405_v39  ;;  %v1390_v11 = vadd.f32 %v2975_v59, %v1389_v13 }
 0x22b   :  { %v1603_v8 = vpack.c.bf16 %v1421_v58, %v1420_v46  ;;  %v1414_v16 = vadd.f32 %v1390_v11, %v3175_v60  ;;  %v3192_v46 = vld [vmem:[#allocation31_spill] sm:$0xff]  ;;  %v3193_v58 = vld [vmem:[#allocation14_spill] sm:$0xff] }
 0x22d   :  { %1604 = vst [vmem:[%s3056_s7] sm:$0xff] %v1603_v8   ;;  %v1430_v49 = vadd.f32 %v3177_v40, %v1414_v16  ;;  %v3194_v8 = vld [vmem:[#allocation15_spill] sm:$0xff]  ;;  %v3195_v16 = vld [vmem:[#allocation32_spill] sm:$0xff]  ;;  %v3197_v40 = vld [vmem:[#allocation17_spill] sm:$0xff] }
 0x22e   :  { %v1369_v29 = vpop.f32.mrf.mxu1 }
 0x22f   :  { %v1370_v33 = vadd.f32 %v2975_v59, %v1369_v29 }
 0x230   :  { %v1391_v24 = vpop.f32.mrf.mxu3 }
 0x231   :  { %v1392_v52 = vadd.f32 %v2975_v59, %v1391_v24  ;;  %v1406_v38 = vadd.f32 %v1370_v33, %v3179_v22 }
 0x233   :  { %v1415_v32 = vadd.f32 %v1392_v52, %v3176_v10  ;;  %v1422_v34 = vadd.f32 %v3181_v63, %v1406_v38  ;;  %v3196_v10 = vld [vmem:[#allocation33_spill] sm:$0xff] }
 0x235   :  { %v1431_v55 = vadd.f32 %v3178_v54, %v1415_v32  ;;  %v3198_v54 = vld [vmem:[#allocation16_spill] sm:$0xff] }
 0x236   :  { %v1371_v47 = vpop.f32.mrf.mxu1 }
 0x237   :  { %v1628_v48 = vpack.c.bf16 %v1431_v55, %v1430_v49  ;;  %v1372_v53 = vadd.f32 %v2975_v59, %v1371_v47 }
 0x239   :  { %1651 = vst [vmem:[%s3056_s7 + $0x28] sm:$0xff] %v1628_v48   ;;  %v1407_v56 = vadd.f32 %v1372_v53, %v3180_v14 }
 0x23b   :  { %v1423_v51 = vadd.f32 %v3182_v31, %v1407_v56 }
 0x23d   :  { %v1608_v7 = vpack.c.bf16 %v1423_v51, %v1422_v34 }
 0x23f   :  { %1647 = vst [vmem:[%s3056_s7 + $0x8] sm:$0xff] %v1608_v7  }
 0x24e   :  { %v1374_v5 = vpop.f32.mrf.mxu1 }
 0x24f   :  { %v1375_v36 = vadd.f32 %v2975_v59, %v1374_v5 }
 0x251   :  { %v1408_v9 = vadd.f32 %v1375_v36, %v3183_v27 }
 0x252   :  { %v1394_v0 = vpop.f32.mrf.mxu3 }
 0x253   :  { %v1395_v18 = vadd.f32 %v2975_v59, %v1394_v0  ;;  %v1424_v50 = vadd.f32 %v3185_v28, %v1408_v9 }
 0x255   :  { %v1416_v57 = vadd.f32 %v1395_v18, %v3186_v42 }
 0x256   :  { %v1376_v43 = vpop.f32.mrf.mxu1 }
 0x257   :  { %v1377_v23 = vadd.f32 %v2975_v59, %v1376_v43  ;;  %v1432_v62 = vadd.f32 %v3189_v41, %v1416_v57 }
 0x259   :  { %v1409_v4 = vadd.f32 %v1377_v23, %v3184_v61 }
 0x25a   :  { %v1396_v30 = vpop.f32.mrf.mxu3 }
 0x25b   :  { %v1425_v26 = vadd.f32 %v3187_v1, %v1409_v4  ;;  %v1397_v2 = vadd.f32 %v2975_v59, %v1396_v30 }
 0x25d   :  { %v1613_v15 = vpack.c.bf16 %v1425_v26, %v1424_v50  ;;  %v1417_v37 = vadd.f32 %v1397_v2, %v3188_v6 }
 0x25f   :  { %1648 = vst [vmem:[%s3056_s7 + $0x10] sm:$0xff] %v1613_v15   ;;  %v1433_v19 = vadd.f32 %v3190_v20, %v1417_v37 }
 0x261   :  { %v1633_v35 = vpack.c.bf16 %v1433_v19, %v1432_v62 }
 0x262   :  { %v1399_v44 = vpop.f32.mrf.mxu3 }
 0x263   :  { %1652 = vst [vmem:[%s3056_s7 + $0x30] sm:$0xff] %v1633_v35   ;;  %v1400_v25 = vadd.f32 %v2975_v59, %v1399_v44 }
 0x265   :  { %v1418_v3 = vadd.f32 %v1400_v25, %v3191_v17 }
 0x267   :  { %v1434_v13 = vadd.f32 %v3193_v58, %v1418_v3 }
 0x26a   :  { %v1401_v21 = vpop.f32.mrf.mxu3 }
 0x26b   :  { %v1402_v39 = vadd.f32 %v2975_v59, %v1401_v21 }
 0x26d   :  { %v1419_v45 = vadd.f32 %v1402_v39, %v3192_v46 }
 0x26e   :  { %v1379_v12 = vpop.f32.mrf.mxu1 }
 0x26f   :  { %v1435_v11 = vadd.f32 %v3194_v8, %v1419_v45  ;;  %v1380_v24 = vadd.f32 %v2975_v59, %v1379_v12 }
 0x271   :  { %v1638_v29 = vpack.c.bf16 %v1435_v11, %v1434_v13  ;;  %v1410_v52 = vadd.f32 %v1380_v24, %v3195_v16 }
 0x273   :  { %1653 = vst [vmem:[%s3056_s7 + $0x38] sm:$0xff] %v1638_v29   ;;  %v1426_v49 = vadd.f32 %v3197_v40, %v1410_v52 }
 0x276   :  { %v1381_v60 = vpop.f32.mrf.mxu1 }
 0x277   :  { %v1382_v33 = vadd.f32 %v2975_v59, %v1381_v60 }
 0x279   :  { %v1411_v32 = vadd.f32 %v1382_v33, %v3196_v10 }
 0x27b   :  { %v1427_v55 = vadd.f32 %v3198_v54, %v1411_v32 }
 0x27d   :  { %v1618_v47 = vpack.c.bf16 %v1427_v55, %v1426_v49 }
 0x27f   :  { %1649 = vst [vmem:[%s3056_s7 + $0x18] sm:$0xff] %v1618_v47  }

// kernel: _lambda_.13
= control target key start
LH: loop header
LB: loop body
LE: loop exit
PB: predicated region body
PF: predicated region fallthrough
CT: control target
= control target key end

     0   :  { %vm201_vm0 = vcmask 261120   ;;  %s540_s1 = inlined_call_operand.vmem [shape: bf16[288,128], index: 1, kind: input, shape index: {}]   ;;  %s541_s0 = inlined_call_operand.vmem [shape: bf16[32,288], index: 0, kind: input, shape index: {}]   ;;  %s542_s2 = inlined_call_operand.vmem [shape: f32[1,128], index: 2, kind: input, shape index: {}]   ;;  %s543_s3 = inlined_call_operand.vmem [shape: bf16[32,128], index: 3, kind: output, shape index: {}]  }
   0x1   :  { %v388_v0 = vld [vmem:[%s540_s1 + $0x38] sm:$0xff]  ;;  %v387_v2 = vld [vmem:[%s540_s1 + $0x30] sm:$0xff]  ;;  %v398_v3 = vld [vmem:[%s540_s1 + $0x88] sm:$0xff] }
   0x2   :  { %v396_v1 = vld [vmem:[%s540_s1 + $0x78] sm:$0xff]  ;;  %208 = vmatpush.bf16.msra.mxu0 %v388_v0  ;;  %410 = vmatpush.bf16.msra.mxu3 %v388_v0  ;;  %v395_v4 = vld [vmem:[%s540_s1 + $0x70] sm:$0xff]  ;;  %v397_v5 = vld [vmem:[%s540_s1 + $0x80] sm:$0xff] }
   0x3   :  { %227 = vmatpush.bf16.msra.mxu1 %v396_v1  ;;  %252 = vmatpush.bf16.msra.mxu2 %v398_v3  ;;  %v287_v6 = vld [vmem:[%s541_s0 + $0x8] sm:$0xf]  ;;  %v377_v7 = vld [vmem:[%s541_s0 + $0x10] sm:$0xf0]  ;;  %v385_v11 = vld [vmem:[%s540_s1 + $0x20] sm:$0xff] }
   0x4   :  { %v386_v8 = vld [vmem:[%s540_s1 + $0x28] sm:$0xff]  ;;  %v288_v10 = vor.u32 %v377_v7, %v287_v6  ;;  %v393_v12 = vld [vmem:[%s540_s1 + $0x60] sm:$0xff]  ;;  %v384_v13 = vld [vmem:[%s540_s1 + $0x18] sm:$0xff] }
   0x5   :  { %v394_v9 = vld [vmem:[%s540_s1 + $0x68] sm:$0xff]  ;;  %v392_v14 = vld [vmem:[%s540_s1 + $0x58] sm:$0xff]  ;;  %v383_v15 = vld [vmem:[%s540_s1 + $0x10] sm:$0xff] }
   0x6   :  { %209 = vmatpush.bf16.msra.mxu0 %v387_v2  ;;  %411 = vmatpush.bf16.msra.mxu3 %v387_v2  ;;  %v391_v16 = vld [vmem:[%s540_s1 + $0x50] sm:$0xff]  ;;  %v299_v17 = vld [vmem:[%s541_s0 + $0x20] sm:$0xf]  ;;  %v380_v18 = vld [vmem:[%s541_s0 + $0x28] sm:$0xf0] }
   0x7   :  { %228 = vmatpush.bf16.msra.mxu1 %v395_v4  ;;  %253 = vmatpush.bf16.msra.mxu2 %v397_v5  ;;  %v382_v19 = vld [vmem:[%s540_s1 + $0x8] sm:$0xff]  ;;  %v300_v21 = vor.u32 %v380_v18, %v299_v17  ;;  %v381_v22 = vld [vmem:[%s540_s1] sm:$0xff]  ;;  %v291_v25 = vld [vmem:[%s541_s0 + $0x18] sm:$0xf] }
   0x8   :  { %v390_v20 = vld [vmem:[%s540_s1 + $0x48] sm:$0xff]  ;;  %v279_v23 = vld [vmem:[%s541_s0] sm:$0xf]  ;;  %v379_v26 = vld [vmem:[%s541_s0 + $0x20] sm:$0xf0] }
   0x9   :  { %v376_v24 = vld [vmem:[%s541_s0 + $0x8] sm:$0xf0]  ;;  %v389_v27 = vld [vmem:[%s540_s1 + $0x40] sm:$0xff]  ;;  %v281_v29 = vld [vmem:[%s541_s0 + $0xc] sm:$0xf0]  ;;  %v292_v31 = vor.u32 %v379_v26, %v291_v25 }
   0xa   :  { %210 = vmatpush.bf16.msra.mxu0 %v386_v8  ;;  %412 = vmatpush.bf16.msra.mxu3 %v386_v8  ;;  %v375_v28 = vld [vmem:[%s541_s0 + $0x4] sm:$0xf]  ;;  %v280_v30 = vor.u32 %v376_v24, %v279_v23  ;;  %v378_v33 = vld [vmem:[%s541_s0 + $0x1c] sm:$0xf]  ;;  %v293_v34 = vld [vmem:[%s541_s0 + $0x24] sm:$0xf0] }
   0xb   :  { %229 = vmatpush.bf16.msra.mxu1 %v394_v9  ;;  %373 = vmatmul.msk.bf16.vlgmr.msra.gmra.mxu2 %vm201_vm0, %v288_v10  ;;  %v284_v32 = vor.u32 %v375_v28, %v281_v29  ;;  %v296_v35 = vor.u32 %v378_v33, %v293_v34  ;;  %v418_v38 = vld [vmem:[%s542_s2] ss:$0 sm:$0xff] }
   0xe   :  { %211 = vmatpush.bf16.msra.mxu0 %v385_v11  ;;  %413 = vmatpush.bf16.msra.mxu3 %v385_v11 }
   0xf   :  { %230 = vmatpush.bf16.msra.mxu1 %v393_v12 }
  0x12   :  { %212 = vmatpush.bf16.msra.mxu0 %v384_v13  ;;  %414 = vmatpush.bf16.msra.mxu3 %v384_v13 }
  0x13   :  { %231 = vmatpush.bf16.msra.mxu1 %v392_v14 }
  0x16   :  { %213 = vmatpush.bf16.msra.mxu0 %v383_v15  ;;  %415 = vmatpush.bf16.msra.mxu3 %v383_v15 }
  0x17   :  { %232 = vmatpush.bf16.msra.mxu1 %v391_v16 }
  0x1a   :  { %214 = vmatpush.bf16.msra.mxu0 %v382_v19  ;;  %416 = vmatpush.bf16.msra.mxu3 %v382_v19 }
  0x1b   :  { %233 = vmatpush.bf16.msra.mxu1 %v390_v20  ;;  %374 = vmatmul.msk.bf16.gmra.mxu2 %vm201_vm0, %v300_v21 }
  0x1e   :  { %215 = vmatpush.bf16.msra.mxu0 %v381_v22  ;;  %417 = vmatpush.bf16.msra.mxu3 %v381_v22 }
  0x1f   :  { %234 = vmatpush.bf16.msra.mxu1 %v389_v27 }
  0x21   :  { %216 = vmatmul.bf16.vlgmr.msra.gmra.mxu0 %v280_v30  ;;  %221 = vmatmul.bf16.vlgmr.msra.gmra.mxu3 %v292_v31 }
  0x22   :  { %235 = vmatmul.bf16.vlgmr.msra.gmra.mxu1 %v284_v32 }
  0x32   :  { %240 = vmatmul.bf16.gmra.mxu1 %v296_v35 }
  0x8e   :  { %v255_v36 = vpop.f32.mrf.mxu2 }
  0x96   :  { %v257_v41 = vpop.f32.mrf.mxu2 }
  0x9e   :  { %v217_v37 = vpop.f32.mrf.mxu0  ;;  %v260_v51 = vpop.f32.mrf.mxu2 }
  0x9f   :  { %v236_v39 = vpop.f32.mrf.mxu1  ;;  %v218_v40 = vadd.f32 %v418_v38, %v217_v37 }
  0xa1   :  { %v237_v43 = vadd.f32 %v236_v39, %v218_v40 }
  0xa3   :  { %v256_v48 = vadd.f32 %v255_v36, %v237_v43 }
  0xa4   :  { %v222_v46 = vpop.f32.mrf.mxu3 }
  0xa5   :  { %v223_v53 = vadd.f32 %v418_v38, %v222_v46 }
  0xa6   :  { %v219_v42 = vpop.f32.mrf.mxu0  ;;  %v262_v59 = vpop.f32.mrf.mxu2 }
  0xa7   :  { %v220_v44 = vadd.f32 %v418_v38, %v219_v42  ;;  %v238_v45 = vpop.f32.mrf.mxu1 }
  0xa9   :  { %v239_v47 = vadd.f32 %v238_v45, %v220_v44 }
  0xab   :  { %v258_v49 = vadd.f32 %v257_v41, %v239_v47 }
  0xac   :  { %v224_v54 = vpop.f32.mrf.mxu3 }
  0xad   :  { %v402_v50 = vpack.c.bf16 %v258_v49, %v256_v48  ;;  %v225_v55 = vadd.f32 %v418_v38, %v224_v54 }
  0xaf   :  { %403 = vst [vmem:[%s543_s3] sm:$0xff] %v402_v50   ;;  %v241_v52 = vpop.f32.mrf.mxu1 }
  0xb0   :  { %v242_v56 = vadd.f32 %v241_v52, %v223_v53 }
  0xb2   :  { %v261_v60 = vadd.f32 %v260_v51, %v242_v56 }
  0xb7   :  { %v243_v57 = vpop.f32.mrf.mxu1 }
  0xb8   :  { %v244_v58 = vadd.f32 %v243_v57, %v225_v55 }
  0xba   :  { %v263_v61 = vadd.f32 %v262_v59, %v244_v58 }
  0xbc   :  { %v407_v62 = vpack.c.bf16 %v263_v61, %v261_v60 }
  0xbe   :  { %409 = vst [vmem:[%s543_s3 + $0x8] sm:$0xff] %v407_v62  }

// kernel: _lambda_.14
= control target key start
LH: loop header
LB: loop body
LE: loop exit
PB: predicated region body
PF: predicated region fallthrough
CT: control target
= control target key end

     0   :  { %s240_s0 = inlined_call_operand.vmem [shape: bf16[32,128], index: 0, kind: input, shape index: {}]   ;;  %s241_s1 = inlined_call_operand.vmem [shape: f32[1,128], index: 1, kind: input, shape index: {}]   ;;  %s242_s2 = inlined_call_operand.vmem [shape: f32[1,128], index: 2, kind: input, shape index: {}]   ;;  %s243_s3 = inlined_call_operand.vmem [shape: bf16[32,128], index: 3, kind: output, shape index: {}]  }
   0x1   :  { %v156_v0 = vld [vmem:[%s240_s0 + $0x8] sm:$0xff]   ;;  %v139_v1 = vld [vmem:[%s240_s0] sm:$0xff]  }
   0x2   :  { %v194_v2 = vunpack.c.l.bf16 %v156_v0  ;;  %v196_v3 = vunpack.c.l.bf16 %v139_v1  ;;  %v202_v5 = vunpack.c.h.bf16 %v139_v1  ;;  %v204_v6 = vunpack.c.h.bf16 %v156_v0  ;;  %v158_v55 = vld [vmem:[%s241_s1] ss:$0 sm:$0xff] }
   0x3   :  { %v159_v0 = vld [vmem:[%s242_s2] ss:$0 sm:$0xff] }
   0x4   :  { %26 = vadd.xlane.f32.xlu1 %v194_v2  ;;  %22 = vadd.xlane.f32.xlu0 %v196_v3  ;;  %v34_v4 = vmul.f32 %v196_v3, %v196_v3  ;;  %v35_v7 = vmul.f32 %v202_v5, %v202_v5  ;;  %v37_v8 = vmul.f32 %v204_v6, %v204_v6 }
   0x5   :  { %v36_v9 = vmul.f32 %v194_v2, %v194_v2 }
   0x6   :  { %38 = vadd.xlane.f32.xlu2 %v34_v4 }
   0xc   :  { %28 = vadd.xlane.f32.xlu1 %v204_v6  ;;  %24 = vadd.xlane.f32.xlu0 %v202_v5 }
   0xe   :  { %40 = vadd.xlane.f32.xlu2 %v35_v7 }
  0x14   :  { %44 = vadd.xlane.f32.xlu1 %v37_v8  ;;  %42 = vadd.xlane.f32.xlu0 %v36_v9 }
  0x77   :  { %v27_v10 = vpop.xlane.xlu1 %26  ;;  %v23_v11 = vpop.xlane.xlu0 %22 }
  0x78   :  { %v30_v12 = vmul.f32 0.015625, %v23_v11  ;;  %v214_v23 = vmul.f32 0.015625, %v27_v10 }
  0x79   :  { %v39_v13 = vpop.xlane.xlu2 %38 }
  0x7a   :  { %v50_v14 = vmul.f32 %v30_v12, %v30_v12  ;;  %v46_v15 = vmul.f32 0.015625, %v39_v13  ;;  %v52_v28 = vmul.f32 %v214_v23, %v214_v23  ;;  %v58_v51 = vsub.f32 %v196_v3, %v30_v12 }
  0x7b   :  { %v60_v11 = vsub.f32 %v194_v2, %v214_v23 }
  0x7c   :  { %v54_v16 = vsub.f32 %v46_v15, %v50_v14 }
  0x7e   :  { %v62_v17 = vadd.f32 1e-05, %v54_v16 }
  0x7f   :  { %v29_v18 = vpop.xlane.xlu1 %28  ;;  %v25_v19 = vpop.xlane.xlu0 %24 }
  0x80   :  { %v31_v20 = vmul.f32 0.015625, %v25_v19  ;;  %160 = vrsqrt.f32 %v62_v17  ;;  %v216_v25 = vmul.f32 0.015625, %v29_v18  ;;  %vm72_vm1 = vweird.f32 %v62_v17 }
  0x81   :  { %v41_v21 = vpop.xlane.xlu2 %40 }
  0x82   :  { %v51_v22 = vmul.f32 %v31_v20, %v31_v20  ;;  %v47_v24 = vmul.f32 0.015625, %v41_v21  ;;  %v53_v33 = vmul.f32 %v216_v25, %v216_v25  ;;  %v59_v60 = vsub.f32 %v202_v5, %v31_v20 }
  0x83   :  { %v61_v5 = vsub.f32 %v204_v6, %v216_v25 }
  0x84   :  { %v55_v26 = vsub.f32 %v47_v24, %v51_v22 }
  0x86   :  { %v161_v27 = vpop.eup %160  ;;  %v63_v29 = vadd.f32 1e-05, %v55_v26 }
  0x87   :  { %v45_v30 = vpop.xlane.xlu1 %44  ;;  %v43_v31 = vpop.xlane.xlu0 %42  ;;  %v67_v32 = vmul.f32 %v161_v27, %v62_v17  ;;  %vm73_vm0 = vweird.f32 %v161_v27 }
  0x88   :  { %v49_v34 = vmul.f32 0.015625, %v45_v30  ;;  %v48_v35 = vmul.f32 0.015625, %v43_v31  ;;  %162 = vrsqrt.f32 %v63_v29  ;;  %vm74_vm2 = vmor %vm72_vm1, %vm73_vm0  ;;  %vm82_vm4 = vweird.f32 %v63_v29 }
  0x89   :  { %v68_v36 = vmul.f32 %v161_v27, %v67_v32 }
  0x8a   :  { %v57_v37 = vsub.f32 %v49_v34, %v53_v33  ;;  %v56_v38 = vsub.f32 %v48_v35, %v52_v28 }
  0x8b   :  { %v69_v39 = vmul.f32 0.5, %v68_v36 }
  0x8c   :  { %v65_v40 = vadd.f32 1e-05, %v57_v37  ;;  %v64_v41 = vadd.f32 1e-05, %v56_v38 }
  0x8d   :  { %v70_v42 = vsub.f32 1.5, %v69_v39 }
  0x8e   :  { %164 = vrsqrt.f32 %v65_v40  ;;  %v163_v43 = vpop.eup %162  ;;  %vm102_vm8 = vweird.f32 %v65_v40  ;;  %vm92_vm10 = vweird.f32 %v64_v41 }
  0x8f   :  { %166 = vrsqrt.f32 %v64_v41  ;;  %v71_v44 = vmul.f32 %v161_v27, %v70_v42  ;;  %v77_v45 = vmul.f32 %v163_v43, %v63_v29  ;;  %vm83_vm3 = vweird.f32 %v163_v43 }
  0x90   :  { %vm84_vm5 = vmor %vm82_vm4, %vm83_vm3 }
  0x91   :  { %v78_v46 = vmul.f32 %v163_v43, %v77_v45  ;;  %v75_v48 = vsel %vm74_vm2, %v161_v27, %v71_v44 }
  0x92   :  { %v106_v56 = vmul.f32 %v75_v48, %v58_v51 }
  0x93   :  { %v79_v49 = vmul.f32 0.5, %v78_v46 }
  0x94   :  { %v165_v47 = vpop.eup %164  ;;  %v114_v1 = vmul.f32 %v158_v55, %v106_v56 }
  0x95   :  { %v167_v50 = vpop.eup %166  ;;  %v97_v52 = vmul.f32 %v165_v47, %v65_v40  ;;  %v80_v53 = vsub.f32 1.5, %v79_v49  ;;  %vm103_vm6 = vweird.f32 %v165_v47 }
  0x96   :  { %v87_v54 = vmul.f32 %v167_v50, %v64_v41  ;;  %vm93_vm7 = vweird.f32 %v167_v50  ;;  %vm104_vm9 = vmor %vm102_vm8, %vm103_vm6  ;;  %v122_v12 = vadd.f32 %v159_v0, %v114_v1 }
  0x97   :  { %v98_v57 = vmul.f32 %v165_v47, %v97_v52  ;;  %v81_v58 = vmul.f32 %v163_v43, %v80_v53  ;;  %vm94_vm11 = vmor %vm92_vm10, %vm93_vm7 }
  0x98   :  { %v88_v59 = vmul.f32 %v167_v50, %v87_v54 }
  0x99   :  { %v99_v61 = vmul.f32 0.5, %v98_v57  ;;  %v85_v62 = vsel %vm84_vm5, %v163_v43, %v81_v58 }
  0x9a   :  { %v89_v63 = vmul.f32 0.5, %v88_v59  ;;  %v107_v3 = vmul.f32 %v85_v62, %v59_v60 }
  0x9b   :  { %v100_v4 = vsub.f32 1.5, %v99_v61 }
  0x9c   :  { %v90_v7 = vsub.f32 1.5, %v89_v63  ;;  %v115_v8 = vmul.f32 %v158_v55, %v107_v3 }
  0x9d   :  { %v101_v9 = vmul.f32 %v165_v47, %v100_v4 }
  0x9e   :  { %v91_v10 = vmul.f32 %v167_v50, %v90_v7  ;;  %v123_v13 = vadd.f32 %v159_v0, %v115_v8 }
  0x9f   :  { %v105_v14 = vsel %vm104_vm9, %v165_v47, %v101_v9 }
  0xa0   :  { %v109_v15 = vmul.f32 %v105_v14, %v61_v5  ;;  %v95_v16 = vsel %vm94_vm11, %v167_v50, %v91_v10  ;;  %v149_v17 = vpack.c.bf16 %v123_v13, %v122_v12 }
  0xa1   :  { %v108_v18 = vmul.f32 %v95_v16, %v60_v11 }
  0xa2   :  { %v117_v19 = vmul.f32 %v158_v55, %v109_v15  ;;  %150 = vst [vmem:[%s243_s3] sm:$0xff] %v149_v17  }
  0xa3   :  { %v116_v6 = vmul.f32 %v158_v55, %v108_v18 }
  0xa4   :  { %v125_v20 = vadd.f32 %v159_v0, %v117_v19 }
  0xa5   :  { %v124_v21 = vadd.f32 %v159_v0, %v116_v6 }
  0xa7   :  { %v154_v22 = vpack.c.bf16 %v125_v20, %v124_v21 }
  0xa9   :  { %157 = vst [vmem:[%s243_s3 + $0x8] sm:$0xff] %v154_v22  }

// kernel: _lambda_.16
= control target key start
LH: loop header
LB: loop body
LE: loop exit
PB: predicated region body
PF: predicated region fallthrough
CT: control target
= control target key end

     0   :  { %s916_s0 = inlined_call_operand.vmem [shape: bf16[32,128], index: 0, kind: input, shape index: {}]   ;;  %s917_s1 = inlined_call_operand.vmem [shape: f32[1,128], index: 1, kind: input, shape index: {}]   ;;  %s918_s2 = inlined_call_operand.vmem [shape: f32[1,128], index: 2, kind: input, shape index: {}]   ;;  %s919_s4 = inlined_call_operand.vmem [shape: f32[1,128], index: 4, kind: input, shape index: {}]   ;;  %s920_s3 = inlined_call_operand.vmem [shape: bf16[128,128], index: 3, kind: input, shape index: {}]   ;;  %s921_s6 = inlined_call_operand.vmem [shape: f32[1,128], index: 6, kind: input, shape index: {}]   ;;  %s922_s5 = inlined_call_operand.vmem [shape: bf16[128,128], index: 5, kind: input, shape index: {}]   ;;  %s923_s7 = inlined_call_operand.vmem [shape: bf16[32,128], index: 7, kind: output, shape index: {}]  }
   0x1   :  { %v614_v0 = vld [vmem:[%s916_s0 + $0x8] sm:$0xff]   ;;  %v597_v1 = vld [vmem:[%s916_s0] sm:$0xff]   ;;  %v587_v10 = vld [vmem:[%s920_s3 + $0x38] sm:$0xff] }
   0x2   :  { %v698_v2 = vunpack.c.l.bf16 %v614_v0  ;;  %v700_v3 = vunpack.c.l.bf16 %v597_v1  ;;  %v706_v5 = vunpack.c.h.bf16 %v614_v0  ;;  %v708_v6 = vunpack.c.h.bf16 %v597_v1  ;;  %616 = vmatpush.bf16.msra.mxu2 %v587_v10  ;;  %208 = vmatpush.bf16.msra.mxu0 %v587_v10  ;;  %v586_v11 = vld [vmem:[%s920_s3 + $0x30] sm:$0xff]  ;;  %v585_v12 = vld [vmem:[%s920_s3 + $0x28] sm:$0xff]  ;;  %v584_v13 = vld [vmem:[%s920_s3 + $0x20] sm:$0xff] }
   0x3   :  { %v583_v14 = vld [vmem:[%s920_s3 + $0x18] sm:$0xff]  ;;  %v582_v15 = vld [vmem:[%s920_s3 + $0x10] sm:$0xff]  ;;  %v581_v20 = vld [vmem:[%s920_s3 + $0x8] sm:$0xff] }
   0x4   :  { %38 = vadd.xlane.f32.xlu0 %v698_v2  ;;  %v48_v4 = vmul.f32 %v698_v2, %v698_v2  ;;  %34 = vadd.xlane.f32.xlu2 %v700_v3  ;;  %v49_v7 = vmul.f32 %v706_v5, %v706_v5  ;;  %v46_v8 = vmul.f32 %v700_v3, %v700_v3  ;;  %v580_v24 = vld [vmem:[%s920_s3] sm:$0xff] }
   0x5   :  { %v47_v9 = vmul.f32 %v708_v6, %v708_v6  ;;  %v632_v63 = vld [vmem:[%s917_s1] ss:$0 sm:$0xff] }
   0x6   :  { %54 = vadd.xlane.f32.xlu1 %v48_v4  ;;  %617 = vmatpush.bf16.msra.mxu2 %v586_v11 }
   0x7   :  { %209 = vmatpush.bf16.msra.mxu0 %v586_v11 }
   0xa   :  { %618 = vmatpush.bf16.msra.mxu2 %v585_v12 }
   0xb   :  { %210 = vmatpush.bf16.msra.mxu0 %v585_v12 }
   0xc   :  { %40 = vadd.xlane.f32.xlu0 %v706_v5  ;;  %36 = vadd.xlane.f32.xlu2 %v708_v6 }
   0xe   :  { %56 = vadd.xlane.f32.xlu1 %v49_v7  ;;  %619 = vmatpush.bf16.msra.mxu2 %v584_v13 }
   0xf   :  { %211 = vmatpush.bf16.msra.mxu0 %v584_v13  ;;  %v633_v13 = vld [vmem:[%s918_s2] ss:$0 sm:$0xff] }
  0x12   :  { %620 = vmatpush.bf16.msra.mxu2 %v583_v14 }
  0x13   :  { %212 = vmatpush.bf16.msra.mxu0 %v583_v14 }
  0x14   :  { %50 = vadd.xlane.f32.xlu0 %v46_v8 }
  0x16   :  { %52 = vadd.xlane.f32.xlu1 %v47_v9  ;;  %621 = vmatpush.bf16.msra.mxu2 %v582_v15 }
  0x17   :  { %213 = vmatpush.bf16.msra.mxu0 %v582_v15 }
  0x1a   :  { %622 = vmatpush.bf16.msra.mxu2 %v581_v20 }
  0x1b   :  { %214 = vmatpush.bf16.msra.mxu0 %v581_v20 }
  0x1e   :  { %623 = vmatpush.bf16.msra.mxu2 %v580_v24 }
  0x1f   :  { %215 = vmatpush.bf16.msra.mxu0 %v580_v24 }
  0x77   :  { %v39_v16 = vpop.xlane.xlu0 %38  ;;  %v35_v17 = vpop.xlane.xlu2 %34 }
  0x78   :  { %v44_v18 = vmul.f32 0.015625, %v39_v16  ;;  %v742_v32 = vmul.f32 0.015625, %v35_v17 }
  0x79   :  { %v55_v19 = vpop.xlane.xlu1 %54 }
  0x7a   :  { %v64_v21 = vmul.f32 %v44_v18, %v44_v18  ;;  %v60_v22 = vmul.f32 0.015625, %v55_v19  ;;  %v62_v39 = vmul.f32 %v742_v32, %v742_v32  ;;  %v72_v58 = vsub.f32 %v698_v2, %v44_v18 }
  0x7b   :  { %v70_v19 = vsub.f32 %v700_v3, %v742_v32 }
  0x7c   :  { %v68_v23 = vsub.f32 %v60_v22, %v64_v21 }
  0x7e   :  { %v76_v25 = vadd.f32 1e-05, %v68_v23 }
  0x7f   :  { %v41_v26 = vpop.xlane.xlu0 %40  ;;  %v37_v29 = vpop.xlane.xlu2 %36 }
  0x80   :  { %636 = vrsqrt.f32 %v76_v25  ;;  %v45_v27 = vmul.f32 0.015625, %v41_v26  ;;  %v744_v34 = vmul.f32 0.015625, %v37_v29  ;;  %vm104_vm1 = vweird.f32 %v76_v25 }
  0x81   :  { %v57_v28 = vpop.xlane.xlu1 %56 }
  0x82   :  { %v65_v30 = vmul.f32 %v45_v27, %v45_v27  ;;  %v61_v31 = vmul.f32 0.015625, %v57_v28  ;;  %v63_v40 = vmul.f32 %v744_v34, %v744_v34  ;;  %v73_v7 = vsub.f32 %v706_v5, %v45_v27 }
  0x83   :  { %v71_v24 = vsub.f32 %v708_v6, %v744_v34  ;;  %v634_v34 = vld [vmem:[%s919_s4] ss:$0 sm:$0xff] }
  0x84   :  { %v69_v33 = vsub.f32 %v61_v31, %v65_v30 }
  0x86   :  { %v637_v35 = vpop.eup %636  ;;  %v77_v36 = vadd.f32 1e-05, %v69_v33 }
  0x87   :  { %v99_v37 = vmul.f32 %v637_v35, %v76_v25  ;;  %v51_v38 = vpop.xlane.xlu0 %50  ;;  %vm105_vm0 = vweird.f32 %v637_v35 }
  0x88   :  { %638 = vrsqrt.f32 %v77_v36  ;;  %v58_v41 = vmul.f32 0.015625, %v51_v38  ;;  %vm106_vm2 = vmor %vm104_vm1, %vm105_vm0  ;;  %vm114_vm4 = vweird.f32 %v77_v36 }
  0x89   :  { %v100_v42 = vmul.f32 %v637_v35, %v99_v37  ;;  %v53_v43 = vpop.xlane.xlu1 %52 }
  0x8a   :  { %v66_v44 = vsub.f32 %v58_v41, %v62_v39  ;;  %v59_v45 = vmul.f32 0.015625, %v53_v43  ;;  %v594_v41 = vld [vmem:[%s922_s5 + $0x30] sm:$0xff] }
  0x8b   :  { %v101_v46 = vmul.f32 0.5, %v100_v42 }
  0x8c   :  { %v74_v47 = vadd.f32 1e-05, %v66_v44  ;;  %v67_v48 = vsub.f32 %v59_v45, %v63_v40 }
  0x8d   :  { %v102_v49 = vsub.f32 1.5, %v101_v46  ;;  %v593_v46 = vld [vmem:[%s922_s5 + $0x28] sm:$0xff] }
  0x8e   :  { %v639_v50 = vpop.eup %638  ;;  %640 = vrsqrt.f32 %v74_v47  ;;  %v75_v51 = vadd.f32 1e-05, %v67_v48  ;;  %vm84_vm7 = vweird.f32 %v74_v47 }
  0x8f   :  { %v103_v52 = vmul.f32 %v637_v35, %v102_v49  ;;  %v109_v53 = vmul.f32 %v639_v50, %v77_v36  ;;  %vm115_vm3 = vweird.f32 %v639_v50  ;;  %v595_v36 = vld [vmem:[%s922_s5 + $0x38] sm:$0xff] }
  0x90   :  { %642 = vrsqrt.f32 %v75_v51  ;;  %vm116_vm5 = vmor %vm114_vm4, %vm115_vm3  ;;  %vm94_vm10 = vweird.f32 %v75_v51  ;;  %624 = vmatpush.bf16.msra.mxu3 %v595_v36  ;;  %473 = vmatpush.bf16.msra.mxu1 %v595_v36 }
  0x91   :  { %v110_v54 = vmul.f32 %v639_v50, %v109_v53  ;;  %v107_v56 = vsel %vm106_vm2, %v637_v35, %v103_v52  ;;  %v592_v53 = vld [vmem:[%s922_s5 + $0x20] sm:$0xff] }
  0x92   :  { %v120_v62 = vmul.f32 %v107_v56, %v72_v58 }
  0x93   :  { %v111_v55 = vmul.f32 0.5, %v110_v54 }
  0x94   :  { %v641_v57 = vpop.eup %640  ;;  %v128_v12 = vmul.f32 %v632_v63, %v120_v62  ;;  %625 = vmatpush.bf16.msra.mxu3 %v594_v41  ;;  %474 = vmatpush.bf16.msra.mxu1 %v594_v41 }
  0x95   :  { %v112_v59 = vsub.f32 1.5, %v111_v55  ;;  %v79_v60 = vmul.f32 %v641_v57, %v74_v47  ;;  %vm85_vm6 = vweird.f32 %v641_v57 }
  0x96   :  { %v643_v61 = vpop.eup %642  ;;  %vm86_vm9 = vmor %vm84_vm7, %vm85_vm6  ;;  %v760_v20 = vadd.f32 %v633_v13, %v128_v12 }
  0x97   :  { %v113_v0 = vmul.f32 %v639_v50, %v112_v59  ;;  %v80_v1 = vmul.f32 %v641_v57, %v79_v60  ;;  %v89_v4 = vmul.f32 %v643_v61, %v75_v51  ;;  %vm95_vm8 = vweird.f32 %v643_v61 }
  0x98   :  { %vm96_vm11 = vmor %vm94_vm10, %vm95_vm8  ;;  %626 = vmatpush.bf16.msra.mxu3 %v593_v46  ;;  %475 = vmatpush.bf16.msra.mxu1 %v593_v46 }
  0x99   :  { %v81_v8 = vmul.f32 0.5, %v80_v1  ;;  %v90_v9 = vmul.f32 %v643_v61, %v89_v4  ;;  %v117_v10 = vsel %vm116_vm5, %v639_v50, %v113_v0  ;;  %v591_v0 = vld [vmem:[%s922_s5 + $0x18] sm:$0xff] }
  0x9a   :  { %v121_v11 = vmul.f32 %v117_v10, %v73_v7 }
  0x9b   :  { %v82_v14 = vsub.f32 1.5, %v81_v8  ;;  %v91_v15 = vmul.f32 0.5, %v90_v9 }
  0x9c   :  { %v129_v16 = vmul.f32 %v632_v63, %v121_v11  ;;  %627 = vmatpush.bf16.msra.mxu3 %v592_v53  ;;  %476 = vmatpush.bf16.msra.mxu1 %v592_v53 }
  0x9d   :  { %v83_v17 = vmul.f32 %v641_v57, %v82_v14  ;;  %v92_v18 = vsub.f32 1.5, %v91_v15  ;;  %v590_v14 = vld [vmem:[%s922_s5 + $0x10] sm:$0xff] }
  0x9e   :  { %v762_v21 = vadd.f32 %v633_v13, %v129_v16 }
  0x9f   :  { %v93_v22 = vmul.f32 %v643_v61, %v92_v18  ;;  %v87_v23 = vsel %vm86_vm9, %v641_v57, %v83_v17 }
  0xa0   :  { %v139_v25 = vpack.c.bf16 %v762_v21, %v760_v20  ;;  %v118_v26 = vmul.f32 %v87_v23, %v70_v19  ;;  %628 = vmatpush.bf16.msra.mxu3 %v591_v0  ;;  %477 = vmatpush.bf16.msra.mxu1 %v591_v0 }
  0xa1   :  { %v97_v27 = vsel %vm96_vm11, %v643_v61, %v93_v22 }
  0xa2   :  { %221 = vmatmul.bf16.vlgmr.msra.gmra.mxu2 %v139_v25  ;;  %v119_v28 = vmul.f32 %v97_v27, %v71_v24  ;;  %v126_v29 = vmul.f32 %v632_v63, %v118_v26 }
  0xa4   :  { %v127_v30 = vmul.f32 %v632_v63, %v119_v28  ;;  %v768_v31 = vadd.f32 %v633_v13, %v126_v29  ;;  %629 = vmatpush.bf16.msra.mxu3 %v590_v14  ;;  %478 = vmatpush.bf16.msra.mxu1 %v590_v14 }
  0xa6   :  { %v770_v32 = vadd.f32 %v633_v13, %v127_v30 }
  0xa8   :  { %v138_v33 = vpack.c.bf16 %v770_v32, %v768_v31 }
  0xaa   :  { %216 = vmatmul.bf16.vlgmr.msra.gmra.mxu0 %v138_v33 }
 0x125   :  { %v222_v35 = vpop.f32.mrf.mxu2 }
 0x126   :  { %v780_v37 = vadd.f32 %v634_v34, %v222_v35 }
 0x127   :  { %v217_v38 = vpop.f32.mrf.mxu0 }
 0x128   :  { %v783_v39 = vmul.f32 0.70710677, %v780_v37  ;;  %v785_v40 = vadd.f32 %v634_v34, %v217_v38 }
 0x12a   :  { %v315_v42 = vmul.f32 %v783_v39, %v783_v39  ;;  %v793_v43 = vmul.f32 0.70710677, %v785_v40 }
 0x12c   :  { %v795_v44 = vmin.f32 %v315_v42, 16.0  ;;  %v235_v45 = vmul.f32 %v793_v43, %v793_v43 }
 0x12d   :  { %v224_v47 = vpop.f32.mrf.mxu2 }
 0x12e   :  { %v317_v48 = vmul.f32 2.1237322e-06, %v795_v44  ;;  %v803_v49 = vmin.f32 %v235_v45, 16.0  ;;  %v805_v50 = vadd.f32 %v634_v34, %v224_v47  ;;  %v328_v51 = vmul.f32 3.8918573e-05, %v795_v44 }
 0x12f   :  { %v219_v52 = vpop.f32.mrf.mxu0 }
 0x130   :  { %v318_v54 = vadd.f32 0.00028619796, %v317_v48  ;;  %v237_v55 = vmul.f32 2.1237322e-06, %v803_v49  ;;  %v812_v56 = vadd.f32 %v634_v34, %v219_v52  ;;  %v815_v57 = vmul.f32 0.70710677, %v805_v50 }
 0x131   :  { %v329_v58 = vadd.f32 0.001143296, %v328_v51  ;;  %v248_v59 = vmul.f32 3.8918573e-05, %v803_v49  ;;  %v589_v34 = vld [vmem:[%s922_s5 + $0x8] sm:$0xff] }
 0x132   :  { %v319_v60 = vmul.f32 %v318_v54, %v795_v44  ;;  %v238_v61 = vadd.f32 0.00028619796, %v237_v55  ;;  %v820_v62 = vmul.f32 0.70710677, %v812_v56  ;;  %v355_v63 = vmul.f32 %v815_v57, %v815_v57  ;;  %630 = vmatpush.bf16.msra.mxu3 %v589_v34  ;;  %479 = vmatpush.bf16.msra.mxu1 %v589_v34  ;;  %v588_v54 = vld [vmem:[%s922_s5] sm:$0xff] }
 0x133   :  { %v330_v1 = vmul.f32 %v329_v58, %v795_v44  ;;  %v249_v4 = vadd.f32 0.001143296, %v248_v59 }
 0x134   :  { %v275_v7 = vmul.f32 %v820_v62, %v820_v62  ;;  %v830_v8 = vmin.f32 %v355_v63, 16.0  ;;  %v320_v11 = vadd.f32 0.0036580483, %v319_v60  ;;  %v239_v12 = vmul.f32 %v238_v61, %v803_v49 }
 0x135   :  { %v331_v9 = vadd.f32 0.014752088, %v330_v1  ;;  %v250_v10 = vmul.f32 %v249_v4, %v803_v49 }
 0x136   :  { %v834_v13 = vmin.f32 %v275_v7, 16.0  ;;  %v357_v15 = vmul.f32 2.1237322e-06, %v830_v8  ;;  %v368_v17 = vmul.f32 3.8918573e-05, %v830_v8  ;;  %v321_v27 = vmul.f32 %v320_v11, %v795_v44  ;;  %631 = vmatpush.bf16.msra.mxu3 %v588_v54  ;;  %480 = vmatpush.bf16.msra.mxu1 %v588_v54 }
 0x137   :  { %v332_v16 = vmul.f32 %v331_v9, %v795_v44  ;;  %v251_v18 = vadd.f32 0.014752088, %v250_v10  ;;  %v240_v28 = vadd.f32 0.0036580483, %v239_v12 }
 0x138   :  { %v277_v19 = vmul.f32 2.1237322e-06, %v834_v13  ;;  %v288_v22 = vmul.f32 3.8918573e-05, %v834_v13  ;;  %v358_v23 = vadd.f32 0.00028619796, %v357_v15 }
 0x139   :  { %v333_v24 = vadd.f32 0.112945676, %v332_v16  ;;  %v369_v25 = vadd.f32 0.001143296, %v368_v17  ;;  %v252_v26 = vmul.f32 %v251_v18, %v803_v49  ;;  %v322_v51 = vadd.f32 0.05243302, %v321_v27 }
 0x13a   :  { %v278_v29 = vadd.f32 0.00028619796, %v277_v19  ;;  %v289_v30 = vadd.f32 0.001143296, %v288_v22  ;;  %v359_v33 = vmul.f32 %v358_v23, %v830_v8  ;;  %v241_v53 = vmul.f32 %v240_v28, %v803_v49 }
 0x13b   :  { %v334_v35 = vmul.f32 %v333_v24, %v795_v44  ;;  %v370_v36 = vmul.f32 %v369_v25, %v830_v8  ;;  %v253_v38 = vadd.f32 0.112945676, %v252_v26  ;;  %v323_v9 = vmul.f32 %v322_v51, %v795_v44 }
 0x13c   :  { %v279_v41 = vmul.f32 %v278_v29, %v834_v13  ;;  %v290_v42 = vmul.f32 %v289_v30, %v834_v13  ;;  %v360_v45 = vadd.f32 0.0036580483, %v359_v33  ;;  %v242_v10 = vadd.f32 0.05243302, %v241_v53 }
 0x13d   :  { %v335_v46 = vadd.f32 0.4994258, %v334_v35  ;;  %v371_v47 = vadd.f32 0.014752088, %v370_v36  ;;  %v254_v48 = vmul.f32 %v253_v38, %v803_v49  ;;  %v324_v18 = vadd.f32 0.18741608, %v323_v9 }
 0x13e   :  { %v291_v52 = vadd.f32 0.014752088, %v290_v42  ;;  %v280_v60 = vadd.f32 0.0036580483, %v279_v41  ;;  %v361_v63 = vmul.f32 %v360_v45, %v830_v8  ;;  %v243_v19 = vmul.f32 %v242_v10, %v803_v49 }
 0x13f   :  { %v336_v55 = vmul.f32 %v335_v46, %v795_v44  ;;  %v372_v58 = vmul.f32 %v371_v47, %v830_v8  ;;  %v255_v59 = vadd.f32 0.4994258, %v254_v48  ;;  %v325_v29 = vmul.f32 %v324_v18, %v795_v44 }
 0x140   :  { %v292_v61 = vmul.f32 %v291_v52, %v834_v13  ;;  %v281_v11 = vmul.f32 %v280_v60, %v834_v13  ;;  %v362_v14 = vadd.f32 0.05243302, %v361_v63  ;;  %v244_v30 = vadd.f32 0.18741608, %v243_v19 }
 0x141   :  { %v337_v0 = vadd.f32 1.0, %v336_v55  ;;  %v373_v1 = vadd.f32 0.112945676, %v372_v58  ;;  %v256_v4 = vmul.f32 %v255_v59, %v803_v49  ;;  %v326_v47 = vadd.f32 1.1283791, %v325_v29 }
 0x142   :  { %v293_v7 = vadd.f32 0.112945676, %v292_v61  ;;  %v282_v22 = vadd.f32 0.05243302, %v281_v11  ;;  %v363_v26 = vmul.f32 %v362_v14, %v830_v8  ;;  %v245_v48 = vmul.f32 %v244_v30, %v803_v49 }
 0x143   :  { %644 = vrcp.f32 %v337_v0  ;;  %v374_v12 = vmul.f32 %v373_v1, %v830_v8  ;;  %v257_v15 = vadd.f32 1.0, %v256_v4  ;;  %v349_v41 = vand.u32 2147483648, %v337_v0 }
 0x144   :  { %v294_v16 = vmul.f32 %v293_v7, %v834_v13  ;;  %v283_v34 = vmul.f32 %v282_v22, %v834_v13  ;;  %v364_v38 = vadd.f32 0.18741608, %v363_v26  ;;  %v347_v44 = vand.u32 2147483647, %v337_v0 }
 0x145   :  { %v375_v17 = vadd.f32 0.4994258, %v374_v12  ;;  %646 = vrcp.f32 %v257_v15  ;;  %vm343_vm13 = vweird.f32 %v337_v0  ;;  %v350_v55 = vor.u32 1.1754944e-38, %v349_v41 }
 0x146   :  { %v295_v24 = vadd.f32 0.4994258, %v294_v16  ;;  %v284_v51 = vadd.f32 0.18741608, %v283_v34  ;;  %v365_v54 = vmul.f32 %v364_v38, %v830_v8  ;;  %v269_v58 = vand.u32 2147483648, %v257_v15 }
 0x147   :  { %v376_v23 = vmul.f32 %v375_v17, %v830_v8  ;;  %v267_v63 = vand.u32 2147483647, %v257_v15  ;;  %v327_v1 = vmul.f32 %v326_v47, %v783_v39  ;;  %v246_v49 = vadd.f32 1.1283791, %v245_v48 }
 0x148   :  { %v296_v33 = vmul.f32 %v295_v24, %v834_v13  ;;  %vm348_vm0 = vcmp.eq.f32.partialorder %v347_v44, 8.507059e+37  ;;  %v285_v7 = vmul.f32 %v284_v51, %v834_v13  ;;  %vm263_vm1 = vweird.f32 %v257_v15 }
 0x149   :  { %v645_v25 = vpop.eup %644  ;;  %v871_v28 = vadd.f32 1.0, %v376_v23  ;;  %v366_v10 = vadd.f32 1.1283791, %v365_v54  ;;  %v270_v14 = vor.u32 1.1754944e-38, %v269_v58  ;;  %vm268_vm3 = vcmp.eq.f32.partialorder %v267_v63, 8.507059e+37 }
 0x14a   :  { %v339_v27 = vmul.f32 %v645_v25, %v337_v0  ;;  %v877_v42 = vadd.f32 1.0, %v296_v33  ;;  %vm344_vm12 = vweird.f32 %v645_v25  ;;  %v247_v22 = vmul.f32 %v246_v49, %v793_v43 }
 0x14b   :  { %648 = vrcp.f32 %v871_v28  ;;  %v647_v36 = vpop.eup %646  ;;  %vm345_vm14 = vmor %vm343_vm13, %vm344_vm12  ;;  %v389_v12 = vand.u32 2147483648, %v871_v28  ;;  %v387_v16 = vand.u32 2147483647, %v871_v28  ;;  %vm383_vm5 = vweird.f32 %v871_v28 }
 0x14c   :  { %v340_v35 = vsub.f32 1.0, %v339_v27  ;;  %v259_v46 = vmul.f32 %v647_v36, %v257_v15  ;;  %650 = vrcp.f32 %v877_v42  ;;  %vm264_vm15 = vweird.f32 %v647_v36 }
 0x14d   :  { %vm265_vm2 = vmor %vm263_vm1, %vm264_vm15  ;;  %v286_v15 = vadd.f32 1.1283791, %v285_v7  ;;  %v309_v26 = vand.u32 2147483648, %v877_v42  ;;  %v307_v30 = vand.u32 2147483647, %v877_v42  ;;  %v367_v33 = vmul.f32 %v366_v10, %v815_v57 }
 0x14e   :  { %v341_v45 = vmul.f32 %v645_v25, %v340_v35  ;;  %v260_v53 = vsub.f32 1.0, %v259_v46  ;;  %vm388_vm8 = vcmp.eq.f32.partialorder %v387_v16, 8.507059e+37  ;;  %vm303_vm9 = vweird.f32 %v877_v42 }
 0x14f   :  { %v287_v41 = vmul.f32 %v286_v15, %v820_v62  ;;  %vm308_vm11 = vcmp.eq.f32.partialorder %v307_v30, 8.507059e+37  ;;  %v229_v57 = vmul.f32 0.5, %v780_v37  ;;  %v228_v62 = vmul.f32 0.5, %v812_v56  ;;  %v635_v37 = vld [vmem:[%s921_s6] ss:$0 sm:$0xff] }
 0x150   :  { %v342_v52 = vadd.f32 %v645_v25, %v341_v45  ;;  %v261_v61 = vmul.f32 %v647_v36, %v260_v53 }
 0x151   :  { %v649_v59 = vpop.eup %648 }
 0x152   :  { %v346_v60 = vsel %vm345_vm14, %v645_v25, %v342_v52  ;;  %v379_v4 = vmul.f32 %v649_v59, %v871_v28  ;;  %v262_v9 = vadd.f32 %v647_v36, %v261_v61  ;;  %v651_v8 = vpop.eup %650  ;;  %vm384_vm4 = vweird.f32 %v649_v59 }
 0x153   :  { %v351_v0 = vsel %vm348_vm0, %v350_v55, %v346_v60  ;;  %v299_v39 = vmul.f32 %v651_v8, %v877_v42  ;;  %v390_v25 = vor.u32 1.1754944e-38, %v389_v12  ;;  %vm385_vm6 = vmor %vm383_vm5, %vm384_vm4  ;;  %vm304_vm7 = vweird.f32 %v651_v8 }
 0x154   :  { %v380_v11 = vsub.f32 1.0, %v379_v4  ;;  %v266_v17 = vsel %vm265_vm2, %v647_v36, %v262_v9  ;;  %v352_v18 = vmul.f32 %v351_v0, %v327_v1  ;;  %vm305_vm10 = vmor %vm303_vm9, %vm304_vm7  ;;  %v310_v28 = vor.u32 1.1754944e-38, %v309_v26 }
 0x155   :  { %v271_v13 = vsel %vm268_vm3, %v270_v14, %v266_v17  ;;  %v300_v23 = vsub.f32 1.0, %v299_v39  ;;  %v230_v52 = vmul.f32 0.5, %v805_v50 }
 0x156   :  { %v381_v19 = vmul.f32 %v649_v59, %v380_v11  ;;  %v272_v27 = vmul.f32 %v271_v13, %v247_v22  ;;  %v546_v34 = vclamps-f32 %v352_v18, 1.0 }
 0x157   :  { %v301_v29 = vmul.f32 %v651_v8, %v300_v23 }
 0x158   :  { %v382_v24 = vadd.f32 %v649_v59, %v381_v19  ;;  %v544_v45 = vclamps-f32 %v272_v27, 1.0  ;;  %v397_v48 = vadd.f32 1.0, %v546_v34 }
 0x159   :  { %v302_v36 = vadd.f32 %v651_v8, %v301_v29 }
 0x15a   :  { %v386_v35 = vsel %vm385_vm6, %v649_v59, %v382_v24  ;;  %v395_v55 = vadd.f32 1.0, %v544_v45  ;;  %v401_v42 = vmul.f32 %v397_v48, %v229_v57  ;;  %v227_v59 = vmul.f32 0.5, %v785_v40 }
 0x15b   :  { %v391_v43 = vsel %vm388_vm8, %v390_v25, %v386_v35  ;;  %v306_v46 = vsel %vm305_vm10, %v651_v8, %v302_v36 }
 0x15c   :  { %v392_v38 = vmul.f32 %v391_v43, %v367_v33  ;;  %v311_v44 = vsel %vm308_vm11, %v310_v28, %v306_v46  ;;  %v399_v63 = vmul.f32 %v395_v55, %v227_v59 }
 0x15d   :  { %v312_v51 = vmul.f32 %v311_v44, %v287_v41 }
 0x15e   :  { %v547_v47 = vclamps-f32 %v392_v38, 1.0 }
 0x15f   :  { %v545_v54 = vclamps-f32 %v312_v51, 1.0 }
 0x160   :  { %v398_v53 = vadd.f32 1.0, %v547_v47 }
 0x161   :  { %v396_v60 = vadd.f32 1.0, %v545_v54 }
 0x162   :  { %v402_v58 = vmul.f32 %v398_v53, %v230_v52 }
 0x163   :  { %v400_v1 = vmul.f32 %v396_v60, %v228_v62 }
 0x164   :  { %v404_v61 = vpack.c.bf16 %v402_v58, %v401_v42 }
 0x165   :  { %v403_v49 = vpack.c.bf16 %v400_v1, %v399_v63 }
 0x166   :  { %486 = vmatmul.bf16.vlgmr.msra.gmra.mxu3 %v404_v61 }
 0x167   :  { %481 = vmatmul.bf16.vlgmr.msra.gmra.mxu1 %v403_v49 }
 0x1e4   :  { %v482_v4 = vpop.f32.mrf.mxu1 }
 0x1e5   :  { %v483_v7 = vadd.f32 %v635_v37, %v482_v4 }
 0x1e7   :  { %v492_v40 = vadd.f32 %v483_v7, %v768_v31 }
 0x1e9   :  { %v487_v50 = vpop.f32.mrf.mxu3  ;;  %v496_v14 = vadd.f32 %v700_v3, %v492_v40 }
 0x1ea   :  { %v488_v0 = vadd.f32 %v635_v37, %v487_v50 }
 0x1ec   :  { %v484_v9 = vpop.f32.mrf.mxu1  ;;  %v494_v11 = vadd.f32 %v488_v0, %v760_v20 }
 0x1ed   :  { %v485_v8 = vadd.f32 %v635_v37, %v484_v9 }
 0x1ee   :  { %v498_v18 = vadd.f32 %v698_v2, %v494_v11 }
 0x1ef   :  { %v493_v56 = vadd.f32 %v485_v8, %v770_v32 }
 0x1f1   :  { %v489_v10 = vpop.f32.mrf.mxu3  ;;  %v497_v16 = vadd.f32 %v708_v6, %v493_v56 }
 0x1f2   :  { %v490_v12 = vadd.f32 %v635_v37, %v489_v10 }
 0x1f3   :  { %v607_v39 = vpack.c.bf16 %v497_v16, %v496_v14 }
 0x1f4   :  { %v495_v17 = vadd.f32 %v490_v12, %v762_v21 }
 0x1f5   :  { %608 = vst [vmem:[%s923_s7] sm:$0xff] %v607_v39  }
 0x1f6   :  { %v499_v19 = vadd.f32 %v706_v5, %v495_v17 }
 0x1f8   :  { %v612_v31 = vpack.c.bf16 %v499_v19, %v498_v18 }
 0x1fa   :  { %615 = vst [vmem:[%s923_s7 + $0x8] sm:$0xff] %v612_v31  }

// kernel: _lambda_.15
= control target key start
LH: loop header
LB: loop body
LE: loop exit
PB: predicated region body
PF: predicated region fallthrough
CT: control target
= control target key end

     0   :  { %s1225_s17 = smov 0   ;;  %s1227_s18 = smov 0   ;;  %s1367_s0 = inlined_call_operand.vmem [shape: bf16[2,16,128], index: 0, kind: input, shape index: {}]   ;;  %s1368_s1 = inlined_call_operand.vmem [shape: bf16[2,16,128], index: 1, kind: input, shape index: {}]   ;;  %s1369_s2 = inlined_call_operand.vmem [shape: bf16[2,16,128], index: 2, kind: input, shape index: {}]   ;;  %s1370_s3 = inlined_call_operand.vmem [shape: f32[2,1,128], index: 3, kind: input, shape index: {}]   ;;  %s1371_s4 = inlined_call_operand.vmem [shape: f32[2,1,128], index: 4, kind: input, shape index: {}]   ;;  %s1372_s5 = inlined_call_operand.vmem [shape: bf16[128,128], index: 5, kind: input, shape index: {}]   ;;  %s1373_s6 = inlined_call_operand.vmem [shape: f32[1,128], index: 6, kind: input, shape index: {}]   ;;  %s1374_s7 = inlined_call_operand.vmem [shape: bf16[128,128], index: 7, kind: input, shape index: {}]   ;;  %s1375_s8 = inlined_call_operand.vmem [shape: f32[1,128], index: 8, kind: input, shape index: {}]   ;;  %s1376_s9 = inlined_call_operand.vmem [shape: bf16[128,128], index: 9, kind: input, shape index: {}]   ;;  %s1377_s10 = inlined_call_operand.vmem [shape: f32[1,128], index: 10, kind: input, shape index: {}]   ;;  %s1378_s11 = inlined_call_operand.vmem [shape: bf16[2,16,128], index: 11, kind: output, shape index: {}]  }
   0x1   :  { %s1229_s19 = smov 0  }
   0x2 LB: > { %s33_s20 = sadd.s32 1, %s1159_s18  ;;  %p958_p0 = scmp.ge.s32.totalorder %s1163_s19, 1  ;;  %s1163_s19 = sphi %s1229_s19, %s21_s19   ;;  %s1159_s18 = sphi %s1227_s18, %s1380_s18   ;;  %s1155_s17 = sphi %s1225_s17, %s1379_s17  }
   0x3   : > { %p35_p1 = scmp.ge.s32.totalorder %s33_s20, 2  ;;  %p408_p2 = scmp.lt.s32.totalorder %s1163_s19, 3 }
   0x5   : > { %s1382_s20 = smov (%p35_p1, %s33_s20), 0  ;;  %p409_p3 = pnand %p958_p0, %p408_p2 }
   0x6   : > { %p481_p4 = scmp.lt.s32.totalorder (!%p409_p3), %s1155_s17, 1 }
   0x7   : > { %412 = sbr.rel (%p409_p3) target bundleno = 334 (0x14e), region = 64 }
   0xc   : > { %v1085_v0 = vld [vmem:[%s1372_s5 + $0x38] sm:$0xff]  ;;  %v1084_v2 = vld [vmem:[%s1372_s5 + $0x30] sm:$0xff]  ;;  %s1384_s17 = smov (!%p481_p4, %s1155_s17), 1  ;;  %v1083_v5 = vld [vmem:[%s1372_s5 + $0x28] sm:$0xff] }
   0xd   : > { %v1094_v1 = vld [vmem:[%s1374_s7 + $0x38] sm:$0xff]  ;;  %602 = vmatpush.bf16.msra.mxu0 %v1085_v0  ;;  %v1093_v3 = vld [vmem:[%s1374_s7 + $0x30] sm:$0xff]  ;;  %v1092_v6 = vld [vmem:[%s1374_s7 + $0x28] sm:$0xff]  ;;  %s512_s24 = scalar_lea.vmem %s1370_s3, %s1384_s17  ;;  %s1304_s12 = sshll.u32 %s1384_s17, 3 }
   0xe   : > { %692 = vmatpush.bf16.msra.mxu1 %v1094_v1  ;;  %v1102_v4 = vld [vmem:[%s1376_s9 + $0x38] sm:$0xff]  ;;  %v1101_v7 = vld [vmem:[%s1376_s9 + $0x30] sm:$0xff]  ;;  %v1082_v8 = vld [vmem:[%s1372_s5 + $0x20] sm:$0xff]  ;;  %s508_s23 = scalar_lea.vmem %s1369_s2, %s1304_s12  ;;  %s498_s27 = scalar_lea.vmem %s1368_s1, %s1304_s12 }
   0xf   : > { %789 = vmatpush.bf16.msra.mxu2 %v1102_v4  ;;  %v1091_v9 = vld [vmem:[%s1374_s7 + $0x20] sm:$0xff]  ;;  %v1100_v10 = vld [vmem:[%s1376_s9 + $0x28] sm:$0xff]  ;;  %v1081_v11 = vld [vmem:[%s1372_s5 + $0x18] sm:$0xff]  ;;  %s515_s30 = scalar_lea.vmem %s1371_s4, %s1384_s17 }
  0x10   : > { %v1090_v12 = vld [vmem:[%s1374_s7 + $0x18] sm:$0xff]  ;;  %v1099_v13 = vld [vmem:[%s1376_s9 + $0x20] sm:$0xff]  ;;  %v1080_v14 = vld [vmem:[%s1372_s5 + $0x10] sm:$0xff] }
  0x11   : > { %603 = vmatpush.bf16.msra.mxu0 %v1084_v2  ;;  %v1089_v15 = vld [vmem:[%s1374_s7 + $0x10] sm:$0xff]  ;;  %v1079_v16 = vld [vmem:[%s1372_s5 + $0x8] sm:$0xff]  ;;  %v1078_v18 = vld [vmem:[%s1372_s5] sm:$0xff] }
  0x12   : > { %693 = vmatpush.bf16.msra.mxu1 %v1093_v3  ;;  %v1088_v17 = vld [vmem:[%s1374_s7 + $0x8] sm:$0xff]  ;;  %v1087_v19 = vld [vmem:[%s1374_s7] sm:$0xff]  ;;  %v1098_v22 = vld [vmem:[%s1376_s9 + $0x18] sm:$0xff] }
  0x13   : > { %790 = vmatpush.bf16.msra.mxu2 %v1101_v7  ;;  %v1077_v20 = vld [vmem:[%s508_s23] sm:$0xff]  ;;  %v1097_v23 = vld [vmem:[%s1376_s9 + $0x10] sm:$0xff]  ;;  %v1096_v24 = vld [vmem:[%s1376_s9 + $0x8] sm:$0xff]  ;;  %s524_s23 = scalar_lea.vmem %s1378_s11, %s1304_s12 }
  0x14   : > { %v1086_v21 = vld [vmem:[%s498_s27] sm:$0xff] }
  0x15   : > { %604 = vmatpush.bf16.msra.mxu0 %v1083_v5  ;;  %v1095_v25 = vld [vmem:[%s1376_s9] sm:$0xff] }
  0x16   : > { %694 = vmatpush.bf16.msra.mxu1 %v1092_v6  ;;  %v1136_v28 = vld [vmem:[%s1373_s6] ss:$0 sm:$0xff] }
  0x17   : > { %791 = vmatpush.bf16.msra.mxu2 %v1100_v10  ;;  %v1138_v29 = vld [vmem:[%s1375_s8] ss:$0 sm:$0xff] }
  0x18   : > { %v1137_v31 = vld [vmem:[%s512_s24] ss:$0 sm:$0xff]  ;;  %s488_s24 = scalar_lea.vmem %s1367_s0, %s1304_s12 }
  0x19   : > { %605 = vmatpush.bf16.msra.mxu0 %v1082_v8  ;;  %v1139_v33 = vld [vmem:[%s515_s30] ss:$0 sm:$0xff] }
  0x1a   : > { %695 = vmatpush.bf16.msra.mxu1 %v1091_v9  ;;  %v1140_v46 = vld [vmem:[%s1377_s10] ss:$0 sm:$0xff] }
  0x1b   : > { %792 = vmatpush.bf16.msra.mxu2 %v1099_v13  ;;  %v1104_v47 = vld [vmem:[%s488_s24] sm:$0xff]  }
  0x1c   : > { %v1105_v49 = vunpack.c.l.bf16 %v1104_v47  ;;  %v1106_v50 = vunpack.c.h.bf16 %v1104_v47 }
  0x1d   : > { %606 = vmatpush.bf16.msra.mxu0 %v1081_v11 }
  0x1e   : > { %696 = vmatpush.bf16.msra.mxu1 %v1090_v12 }
  0x1f   : > { %793 = vmatpush.bf16.msra.mxu2 %v1098_v22 }
  0x21   : > { %607 = vmatpush.bf16.msra.mxu0 %v1080_v14 }
  0x22   : > { %697 = vmatpush.bf16.msra.mxu1 %v1089_v15 }
  0x23   : > { %794 = vmatpush.bf16.msra.mxu2 %v1097_v23 }
  0x25   : > { %608 = vmatpush.bf16.msra.mxu0 %v1079_v16 }
  0x26   : > { %698 = vmatpush.bf16.msra.mxu1 %v1088_v17 }
  0x27   : > { %795 = vmatpush.bf16.msra.mxu2 %v1096_v24 }
  0x29   : > { %609 = vmatpush.bf16.msra.mxu0 %v1078_v18 }
  0x2a   : > { %699 = vmatpush.bf16.msra.mxu1 %v1087_v19 }
  0x2b   : > { %796 = vmatpush.bf16.msra.mxu2 %v1095_v25 }
  0x2c   : > { %610 = vmatmul.bf16.vlgmr.msra.gmra.mxu0 %v1077_v20 }
  0x2d   : > { %700 = vmatmul.bf16.vlgmr.msra.gmra.mxu1 %v1086_v21 }
  0xa9   : > { %v611_v26 = vpop.f32.mrf.mxu0 }
  0xaa   : > { %v701_v27 = vpop.f32.mrf.mxu1  ;;  %v612_v30 = vadd.f32 %v1136_v28, %v611_v26 }
  0xab   : > { %v702_v32 = vadd.f32 %v1138_v29, %v701_v27 }
  0xac   : > { %v710_v36 = vmul.f32 %v1137_v31, %v612_v30 }
  0xad   : > { %v716_v37 = vmul.f32 %v1139_v33, %v702_v32 }
  0xaf   : > { %v718_v42 = vadd.f32 %v716_v37, %v710_v36 }
  0xb1   : > { %v613_v34 = vpop.f32.mrf.mxu0 }
  0xb2   : > { %v703_v35 = vpop.f32.mrf.mxu1  ;;  %v614_v38 = vadd.f32 %v1136_v28, %v613_v34 }
  0xb3   : > { %v704_v39 = vadd.f32 %v1138_v29, %v703_v35 }
  0xb4   : > { %v711_v40 = vmul.f32 %v1137_v31, %v614_v38 }
  0xb5   : > { %v717_v41 = vmul.f32 %v1139_v33, %v704_v39 }
  0xb7   : > { %v719_v43 = vadd.f32 %v717_v41, %v711_v40 }
  0xb9   : > { %v720_v44 = vpack.c.bf16 %v719_v43, %v718_v42 }
  0xbb   : > { %797 = vmatmul.bf16.vlgmr.msra.gmra.mxu2 %v720_v44 }
 0x13e   : > { %v798_v45 = vpop.f32.mrf.mxu2 }
 0x13f   : > { %v799_v48 = vadd.f32 %v1140_v46, %v798_v45 }
 0x141   : > { %v807_v53 = vadd.f32 %v1105_v49, %v799_v48 }
 0x146   : > { %v800_v51 = vpop.f32.mrf.mxu2 }
 0x147   : > { %v801_v52 = vadd.f32 %v1140_v46, %v800_v51 }
 0x149   : > { %v808_v54 = vadd.f32 %v1106_v50, %v801_v52 }
 0x14b   : > { %v1110_v55 = vpack.c.bf16 %v808_v54, %v807_v53 }
 0x14d   : > { %1111 = vst [vmem:[%s524_s23] sm:$0xff] %v1110_v55  }
 0x14e PF: > { %s21_s19 = sadd.s32 1, %s1163_s19   ;;  %s1379_s17 = smov %s1159_s18 }
 0x14f   : > { %p18_p5 = scmp.ge.s32.totalorder %s21_s19, 4   ;;  %s1380_s18 = smov %s1382_s20 }
 0x151   :  { %20 = sbr.rel (!%p18_p5) target bundleno = 2 (0x2), region = 106 }

</bundles_post_ra>
